<compile_context>
chip_gen: v6e
topology: v6e:2x2x1
jax: 0.10.0
libtpu: 0.0.40
codegen_flags: <defaults>
</compile_context>

<pallas_src>
import jax
import jax.numpy as jnp
from jax.experimental import pallas as pl
from jax.experimental.pallas import tpu as pltpu

# Architecture constants implied by the PyTorch module (_create_hidden_layers
# sizes the FC layers for a (1, C, 1, 21) input -> conv_output_size = 64*21).
WIDTH = 21
CONV_CH = (32, 64, 64)
HIDDEN = 512


# ----------------------------------------------------------------------------
# Fused kernel (one batch tile): conv1..3 + relu -> flatten -> dueling head
# ----------------------------------------------------------------------------
def _dueling_dqn_kernel(x_ref, w1_ref, b1_ref, w2_ref, b2_ref, w3_ref, b3_ref,
                        wh1_ref, bh1_ref, wh2_ref, bh2_ref, o_ref, feat_ref):
    BW = x_ref.shape[0]            # W * B_t, width-major rows: r = w*B_t + b
    Bt = o_ref.shape[0]            # batch-tile size (multiple of 8)
    W = BW // Bt
    Cch = w3_ref.shape[2]          # 64

    def conv1x3_relu(x, w_ref, b_ref):
        """(1,3) conv, stride 1, padding (0,1) as three per-tap MXU matmuls.

        Width-major rows mean the w-1 / w+1 taps are the same data shifted by
        ±B_t rows; the (0,1) zero padding (and the tile boundary) is realized
        by a sublane-aligned concat with a zero block.  No im2col scratch, no
        masked RMW stores.
        """
        xb = x.astype(jnp.bfloat16)
        cout = w_ref.shape[2]
        zpad = jnp.zeros((Bt, cout), jnp.float32)
        # tap k=1 -> x[w]
        y = jnp.dot(xb, w_ref[1], preferred_element_type=jnp.float32) + b_ref[...]
        # tap k=0 -> x[w-1]: contribution shifted down by B_t rows
        zl = jnp.dot(xb[:BW - Bt, :], w_ref[0], preferred_element_type=jnp.float32)
        y = y + jnp.concatenate([zpad, zl], axis=0)
        # tap k=2 -> x[w+1]: contribution shifted up by B_t rows
        zr = jnp.dot(xb[Bt:, :], w_ref[2], preferred_element_type=jnp.float32)
        y = y + jnp.concatenate([zr, zpad], axis=0)
        return jnp.maximum(y, 0.0)                       # (BW, cout) f32

    h = conv1x3_relu(x_ref[...], w1_ref, b1_ref)
    h = conv1x3_relu(h, w2_ref, b2_ref)
    h = conv1x3_relu(h, w3_ref, b3_ref)                  # (BW, Cch) f32

    # Regroup (W*Bt, Cch) -> (Bt, W*Cch).  Bt is a multiple of 8 so every read
    # slice is sublane-aligned; cast to bf16 once (MXU consumes bf16).
    hb = h.astype(jnp.bfloat16)
    for w in range(W):
        feat_ref[:, pl.ds(w * Cch, Cch)] = hb[w * Bt:(w + 1) * Bt, :]

    f = feat_ref[...]                                    # (Bt, W*Cch) bf16

    # Fused dueling head: one (F, 2*HIDDEN) matmul, then one block-diagonal
    # (2*HIDDEN, 128) matmul (col 0 = value, cols 1..A = advantage, rest 0).
    h1 = jnp.dot(f, wh1_ref[...], preferred_element_type=jnp.float32) + bh1_ref[...]
    h1 = jnp.maximum(h1, 0.0).astype(jnp.bfloat16)       # (Bt, 2*HIDDEN)
    o_ref[...] = (jnp.dot(h1, wh2_ref[...], preferred_element_type=jnp.float32)
                  + bh2_ref[...])                        # lane-dense (Bt, 128)


# ----------------------------------------------------------------------------
# One-time weight repacking (hoisted out of the per-forward path)
# ----------------------------------------------------------------------------
def prepare_params(p):
    Cch = CONV_CH[-1]
    A = p["a2_w"].shape[0]
    NOUT = max(128, -(-(1 + A) // 128) * 128)   # lane-dense head output width

    def conv_w(w):        # torch (Cout, Cin, 1, 3) -> per-tap (3, Cin, Cout) bf16
        return jnp.transpose(w[:, :, 0, :], (2, 1, 0)).astype(jnp.bfloat16)

    def fc1_rows(wt):     # torch (512, Cch*W) [col c*W+w] -> (W*Cch, 512) [row w*Cch+c]
        return (jnp.transpose(wt.reshape(HIDDEN, Cch, WIDTH), (2, 1, 0))
                .reshape(WIDTH * Cch, HIDDEN))

    wh1 = jnp.concatenate([fc1_rows(p["v1_w"]), fc1_rows(p["a1_w"])],
                          axis=1).astype(jnp.bfloat16)                    # (F, 1024)
    bh1 = jnp.concatenate([p["v1_b"], p["a1_b"]])[None, :].astype(jnp.float32)

    wh2 = jnp.zeros((2 * HIDDEN, NOUT), jnp.float32)
    wh2 = (wh2.at[:HIDDEN, 0:1].set(p["v2_w"].T)
               .at[HIDDEN:, 1:1 + A].set(p["a2_w"].T)).astype(jnp.bfloat16)
    bh2 = jnp.zeros((1, NOUT), jnp.float32)
    bh2 = bh2.at[0, 0].set(p["v2_b"][0]).at[0, 1:1 + A].set(p["a2_b"])

    asf32 = lambda b: b[None, :].astype(jnp.float32)
    return dict(
        w1=conv_w(p["conv1_w"]), b1=asf32(p["conv1_b"]),
        w2=conv_w(p["conv2_w"]), b2=asf32(p["conv2_b"]),
        w3=conv_w(p["conv3_w"]), b3=asf32(p["conv3_b"]),
        wh1=wh1, bh1=bh1, wh2=wh2, bh2=bh2)


# ----------------------------------------------------------------------------
# Wrapper: layout glue, batch-tiled pallas_call, global advantage mean
# ----------------------------------------------------------------------------
def dueling_dqn_forward(x_nchw, kp, *, num_actions, batch_tile=8):
    B, C, H, W = x_nchw.shape
    assert H == 1 and W == WIDTH
    assert batch_tile % 8 == 0, "batch tile must be a sublane multiple"
    Cch = CONV_CH[-1]
    A = num_actions
    Bt = batch_tile
    n_tiles = (B + Bt - 1) // Bt
    Bpad = n_tiles * Bt
    NOUT = kp["wh2"].shape[1]

    # Per-tile width-major rows: (n_tiles, Bt, C, W) -> (n_tiles, W, Bt, C).
    x = x_nchw[:, :, 0, :]                                 # (B, C, W)
    if Bpad != B:
        x = jnp.pad(x, ((0, Bpad - B), (0, 0), (0, 0)))
    x2d = jnp.transpose(x.reshape(n_tiles, Bt, C, W),
                        (0, 3, 1, 2)).reshape(n_tiles * W * Bt, C)

    const2 = lambda i: (0, 0)      # weights/biases resident across the grid
    const3 = lambda i: (0, 0, 0)

    flops = (2 * Bpad * W * 3 * (C * CONV_CH[0] + CONV_CH[0] * CONV_CH[1]
                                 + CONV_CH[1] * CONV_CH[2])
             + 2 * Bpad * (W * Cch * 2 * HIDDEN + 2 * HIDDEN * NOUT))
    weight_bytes = sum(int(kp[k].size) * kp[k].dtype.itemsize
                       for k in ("w1", "b1", "w2", "b2", "w3", "b3",
                                 "wh1", "bh1", "wh2", "bh2"))
    bytes_accessed = (int(x2d.size) * 4 + weight_bytes + Bpad * NOUT * 4)

    o2 = pl.pallas_call(
        _dueling_dqn_kernel,
        out_shape=jax.ShapeDtypeStruct((Bpad, NOUT), jnp.float32),
        grid=(n_tiles,),
        in_specs=[
            pl.BlockSpec((W * Bt, C), lambda i: (i, 0)),
            pl.BlockSpec(kp["w1"].shape, const3), pl.BlockSpec(kp["b1"].shape, const2),
            pl.BlockSpec(kp["w2"].shape, const3), pl.BlockSpec(kp["b2"].shape, const2),
            pl.BlockSpec(kp["w3"].shape, const3), pl.BlockSpec(kp["b3"].shape, const2),
            pl.BlockSpec(kp["wh1"].shape, const2), pl.BlockSpec(kp["bh1"].shape, const2),
            pl.BlockSpec(kp["wh2"].shape, const2), pl.BlockSpec(kp["bh2"].shape, const2),
        ],
        out_specs=pl.BlockSpec((Bt, NOUT), lambda i: (i, 0)),
        scratch_shapes=[pltpu.VMEM((Bt, W * Cch), jnp.bfloat16)],   # flattened feats
        compiler_params=pltpu.CompilerParams(
            dimension_semantics=("parallel",),          # pipelined; 2 TCs on v7x
            vmem_limit_bytes=32 * 1024 * 1024),         # fits v7x's 64 MiB VMEM
        cost_estimate=pl.CostEstimate(flops=flops, transcendentals=0,
                                      bytes_accessed=bytes_accessed),
    )(x2d, kp["w1"], kp["b1"], kp["w2"], kp["b2"], kp["w3"], kp["b3"],
      kp["wh1"], kp["bh1"], kp["wh2"], kp["bh2"])

    o2 = o2[:B, :1 + A]                                   # drop pad rows / lanes
    value, adv = o2[:, :1], o2[:, 1:]
    # torch module: q = value + advantage - advantage.mean()   (GLOBAL mean);
    # computed here so the kernel's batch tiles stay fully independent.
    return value + adv - jnp.mean(adv)


# ----------------------------------------------------------------------------
# Pure-JAX reference with exact PyTorch semantics (NCHW conv, channel-major
# flatten, x @ W.T + b linear, global advantage mean)
# ----------------------------------------------------------------------------
def torch_style_reference(x, p):
    def conv(h, w, b):
        y = jax.lax.conv_general_dilated(
            h, w, window_strides=(1, 1), padding=((0, 0), (1, 1)),
            dimension_numbers=("NCHW", "OIHW", "NCHW"))
        return jax.nn.relu(y + b[None, :, None, None])

    h = conv(conv(conv(x, p["conv1_w"], p["conv1_b"]),
                  p["conv2_w"], p["conv2_b"]),
             p["conv3_w"], p["conv3_b"])
    f = h.reshape(h.shape[0], -1)
    hv = jax.nn.relu(f @ p["v1_w"].T + p["v1_b"])
    value = hv @ p["v2_w"].T + p["v2_b"]
    ha = jax.nn.relu(f @ p["a1_w"].T + p["a1_b"])
    adv = ha @ p["a2_w"].T + p["a2_b"]
    return value + adv - adv.mean()


def init_params(key, in_ch, num_actions):
    F = CONV_CH[-1] * WIDTH
    ks = jax.random.split(key, 14)
    n = lambda k, s: (0.05 * jax.random.normal(k, s)).astype(jnp.float32)
    return dict(
        conv1_w=n(ks[0], (CONV_CH[0], in_ch, 1, 3)), conv1_b=n(ks[1], (CONV_CH[0],)),
        conv2_w=n(ks[2], (CONV_CH[1], CONV_CH[0], 1, 3)), conv2_b=n(ks[3], (CONV_CH[1],)),
        conv3_w=n(ks[4], (CONV_CH[2], CONV_CH[1], 1, 3)), conv3_b=n(ks[5], (CONV_CH[2],)),
        v1_w=n(ks[6], (HIDDEN, F)), v1_b=n(ks[7], (HIDDEN,)),
        v2_w=n(ks[8], (1, HIDDEN)), v2_b=n(ks[9], (1,)),
        a1_w=n(ks[10], (HIDDEN, F)), a1_b=n(ks[11], (HIDDEN,)),
        a2_w=n(ks[12], (num_actions, HIDDEN)), a2_b=n(ks[13], (num_actions,)),
    )


if __name__ == "__main__":
    key = jax.random.PRNGKey(0)
    k_x, k_p = jax.random.split(key)
    B, C, A = 16, 4, 6           # 2 batch tiles of 8 -> exercises the grid
    # input must have spatial shape (1, 21) to match the module's FC sizing
    x = jax.random.normal(k_x, (B, C, 1, WIDTH), dtype=jnp.float32)
    params = init_params(k_p, C, A)
    kparams = prepare_params(params)          # hoisted, one-time weight repack

    fwd = jax.jit(lambda xx, pp: dueling_dqn_forward(
        xx, pp, num_actions=A, batch_tile=8))
    q = jax.block_until_ready(fwd(x, kparams))
    q_ref = torch_style_reference(x, params)

    if q.shape != (B, A):
        raise AssertionError(f"bad output shape {q.shape}")
    # bf16 MXU operands with f32 accumulation -> slightly relaxed tolerance.
    if not jnp.allclose(q, q_ref, atol=5e-3, rtol=5e-3):
        raise AssertionError(
            f"mismatch vs reference, max abs err={float(jnp.max(jnp.abs(q - q_ref)))}")
    print("KERNEL_OK")
</pallas_src>

<mosaic_0001>
module attributes {stable_mosaic.version = 11 : i64} {
  func.func @_dueling_dqn_kernel(%arg0: i32, %arg1: memref<168x4xf32, #tpu.memory_space<vmem>>, %arg2: memref<3x4x32xbf16, #tpu.memory_space<vmem>>, %arg3: memref<1x32xf32, #tpu.memory_space<vmem>>, %arg4: memref<3x32x64xbf16, #tpu.memory_space<vmem>>, %arg5: memref<1x64xf32, #tpu.memory_space<vmem>>, %arg6: memref<3x64x64xbf16, #tpu.memory_space<vmem>>, %arg7: memref<1x64xf32, #tpu.memory_space<vmem>>, %arg8: memref<1344x1024xbf16, #tpu.memory_space<vmem>>, %arg9: memref<1x1024xf32, #tpu.memory_space<vmem>>, %arg10: memref<1024x128xbf16, #tpu.memory_space<vmem>>, %arg11: memref<1x128xf32, #tpu.memory_space<vmem>>, %arg12: memref<8x128xf32, #tpu.memory_space<vmem>>, %arg13: memref<8x1344xbf16, #tpu.memory_space<vmem>>) attributes {dimension_semantics = [#tpu.dimension_semantics<parallel>], iteration_bounds = array<i64: 2>, scalar_prefetch = 0 : i64, scratch_operands = 1 : i64, tpu.core_type = #tpu.core_type<tc>, window_params = [{transform_indices = @transform_0, window_bounds = array<i64: 168, 4>}, {pipeline_mode = #tpu.pipeline_mode<synchronous>, transform_indices = @transform_1, window_bounds = array<i64: 3, 4, 32>}, {pipeline_mode = #tpu.pipeline_mode<synchronous>, transform_indices = @transform_2, window_bounds = array<i64: 1, 32>}, {pipeline_mode = #tpu.pipeline_mode<synchronous>, transform_indices = @transform_3, window_bounds = array<i64: 3, 32, 64>}, {pipeline_mode = #tpu.pipeline_mode<synchronous>, transform_indices = @transform_4, window_bounds = array<i64: 1, 64>}, {pipeline_mode = #tpu.pipeline_mode<synchronous>, transform_indices = @transform_5, window_bounds = array<i64: 3, 64, 64>}, {pipeline_mode = #tpu.pipeline_mode<synchronous>, transform_indices = @transform_6, window_bounds = array<i64: 1, 64>}, {pipeline_mode = #tpu.pipeline_mode<synchronous>, transform_indices = @transform_7, window_bounds = array<i64: 1344, 1024>}, {pipeline_mode = #tpu.pipeline_mode<synchronous>, transform_indices = @transform_8, window_bounds = array<i64: 1, 1024>}, {pipeline_mode = #tpu.pipeline_mode<synchronous>, transform_indices = @transform_9, window_bounds = array<i64: 1024, 128>}, {pipeline_mode = #tpu.pipeline_mode<synchronous>, transform_indices = @transform_10, window_bounds = array<i64: 1, 128>}, {transform_indices = @transform_11, window_bounds = array<i64: 8, 128>}]} {
    %c0 = arith.constant 0 : index
    %c0_0 = arith.constant 0 : index
    %0 = vector.load %arg1[%c0, %c0_0] : memref<168x4xf32, #tpu.memory_space<vmem>>, vector<168x4xf32>
    %1 = arith.truncf %0 : vector<168x4xf32> to vector<168x4xbf16>
    %cst = arith.constant 0.000000e+00 : f32
    %2 = vector.broadcast %cst : f32 to vector<8x32xf32>
    %c1 = arith.constant 1 : index
    %c0_1 = arith.constant 0 : index
    %c0_2 = arith.constant 0 : index
    %3 = vector.load %arg2[%c1, %c0_1, %c0_2] : memref<3x4x32xbf16, #tpu.memory_space<vmem>>, vector<1x4x32xbf16>
    %4 = vector.shape_cast %3 : vector<1x4x32xbf16> to vector<4x32xbf16>
    %cst_3 = arith.constant dense<0.000000e+00> : vector<168x32xf32>
    %5 = tpu.matmul %1, %4, %cst_3 {dimension_numbers = #tpu.dot_dimension_numbers<[1], [0], [0], [1], [0, 0, 1, 1], [], []>} : vector<168x4xbf16>, vector<4x32xbf16>, vector<168x32xf32> -> vector<168x32xf32>
    %c0_4 = arith.constant 0 : index
    %c0_5 = arith.constant 0 : index
    %6 = vector.load %arg3[%c0_4, %c0_5] : memref<1x32xf32, #tpu.memory_space<vmem>>, vector<1x32xf32>
    %7 = vector.broadcast %6 : vector<1x32xf32> to vector<168x32xf32>
    %8 = arith.addf %5, %7 : vector<168x32xf32>
    %9 = vector.extract_strided_slice %1 {offsets = [0, 0], sizes = [160, 4], strides = [1, 1]} : vector<168x4xbf16> to vector<160x4xbf16>
    %c0_6 = arith.constant 0 : index
    %c0_7 = arith.constant 0 : index
    %c0_8 = arith.constant 0 : index
    %10 = vector.load %arg2[%c0_6, %c0_7, %c0_8] : memref<3x4x32xbf16, #tpu.memory_space<vmem>>, vector<1x4x32xbf16>
    %11 = vector.shape_cast %10 : vector<1x4x32xbf16> to vector<4x32xbf16>
    %cst_9 = arith.constant dense<0.000000e+00> : vector<160x32xf32>
    %12 = tpu.matmul %9, %11, %cst_9 {dimension_numbers = #tpu.dot_dimension_numbers<[1], [0], [0], [1], [0, 0, 1, 1], [], []>} : vector<160x4xbf16>, vector<4x32xbf16>, vector<160x32xf32> -> vector<160x32xf32>
    %13 = tpu.concatenate %2, %12 in 0 : vector<8x32xf32>, vector<160x32xf32> -> vector<168x32xf32>
    %14 = arith.addf %8, %13 : vector<168x32xf32>
    %15 = vector.extract_strided_slice %1 {offsets = [8, 0], sizes = [160, 4], strides = [1, 1]} : vector<168x4xbf16> to vector<160x4xbf16>
    %c2 = arith.constant 2 : index
    %c0_10 = arith.constant 0 : index
    %c0_11 = arith.constant 0 : index
    %16 = vector.load %arg2[%c2, %c0_10, %c0_11] : memref<3x4x32xbf16, #tpu.memory_space<vmem>>, vector<1x4x32xbf16>
    %17 = vector.shape_cast %16 : vector<1x4x32xbf16> to vector<4x32xbf16>
    %cst_12 = arith.constant dense<0.000000e+00> : vector<160x32xf32>
    %18 = tpu.matmul %15, %17, %cst_12 {dimension_numbers = #tpu.dot_dimension_numbers<[1], [0], [0], [1], [0, 0, 1, 1], [], []>} : vector<160x4xbf16>, vector<4x32xbf16>, vector<160x32xf32> -> vector<160x32xf32>
    %19 = tpu.concatenate %18, %2 in 0 : vector<160x32xf32>, vector<8x32xf32> -> vector<168x32xf32>
    %20 = arith.addf %14, %19 : vector<168x32xf32>
    %cst_13 = arith.constant 0.000000e+00 : f32
    %21 = vector.broadcast %cst_13 : f32 to vector<168x32xf32>
    %22 = arith.maximumf %20, %21 : vector<168x32xf32>
    %23 = arith.truncf %22 : vector<168x32xf32> to vector<168x32xbf16>
    %cst_14 = arith.constant 0.000000e+00 : f32
    %24 = vector.broadcast %cst_14 : f32 to vector<8x64xf32>
    %c1_15 = arith.constant 1 : index
    %c0_16 = arith.constant 0 : index
    %c0_17 = arith.constant 0 : index
    %25 = vector.load %arg4[%c1_15, %c0_16, %c0_17] : memref<3x32x64xbf16, #tpu.memory_space<vmem>>, vector<1x32x64xbf16>
    %26 = vector.shape_cast %25 : vector<1x32x64xbf16> to vector<32x64xbf16>
    %cst_18 = arith.constant dense<0.000000e+00> : vector<168x64xf32>
    %27 = tpu.matmul %23, %26, %cst_18 {dimension_numbers = #tpu.dot_dimension_numbers<[1], [0], [0], [1], [0, 0, 1, 1], [], []>} : vector<168x32xbf16>, vector<32x64xbf16>, vector<168x64xf32> -> vector<168x64xf32>
    %c0_19 = arith.constant 0 : index
    %c0_20 = arith.constant 0 : index
    %28 = vector.load %arg5[%c0_19, %c0_20] : memref<1x64xf32, #tpu.memory_space<vmem>>, vector<1x64xf32>
    %29 = vector.broadcast %28 : vector<1x64xf32> to vector<168x64xf32>
    %30 = arith.addf %27, %29 : vector<168x64xf32>
    %31 = vector.extract_strided_slice %23 {offsets = [0, 0], sizes = [160, 32], strides = [1, 1]} : vector<168x32xbf16> to vector<160x32xbf16>
    %c0_21 = arith.constant 0 : index
    %c0_22 = arith.constant 0 : index
    %c0_23 = arith.constant 0 : index
    %32 = vector.load %arg4[%c0_21, %c0_22, %c0_23] : memref<3x32x64xbf16, #tpu.memory_space<vmem>>, vector<1x32x64xbf16>
    %33 = vector.shape_cast %32 : vector<1x32x64xbf16> to vector<32x64xbf16>
    %cst_24 = arith.constant dense<0.000000e+00> : vector<160x64xf32>
    %34 = tpu.matmul %31, %33, %cst_24 {dimension_numbers = #tpu.dot_dimension_numbers<[1], [0], [0], [1], [0, 0, 1, 1], [], []>} : vector<160x32xbf16>, vector<32x64xbf16>, vector<160x64xf32> -> vector<160x64xf32>
    %35 = tpu.concatenate %24, %34 in 0 : vector<8x64xf32>, vector<160x64xf32> -> vector<168x64xf32>
    %36 = arith.addf %30, %35 : vector<168x64xf32>
    %37 = vector.extract_strided_slice %23 {offsets = [8, 0], sizes = [160, 32], strides = [1, 1]} : vector<168x32xbf16> to vector<160x32xbf16>
    %c2_25 = arith.constant 2 : index
    %c0_26 = arith.constant 0 : index
    %c0_27 = arith.constant 0 : index
    %38 = vector.load %arg4[%c2_25, %c0_26, %c0_27] : memref<3x32x64xbf16, #tpu.memory_space<vmem>>, vector<1x32x64xbf16>
    %39 = vector.shape_cast %38 : vector<1x32x64xbf16> to vector<32x64xbf16>
    %cst_28 = arith.constant dense<0.000000e+00> : vector<160x64xf32>
    %40 = tpu.matmul %37, %39, %cst_28 {dimension_numbers = #tpu.dot_dimension_numbers<[1], [0], [0], [1], [0, 0, 1, 1], [], []>} : vector<160x32xbf16>, vector<32x64xbf16>, vector<160x64xf32> -> vector<160x64xf32>
    %41 = tpu.concatenate %40, %24 in 0 : vector<160x64xf32>, vector<8x64xf32> -> vector<168x64xf32>
    %42 = arith.addf %36, %41 : vector<168x64xf32>
    %cst_29 = arith.constant 0.000000e+00 : f32
    %43 = vector.broadcast %cst_29 : f32 to vector<168x64xf32>
    %44 = arith.maximumf %42, %43 : vector<168x64xf32>
    %45 = arith.truncf %44 : vector<168x64xf32> to vector<168x64xbf16>
    %cst_30 = arith.constant 0.000000e+00 : f32
    %46 = vector.broadcast %cst_30 : f32 to vector<8x64xf32>
    %c1_31 = arith.constant 1 : index
    %c0_32 = arith.constant 0 : index
    %c0_33 = arith.constant 0 : index
    %47 = vector.load %arg6[%c1_31, %c0_32, %c0_33] : memref<3x64x64xbf16, #tpu.memory_space<vmem>>, vector<1x64x64xbf16>
    %48 = vector.shape_cast %47 : vector<1x64x64xbf16> to vector<64x64xbf16>
    %cst_34 = arith.constant dense<0.000000e+00> : vector<168x64xf32>
    %49 = tpu.matmul %45, %48, %cst_34 {dimension_numbers = #tpu.dot_dimension_numbers<[1], [0], [0], [1], [0, 0, 1, 1], [], []>} : vector<168x64xbf16>, vector<64x64xbf16>, vector<168x64xf32> -> vector<168x64xf32>
    %c0_35 = arith.constant 0 : index
    %c0_36 = arith.constant 0 : index
    %50 = vector.load %arg7[%c0_35, %c0_36] : memref<1x64xf32, #tpu.memory_space<vmem>>, vector<1x64xf32>
    %51 = vector.broadcast %50 : vector<1x64xf32> to vector<168x64xf32>
    %52 = arith.addf %49, %51 : vector<168x64xf32>
    %53 = vector.extract_strided_slice %45 {offsets = [0, 0], sizes = [160, 64], strides = [1, 1]} : vector<168x64xbf16> to vector<160x64xbf16>
    %c0_37 = arith.constant 0 : index
    %c0_38 = arith.constant 0 : index
    %c0_39 = arith.constant 0 : index
    %54 = vector.load %arg6[%c0_37, %c0_38, %c0_39] : memref<3x64x64xbf16, #tpu.memory_space<vmem>>, vector<1x64x64xbf16>
    %55 = vector.shape_cast %54 : vector<1x64x64xbf16> to vector<64x64xbf16>
    %cst_40 = arith.constant dense<0.000000e+00> : vector<160x64xf32>
    %56 = tpu.matmul %53, %55, %cst_40 {dimension_numbers = #tpu.dot_dimension_numbers<[1], [0], [0], [1], [0, 0, 1, 1], [], []>} : vector<160x64xbf16>, vector<64x64xbf16>, vector<160x64xf32> -> vector<160x64xf32>
    %57 = tpu.concatenate %46, %56 in 0 : vector<8x64xf32>, vector<160x64xf32> -> vector<168x64xf32>
    %58 = arith.addf %52, %57 : vector<168x64xf32>
    %59 = vector.extract_strided_slice %45 {offsets = [8, 0], sizes = [160, 64], strides = [1, 1]} : vector<168x64xbf16> to vector<160x64xbf16>
    %c2_41 = arith.constant 2 : index
    %c0_42 = arith.constant 0 : index
    %c0_43 = arith.constant 0 : index
    %60 = vector.load %arg6[%c2_41, %c0_42, %c0_43] : memref<3x64x64xbf16, #tpu.memory_space<vmem>>, vector<1x64x64xbf16>
    %61 = vector.shape_cast %60 : vector<1x64x64xbf16> to vector<64x64xbf16>
    %cst_44 = arith.constant dense<0.000000e+00> : vector<160x64xf32>
    %62 = tpu.matmul %59, %61, %cst_44 {dimension_numbers = #tpu.dot_dimension_numbers<[1], [0], [0], [1], [0, 0, 1, 1], [], []>} : vector<160x64xbf16>, vector<64x64xbf16>, vector<160x64xf32> -> vector<160x64xf32>
    %63 = tpu.concatenate %62, %46 in 0 : vector<160x64xf32>, vector<8x64xf32> -> vector<168x64xf32>
    %64 = arith.addf %58, %63 : vector<168x64xf32>
    %cst_45 = arith.constant 0.000000e+00 : f32
    %65 = vector.broadcast %cst_45 : f32 to vector<168x64xf32>
    %66 = arith.maximumf %64, %65 : vector<168x64xf32>
    %67 = arith.truncf %66 : vector<168x64xf32> to vector<168x64xbf16>
    %68 = vector.extract_strided_slice %67 {offsets = [0, 0], sizes = [8, 64], strides = [1, 1]} : vector<168x64xbf16> to vector<8x64xbf16>
    %c0_46 = arith.constant 0 : index
    %c0_47 = arith.constant 0 : index
    %69 = vector.load %arg13[%c0_46, %c0_47] : memref<8x1344xbf16, #tpu.memory_space<vmem>>, vector<8x64xbf16>
    tpu.vector_store %arg13[%c0_46, %c0_47], %68 {strides = array<i32>} : memref<8x1344xbf16, #tpu.memory_space<vmem>>, vector<8x64xbf16>,
    %70 = vector.extract_strided_slice %67 {offsets = [8, 0], sizes = [8, 64], strides = [1, 1]} : vector<168x64xbf16> to vector<8x64xbf16>
    %c0_48 = arith.constant 0 : index
    %c64 = arith.constant 64 : index
    %71 = vector.load %arg13[%c0_48, %c64] : memref<8x1344xbf16, #tpu.memory_space<vmem>>, vector<8x64xbf16>
    tpu.vector_store %arg13[%c0_48, %c64], %70 {strides = array<i32>} : memref<8x1344xbf16, #tpu.memory_space<vmem>>, vector<8x64xbf16>,
    %72 = vector.extract_strided_slice %67 {offsets = [16, 0], sizes = [8, 64], strides = [1, 1]} : vector<168x64xbf16> to vector<8x64xbf16>
    %c0_49 = arith.constant 0 : index
    %c128 = arith.constant 128 : index
    %73 = vector.load %arg13[%c0_49, %c128] : memref<8x1344xbf16, #tpu.memory_space<vmem>>, vector<8x64xbf16>
    tpu.vector_store %arg13[%c0_49, %c128], %72 {strides = array<i32>} : memref<8x1344xbf16, #tpu.memory_space<vmem>>, vector<8x64xbf16>,
    %74 = vector.extract_strided_slice %67 {offsets = [24, 0], sizes = [8, 64], strides = [1, 1]} : vector<168x64xbf16> to vector<8x64xbf16>
    %c0_50 = arith.constant 0 : index
    %c192 = arith.constant 192 : index
    %75 = vector.load %arg13[%c0_50, %c192] : memref<8x1344xbf16, #tpu.memory_space<vmem>>, vector<8x64xbf16>
    tpu.vector_store %arg13[%c0_50, %c192], %74 {strides = array<i32>} : memref<8x1344xbf16, #tpu.memory_space<vmem>>, vector<8x64xbf16>,
    %76 = vector.extract_strided_slice %67 {offsets = [32, 0], sizes = [8, 64], strides = [1, 1]} : vector<168x64xbf16> to vector<8x64xbf16>
    %c0_51 = arith.constant 0 : index
    %c256 = arith.constant 256 : index
    %77 = vector.load %arg13[%c0_51, %c256] : memref<8x1344xbf16, #tpu.memory_space<vmem>>, vector<8x64xbf16>
    tpu.vector_store %arg13[%c0_51, %c256], %76 {strides = array<i32>} : memref<8x1344xbf16, #tpu.memory_space<vmem>>, vector<8x64xbf16>,
    %78 = vector.extract_strided_slice %67 {offsets = [40, 0], sizes = [8, 64], strides = [1, 1]} : vector<168x64xbf16> to vector<8x64xbf16>
    %c0_52 = arith.constant 0 : index
    %c320 = arith.constant 320 : index
    %79 = vector.load %arg13[%c0_52, %c320] : memref<8x1344xbf16, #tpu.memory_space<vmem>>, vector<8x64xbf16>
    tpu.vector_store %arg13[%c0_52, %c320], %78 {strides = array<i32>} : memref<8x1344xbf16, #tpu.memory_space<vmem>>, vector<8x64xbf16>,
    %80 = vector.extract_strided_slice %67 {offsets = [48, 0], sizes = [8, 64], strides = [1, 1]} : vector<168x64xbf16> to vector<8x64xbf16>
    %c0_53 = arith.constant 0 : index
    %c384 = arith.constant 384 : index
    %81 = vector.load %arg13[%c0_53, %c384] : memref<8x1344xbf16, #tpu.memory_space<vmem>>, vector<8x64xbf16>
    tpu.vector_store %arg13[%c0_53, %c384], %80 {strides = array<i32>} : memref<8x1344xbf16, #tpu.memory_space<vmem>>, vector<8x64xbf16>,
    %82 = vector.extract_strided_slice %67 {offsets = [56, 0], sizes = [8, 64], strides = [1, 1]} : vector<168x64xbf16> to vector<8x64xbf16>
    %c0_54 = arith.constant 0 : index
    %c448 = arith.constant 448 : index
    %83 = vector.load %arg13[%c0_54, %c448] : memref<8x1344xbf16, #tpu.memory_space<vmem>>, vector<8x64xbf16>
    tpu.vector_store %arg13[%c0_54, %c448], %82 {strides = array<i32>} : memref<8x1344xbf16, #tpu.memory_space<vmem>>, vector<8x64xbf16>,
    %84 = vector.extract_strided_slice %67 {offsets = [64, 0], sizes = [8, 64], strides = [1, 1]} : vector<168x64xbf16> to vector<8x64xbf16>
    %c0_55 = arith.constant 0 : index
    %c512 = arith.constant 512 : index
    %85 = vector.load %arg13[%c0_55, %c512] : memref<8x1344xbf16, #tpu.memory_space<vmem>>, vector<8x64xbf16>
    tpu.vector_store %arg13[%c0_55, %c512], %84 {strides = array<i32>} : memref<8x1344xbf16, #tpu.memory_space<vmem>>, vector<8x64xbf16>,
    %86 = vector.extract_strided_slice %67 {offsets = [72, 0], sizes = [8, 64], strides = [1, 1]} : vector<168x64xbf16> to vector<8x64xbf16>
    %c0_56 = arith.constant 0 : index
    %c576 = arith.constant 576 : index
    %87 = vector.load %arg13[%c0_56, %c576] : memref<8x1344xbf16, #tpu.memory_space<vmem>>, vector<8x64xbf16>
    tpu.vector_store %arg13[%c0_56, %c576], %86 {strides = array<i32>} : memref<8x1344xbf16, #tpu.memory_space<vmem>>, vector<8x64xbf16>,
    %88 = vector.extract_strided_slice %67 {offsets = [80, 0], sizes = [8, 64], strides = [1, 1]} : vector<168x64xbf16> to vector<8x64xbf16>
    %c0_57 = arith.constant 0 : index
    %c640 = arith.constant 640 : index
    %89 = vector.load %arg13[%c0_57, %c640] : memref<8x1344xbf16, #tpu.memory_space<vmem>>, vector<8x64xbf16>
    tpu.vector_store %arg13[%c0_57, %c640], %88 {strides = array<i32>} : memref<8x1344xbf16, #tpu.memory_space<vmem>>, vector<8x64xbf16>,
    %90 = vector.extract_strided_slice %67 {offsets = [88, 0], sizes = [8, 64], strides = [1, 1]} : vector<168x64xbf16> to vector<8x64xbf16>
    %c0_58 = arith.constant 0 : index
    %c704 = arith.constant 704 : index
    %91 = vector.load %arg13[%c0_58, %c704] : memref<8x1344xbf16, #tpu.memory_space<vmem>>, vector<8x64xbf16>
    tpu.vector_store %arg13[%c0_58, %c704], %90 {strides = array<i32>} : memref<8x1344xbf16, #tpu.memory_space<vmem>>, vector<8x64xbf16>,
    %92 = vector.extract_strided_slice %67 {offsets = [96, 0], sizes = [8, 64], strides = [1, 1]} : vector<168x64xbf16> to vector<8x64xbf16>
    %c0_59 = arith.constant 0 : index
    %c768 = arith.constant 768 : index
    %93 = vector.load %arg13[%c0_59, %c768] : memref<8x1344xbf16, #tpu.memory_space<vmem>>, vector<8x64xbf16>
    tpu.vector_store %arg13[%c0_59, %c768], %92 {strides = array<i32>} : memref<8x1344xbf16, #tpu.memory_space<vmem>>, vector<8x64xbf16>,
    %94 = vector.extract_strided_slice %67 {offsets = [104, 0], sizes = [8, 64], strides = [1, 1]} : vector<168x64xbf16> to vector<8x64xbf16>
    %c0_60 = arith.constant 0 : index
    %c832 = arith.constant 832 : index
    %95 = vector.load %arg13[%c0_60, %c832] : memref<8x1344xbf16, #tpu.memory_space<vmem>>, vector<8x64xbf16>
    tpu.vector_store %arg13[%c0_60, %c832], %94 {strides = array<i32>} : memref<8x1344xbf16, #tpu.memory_space<vmem>>, vector<8x64xbf16>,
    %96 = vector.extract_strided_slice %67 {offsets = [112, 0], sizes = [8, 64], strides = [1, 1]} : vector<168x64xbf16> to vector<8x64xbf16>
    %c0_61 = arith.constant 0 : index
    %c896 = arith.constant 896 : index
    %97 = vector.load %arg13[%c0_61, %c896] : memref<8x1344xbf16, #tpu.memory_space<vmem>>, vector<8x64xbf16>
    tpu.vector_store %arg13[%c0_61, %c896], %96 {strides = array<i32>} : memref<8x1344xbf16, #tpu.memory_space<vmem>>, vector<8x64xbf16>,
    %98 = vector.extract_strided_slice %67 {offsets = [120, 0], sizes = [8, 64], strides = [1, 1]} : vector<168x64xbf16> to vector<8x64xbf16>
    %c0_62 = arith.constant 0 : index
    %c960 = arith.constant 960 : index
    %99 = vector.load %arg13[%c0_62, %c960] : memref<8x1344xbf16, #tpu.memory_space<vmem>>, vector<8x64xbf16>
    tpu.vector_store %arg13[%c0_62, %c960], %98 {strides = array<i32>} : memref<8x1344xbf16, #tpu.memory_space<vmem>>, vector<8x64xbf16>,
    %100 = vector.extract_strided_slice %67 {offsets = [128, 0], sizes = [8, 64], strides = [1, 1]} : vector<168x64xbf16> to vector<8x64xbf16>
    %c0_63 = arith.constant 0 : index
    %c1024 = arith.constant 1024 : index
    %101 = vector.load %arg13[%c0_63, %c1024] : memref<8x1344xbf16, #tpu.memory_space<vmem>>, vector<8x64xbf16>
    tpu.vector_store %arg13[%c0_63, %c1024], %100 {strides = array<i32>} : memref<8x1344xbf16, #tpu.memory_space<vmem>>, vector<8x64xbf16>,
    %102 = vector.extract_strided_slice %67 {offsets = [136, 0], sizes = [8, 64], strides = [1, 1]} : vector<168x64xbf16> to vector<8x64xbf16>
    %c0_64 = arith.constant 0 : index
    %c1088 = arith.constant 1088 : index
    %103 = vector.load %arg13[%c0_64, %c1088] : memref<8x1344xbf16, #tpu.memory_space<vmem>>, vector<8x64xbf16>
    tpu.vector_store %arg13[%c0_64, %c1088], %102 {strides = array<i32>} : memref<8x1344xbf16, #tpu.memory_space<vmem>>, vector<8x64xbf16>,
    %104 = vector.extract_strided_slice %67 {offsets = [144, 0], sizes = [8, 64], strides = [1, 1]} : vector<168x64xbf16> to vector<8x64xbf16>
    %c0_65 = arith.constant 0 : index
    %c1152 = arith.constant 1152 : index
    %105 = vector.load %arg13[%c0_65, %c1152] : memref<8x1344xbf16, #tpu.memory_space<vmem>>, vector<8x64xbf16>
    tpu.vector_store %arg13[%c0_65, %c1152], %104 {strides = array<i32>} : memref<8x1344xbf16, #tpu.memory_space<vmem>>, vector<8x64xbf16>,
    %106 = vector.extract_strided_slice %67 {offsets = [152, 0], sizes = [8, 64], strides = [1, 1]} : vector<168x64xbf16> to vector<8x64xbf16>
    %c0_66 = arith.constant 0 : index
    %c1216 = arith.constant 1216 : index
    %107 = vector.load %arg13[%c0_66, %c1216] : memref<8x1344xbf16, #tpu.memory_space<vmem>>, vector<8x64xbf16>
    tpu.vector_store %arg13[%c0_66, %c1216], %106 {strides = array<i32>} : memref<8x1344xbf16, #tpu.memory_space<vmem>>, vector<8x64xbf16>,
    %108 = vector.extract_strided_slice %67 {offsets = [160, 0], sizes = [8, 64], strides = [1, 1]} : vector<168x64xbf16> to vector<8x64xbf16>
    %c0_67 = arith.constant 0 : index
    %c1280 = arith.constant 1280 : index
    %109 = vector.load %arg13[%c0_67, %c1280] : memref<8x1344xbf16, #tpu.memory_space<vmem>>, vector<8x64xbf16>
    tpu.vector_store %arg13[%c0_67, %c1280], %108 {strides = array<i32>} : memref<8x1344xbf16, #tpu.memory_space<vmem>>, vector<8x64xbf16>,
    %c0_68 = arith.constant 0 : index
    %c0_69 = arith.constant 0 : index
    %110 = vector.load %arg13[%c0_68, %c0_69] : memref<8x1344xbf16, #tpu.memory_space<vmem>>, vector<8x1344xbf16>
    %c0_70 = arith.constant 0 : index
    %c0_71 = arith.constant 0 : index
    %111 = vector.load %arg8[%c0_70, %c0_71] : memref<1344x1024xbf16, #tpu.memory_space<vmem>>, vector<1344x1024xbf16>
    %cst_72 = arith.constant dense<0.000000e+00> : vector<8x1024xf32>
    %112 = tpu.matmul %110, %111, %cst_72 {dimension_numbers = #tpu.dot_dimension_numbers<[1], [0], [0], [1], [0, 0, 1, 1], [], []>} : vector<8x1344xbf16>, vector<1344x1024xbf16>, vector<8x1024xf32> -> vector<8x1024xf32>
    %c0_73 = arith.constant 0 : index
    %c0_74 = arith.constant 0 : index
    %113 = vector.load %arg9[%c0_73, %c0_74] : memref<1x1024xf32, #tpu.memory_space<vmem>>, vector<1x1024xf32>
    %114 = vector.broadcast %113 : vector<1x1024xf32> to vector<8x1024xf32>
    %115 = arith.addf %112, %114 : vector<8x1024xf32>
    %cst_75 = arith.constant 0.000000e+00 : f32
    %116 = vector.broadcast %cst_75 : f32 to vector<8x1024xf32>
    %117 = arith.maximumf %115, %116 : vector<8x1024xf32>
    %118 = arith.truncf %117 : vector<8x1024xf32> to vector<8x1024xbf16>
    %c0_76 = arith.constant 0 : index
    %c0_77 = arith.constant 0 : index
    %119 = vector.load %arg10[%c0_76, %c0_77] : memref<1024x128xbf16, #tpu.memory_space<vmem>>, vector<1024x128xbf16>
    %cst_78 = arith.constant dense<0.000000e+00> : vector<8x128xf32>
    %120 = tpu.matmul %118, %119, %cst_78 {dimension_numbers = #tpu.dot_dimension_numbers<[1], [0], [0], [1], [0, 0, 1, 1], [], []>} : vector<8x1024xbf16>, vector<1024x128xbf16>, vector<8x128xf32> -> vector<8x128xf32>
    %c0_79 = arith.constant 0 : index
    %c0_80 = arith.constant 0 : index
    %121 = vector.load %arg11[%c0_79, %c0_80] : memref<1x128xf32, #tpu.memory_space<vmem>>, vector<1x128xf32>
    %122 = vector.broadcast %121 : vector<1x128xf32> to vector<8x128xf32>
    %123 = arith.addf %120, %122 : vector<8x128xf32>
    %c0_81 = arith.constant 0 : index
    %c0_82 = arith.constant 0 : index
    %124 = vector.load %arg12[%c0_81, %c0_82] : memref<8x128xf32, #tpu.memory_space<vmem>>, vector<8x128xf32>
    tpu.vector_store %arg12[%c0_81, %c0_82], %123 {strides = array<i32>} : memref<8x128xf32, #tpu.memory_space<vmem>>, vector<8x128xf32>,
    return
  }
  func.func @transform_0(%arg0: i32) -> (i32, i32) {
    %c0_i32 = arith.constant 0 : i32
    %c0_i32_0 = arith.constant 0 : i32
    return %arg0, %c0_i32 : i32, i32
  }
  func.func @transform_1(%arg0: i32) -> (i32, i32, i32) {
    %c0_i32 = arith.constant 0 : i32
    %c0_i32_0 = arith.constant 0 : i32
    %c0_i32_1 = arith.constant 0 : i32
    %c0_i32_2 = arith.constant 0 : i32
    return %c0_i32, %c0_i32_0, %c0_i32_1 : i32, i32, i32
  }
  func.func @transform_2(%arg0: i32) -> (i32, i32) {
    %c0_i32 = arith.constant 0 : i32
    %c0_i32_0 = arith.constant 0 : i32
    %c0_i32_1 = arith.constant 0 : i32
    return %c0_i32, %c0_i32_0 : i32, i32
  }
  func.func @transform_3(%arg0: i32) -> (i32, i32, i32) {
    %c0_i32 = arith.constant 0 : i32
    %c0_i32_0 = arith.constant 0 : i32
    %c0_i32_1 = arith.constant 0 : i32
    %c0_i32_2 = arith.constant 0 : i32
    return %c0_i32, %c0_i32_0, %c0_i32_1 : i32, i32, i32
  }
  func.func @transform_4(%arg0: i32) -> (i32, i32) {
    %c0_i32 = arith.constant 0 : i32
    %c0_i32_0 = arith.constant 0 : i32
    %c0_i32_1 = arith.constant 0 : i32
    return %c0_i32, %c0_i32_0 : i32, i32
  }
  func.func @transform_5(%arg0: i32) -> (i32, i32, i32) {
    %c0_i32 = arith.constant 0 : i32
    %c0_i32_0 = arith.constant 0 : i32
    %c0_i32_1 = arith.constant 0 : i32
    %c0_i32_2 = arith.constant 0 : i32
    return %c0_i32, %c0_i32_0, %c0_i32_1 : i32, i32, i32
  }
  func.func @transform_6(%arg0: i32) -> (i32, i32) {
    %c0_i32 = arith.constant 0 : i32
    %c0_i32_0 = arith.constant 0 : i32
    %c0_i32_1 = arith.constant 0 : i32
    return %c0_i32, %c0_i32_0 : i32, i32
  }
  func.func @transform_7(%arg0: i32) -> (i32, i32) {
    %c0_i32 = arith.constant 0 : i32
    %c0_i32_0 = arith.constant 0 : i32
    %c0_i32_1 = arith.constant 0 : i32
    return %c0_i32, %c0_i32_0 : i32, i32
  }
  func.func @transform_8(%arg0: i32) -> (i32, i32) {
    %c0_i32 = arith.constant 0 : i32
    %c0_i32_0 = arith.constant 0 : i32
    %c0_i32_1 = arith.constant 0 : i32
    return %c0_i32, %c0_i32_0 : i32, i32
  }
  func.func @transform_9(%arg0: i32) -> (i32, i32) {
    %c0_i32 = arith.constant 0 : i32
    %c0_i32_0 = arith.constant 0 : i32
    %c0_i32_1 = arith.constant 0 : i32
    return %c0_i32, %c0_i32_0 : i32, i32
  }
  func.func @transform_10(%arg0: i32) -> (i32, i32) {
    %c0_i32 = arith.constant 0 : i32
    %c0_i32_0 = arith.constant 0 : i32
    %c0_i32_1 = arith.constant 0 : i32
    return %c0_i32, %c0_i32_0 : i32, i32
  }
  func.func @transform_11(%arg0: i32) -> (i32, i32) {
    %c0_i32 = arith.constant 0 : i32
    %c0_i32_0 = arith.constant 0 : i32
    return %arg0, %c0_i32 : i32, i32
  }
}

</mosaic_0001>

<bundles_post_ra>
// kernel: _lambda_.1
= control target key start
LH: loop header
LB: loop body
LE: loop exit
PB: predicated region body
PF: predicated region fallthrough
CT: control target
= control target key end

     0   :  { %16 = vsyncpa [#allocation4], 0  ;;  %s11373_s0 = inlined_call_operand.vmem [shape: f32[336,4], index: 0, kind: input, shape index: {}]   ;;  %s11374_s1 = inlined_call_operand.hbm [shape: bf16[3,4,32], index: 1, kind: input, shape index: {}]   ;;  %s11375_s2 = inlined_call_operand.hbm [shape: f32[1,32], index: 2, kind: input, shape index: {}]   ;;  %s11376_s3 = inlined_call_operand.hbm [shape: bf16[3,32,64], index: 3, kind: input, shape index: {}]   ;;  %s11377_s4 = inlined_call_operand.hbm [shape: f32[1,64], index: 4, kind: input, shape index: {}]   ;;  %s11378_s5 = inlined_call_operand.hbm [shape: bf16[3,64,64], index: 5, kind: input, shape index: {}]   ;;  %s11379_s6 = inlined_call_operand.hbm [shape: f32[1,64], index: 6, kind: input, shape index: {}]   ;;  %s11380_s7 = inlined_call_operand.hbm [shape: bf16[1344,1024], index: 7, kind: input, shape index: {}]   ;;  %s11381_s8 = inlined_call_operand.hbm [shape: f32[1,1024], index: 8, kind: input, shape index: {}]   ;;  %s11382_s9 = inlined_call_operand.hbm [shape: bf16[1024,128], index: 9, kind: input, shape index: {}]   ;;  %s11383_s10 = inlined_call_operand.hbm [shape: f32[1,128], index: 10, kind: input, shape index: {}]   ;;  %s11384_s11 = inlined_call_operand.vmem [shape: f32[16,128], index: 11, kind: output, shape index: {}]  }
   0x1   :  { %17 = vsyncpa [#allocation6], 0 }
   0x2   :  { %18 = vsyncpa [#allocation9], 0 }
   0x3   :  { %19 = vsyncpa [#allocation12], 0 }
   0x4   :  { %20 = vsyncpa [#allocation15], 0 }
   0x5   :  { %21 = vsyncpa [#allocation18], 0  ;;  %s10326_s17 = smov 0  }
   0x6 LB: > { %s10247_s18 = smov [#allocation5]   ;;  %s10332_s20 = sadd.s32 4294967295, %s10245_s17   ;;  %s10245_s17 = sphi %s10326_s17, %s27_s17  }
   0x7   : > { %s320_s19 = sshll.u32 %s10247_s18, 4  ;;  %p8326_p0 = scmp.ge.s32.totalorder %s10245_s17, 1  ;;  %s321_s19 = int_to_ptr.vmem [resolvable:$true] %s320_s19 }
   0x8   : > { %p294_p1 = scmp.lt.s32.totalorder %s10245_s17, 3  ;;  %p9811_p2 = scmp.eq.s32.totalorder %s10332_s20, 0 }
   0x9   : > { %s10248_s22 = smov [#allocation8]   ;;  %s10249_s24 = smov [#allocation11]  }
   0xa   : > { %p10337_p3 = pnand %p8326_p0, %p294_p1  ;;  %s344_s23 = sshll.u32 %s10248_s22, 4  ;;  %s10343_s23 = int_to_ptr.vmem [resolvable:$true] %s344_s23 }
   0xb   : > { %s368_s25 = sshll.u32 %s10249_s24, 4  ;;  %s10250_s27 = smov [#allocation14]   ;;  %s10351_s25 = int_to_ptr.vmem [resolvable:$true] %s368_s25 }
   0xc   : > { %p9780_p4 = pneg %p10337_p3  ;;  %s392_s28 = sshll.u32 %s10250_s27, 4  ;;  %s10353_s28 = int_to_ptr.vmem [resolvable:$true] %s392_s28 }
   0xd   : > { %s9966_s30 = scalar_lea.vmem %s321_s19, 16  ;;  %s9973_s12 = scalar_lea.vmem %s321_s19, 32 }
   0xe   : > { %p10347_p5 = pnand %p9811_p2, %p9780_p4  ;;  %p9967_p7 = scmp.ne.s32.totalorder %s321_s19, %s9966_s30 }
   0xf   : > { %p9974_p10 = scmp.lt.s32.totalorder %s321_s19, %s321_s19  ;;  %p9975_p11 = scmp.lt.s32.totalorder %s9973_s12, %s9966_s30 }
  0x10   : > { %p10357_p6 = pneg %p10347_p5 }
  0x11   : > { %p9976_p12 = por %p9975_p11, %p9974_p10 }
  0x12   : > { %p9969_p8 = pnand %p9967_p7, %p10357_p6 }
  0x14   : > { %p9970_p9 = pneg %p9969_p8 }
  0x16   : > { %p9977_p13 = pnand %p9976_p12, %p9970_p9 }
  0x18   : > { %9980 = shalt.err (!%p9977_p13)
}
  0x19   : > { %9786 = dma.hbm_to_vmem [thread:$0]  (!%p10347_p5), %s11375_s2, 16, %s321_s19, [#allocation6]  }
  0x1a   : > { %s9992_s15 = scalar_lea.vmem %s10343_s23, 16  ;;  %s9999_s16 = scalar_lea.vmem %s10343_s23, 32 }
  0x1b   : > { %p9993_p0 = scmp.ne.s32.totalorder %s10343_s23, %s9992_s15  ;;  %p10000_p7 = scmp.lt.s32.totalorder %s10343_s23, %s10343_s23 }
  0x1c   : > { %p10001_p8 = scmp.lt.s32.totalorder %s9999_s16, %s9992_s15 }
  0x1d   : > { %p9995_p1 = pnand %p9993_p0, %p10357_p6 }
  0x1e   : > { %p10002_p9 = por %p10001_p8, %p10000_p7 }
  0x1f   : > { %p9996_p4 = pneg %p9995_p1 }
  0x21   : > { %p10003_p10 = pnand %p10002_p9, %p9996_p4 }
  0x23   : > { %10006 = shalt.err (!%p10003_p10)
}
  0x24   : > { %9792 = dma.hbm_to_vmem [thread:$0]  (!%p10347_p5), %s11377_s4, 16, %s10343_s23, [#allocation9]  }
  0x25   : > { %s10018_s19 = scalar_lea.vmem %s10351_s25, 16  ;;  %s10025_s24 = scalar_lea.vmem %s10351_s25, 32 }
  0x26   : > { %p10019_p11 = scmp.ne.s32.totalorder %s10351_s25, %s10018_s19  ;;  %p10026_p0 = scmp.lt.s32.totalorder %s10351_s25, %s10351_s25 }
  0x27   : > { %p10027_p1 = scmp.lt.s32.totalorder %s10025_s24, %s10018_s19 }
  0x28   : > { %p10021_p12 = pnand %p10019_p11, %p10357_p6 }
  0x29   : > { %p10028_p4 = por %p10027_p1, %p10026_p0 }
  0x2a   : > { %p10022_p13 = pneg %p10021_p12 }
  0x2c   : > { %p10029_p7 = pnand %p10028_p4, %p10022_p13 }
  0x2e   : > { %10032 = shalt.err (!%p10029_p7)
}
  0x2f   : > { %9798 = dma.hbm_to_vmem [thread:$0]  (!%p10347_p5), %s11379_s6, 16, %s10351_s25, [#allocation12]  }
  0x30   : > { %s10044_s23 = scalar_lea.vmem %s10353_s28, 128  ;;  %p10052_p11 = scmp.lt.s32.totalorder %s10353_s28, %s10353_s28 }
  0x31   : > { %p10045_p8 = scmp.ne.s32.totalorder %s10353_s28, %s10044_s23  ;;  %p10053_p12 = scmp.lt.s32.totalorder %s10044_s23, %s10044_s23 }
  0x33   : > { %p10047_p9 = pnand %p10045_p8, %p10357_p6  ;;  %p10054_p13 = por %p10053_p12, %p10052_p11 }
  0x35   : > { %p10048_p10 = pneg %p10047_p9 }
  0x37   : > { %p10055_p0 = pnand %p10054_p13, %p10048_p10 }
  0x39   : > { %10058 = shalt.err (!%p10055_p0)
}
  0x3a   : > { %9804 = dma.hbm_to_vmem [thread:$0]  (!%p10347_p5), %s11381_s8, 128, %s10353_s28, [#allocation15]  }
  0x3b   : > { %s10251_s25 = smov [#allocation3]  }
  0x3c   : > { %s306_s14 = sshll.u32 %s10251_s25, 4  ;;  %s307_s14 = int_to_ptr.vmem [resolvable:$true] %s306_s14 }
  0x3d   : > { %s10070_s15 = scalar_lea.vmem %s307_s14, 96  ;;  %p10078_p8 = scmp.lt.s32.totalorder %s307_s14, %s307_s14 }
  0x3e   : > { %p10071_p1 = scmp.ne.s32.totalorder %s307_s14, %s10070_s15  ;;  %p10079_p9 = scmp.lt.s32.totalorder %s10070_s15, %s10070_s15 }
  0x40   : > { %p10073_p4 = pnand %p10071_p1, %p10357_p6  ;;  %p10080_p10 = por %p10079_p9, %p10078_p8 }
  0x42   : > { %p10074_p7 = pneg %p10073_p4 }
  0x44   : > { %p10081_p11 = pnand %p10080_p10, %p10074_p7 }
  0x46   : > { %10084 = shalt.err (!%p10081_p11)
}
  0x47   : > { %s10252_s16 = smov 32   ;;  %s10253_s18 = smov 2  }
  0x48   : > { %9783 = dma.hbm_to_vmem [thread:$0]  (!%p10347_p5), %s11374_s1, 96, %s307_s14, [#allocation4], %s10252_s16, %s10252_s16, %s10253_s18  }
  0x49   : > { %s10254_s19 = smov [#allocation7]  }
  0x4a   : > { %s330_s24 = sshll.u32 %s10254_s19, 4  ;;  %s331_s24 = int_to_ptr.vmem [resolvable:$true] %s330_s24 }
  0x4b   : > { %s10096_s27 = scalar_lea.vmem %s331_s24, 768  ;;  %p10104_p1 = scmp.lt.s32.totalorder %s331_s24, %s331_s24 }
  0x4c   : > { %p10097_p12 = scmp.ne.s32.totalorder %s331_s24, %s10096_s27  ;;  %p10105_p4 = scmp.lt.s32.totalorder %s10096_s27, %s10096_s27 }
  0x4e   : > { %p10099_p13 = pnand %p10097_p12, %p10357_p6  ;;  %p10106_p7 = por %p10105_p4, %p10104_p1 }
  0x50   : > { %p10100_p0 = pneg %p10099_p13 }
  0x52   : > { %p10107_p8 = pnand %p10106_p7, %p10100_p0 }
  0x54   : > { %10110 = shalt.err (!%p10107_p8)
}
  0x55   : > { %s10255_s30 = smov 64   ;;  %s10256_s23 = smov 4  }
  0x56   : > { %9789 = dma.hbm_to_vmem [thread:$0]  (!%p10347_p5), %s11376_s3, 768, %s331_s24, [#allocation6], %s10255_s30, %s10255_s30, %s10256_s23  }
  0x57   : > { %s10257_s25 = smov [#allocation10]   ;;  %s10258_s15 = smov [#allocation13]  }
  0x58   : > { %s354_s14 = sshll.u32 %s10257_s25, 4  ;;  %s378_s18 = sshll.u32 %s10258_s15, 4  ;;  %s355_s14 = int_to_ptr.vmem [resolvable:$true] %s354_s14  ;;  %s379_s18 = int_to_ptr.vmem [resolvable:$true] %s378_s18 }
  0x59   : > { %s10122_s28 = scalar_lea.vmem %s355_s14, 1536  ;;  %p10130_p12 = scmp.lt.s32.totalorder %s355_s14, %s355_s14 }
  0x5a   : > { %p10123_p9 = scmp.ne.s32.totalorder %s355_s14, %s10122_s28  ;;  %p10131_p13 = scmp.lt.s32.totalorder %s10122_s28, %s10122_s28 }
  0x5c   : > { %p10125_p10 = pnand %p10123_p9, %p10357_p6  ;;  %p10132_p0 = por %p10131_p13, %p10130_p12 }
  0x5e   : > { %p10126_p11 = pneg %p10125_p10 }
  0x60   : > { %p10133_p1 = pnand %p10132_p0, %p10126_p11 }
  0x62   : > { %10136 = shalt.err (!%p10133_p1)
}
  0x63   : > { %9795 = dma.hbm_to_vmem [thread:$0]  (!%p10347_p5), %s11378_s5, 1536, %s355_s14, [#allocation9], %s10255_s30, %s10255_s30, %s10256_s23  }
  0x64   : > { %s10148_s24 = scalar_lea.vmem %s379_s18, 86016  ;;  %p10156_p9 = scmp.lt.s32.totalorder %s379_s18, %s379_s18 }
  0x65   : > { %p10149_p4 = scmp.ne.s32.totalorder %s379_s18, %s10148_s24  ;;  %p10157_p10 = scmp.lt.s32.totalorder %s10148_s24, %s10148_s24 }
  0x67   : > { %p10151_p7 = pnand %p10149_p4, %p10357_p6  ;;  %p10158_p11 = por %p10157_p10, %p10156_p9 }
  0x69   : > { %p10152_p8 = pneg %p10151_p7 }
  0x6b   : > { %p10159_p12 = pnand %p10158_p11, %p10152_p8 }
  0x6d   : > { %10162 = shalt.err (!%p10159_p12)
}
  0x6e   : > { %s10259_s27 = smov 512   ;;  %s10260_s25 = smov [#allocation16]  }
  0x6f   : > { %9801 = dma.hbm_to_vmem [thread:$0]  (!%p10347_p5), %s11380_s7, 86016, %s379_s18, [#allocation12], %s10259_s27, %s10259_s27, %s10252_s16  }
  0x70   : > { %s402_s14 = sshll.u32 %s10260_s25, 4  ;;  %s10261_s15 = smov [#allocation17]   ;;  %s403_s14 = int_to_ptr.vmem [resolvable:$true] %s402_s14 }
  0x71   : > { %s416_s28 = sshll.u32 %s10261_s15, 4  ;;  %s10174_s22 = scalar_lea.vmem %s403_s14, 8192  ;;  %s417_s28 = int_to_ptr.vmem [resolvable:$true] %s416_s28 }
  0x72   : > { %p10175_p13 = scmp.ne.s32.totalorder %s403_s14, %s10174_s22  ;;  %p10182_p4 = scmp.lt.s32.totalorder %s403_s14, %s403_s14 }
  0x73   : > { %p10183_p7 = scmp.lt.s32.totalorder %s10174_s22, %s10174_s22 }
  0x74   : > { %p10177_p0 = pnand %p10175_p13, %p10357_p6 }
  0x75   : > { %p10184_p8 = por %p10183_p7, %p10182_p4 }
  0x76   : > { %p10178_p1 = pneg %p10177_p0 }
  0x78   : > { %p10185_p9 = pnand %p10184_p8, %p10178_p1 }
  0x7a   : > { %10188 = shalt.err (!%p10185_p9)
}
  0x7b   : > { %9807 = dma.hbm_to_vmem [thread:$0]  (!%p10347_p5), %s11382_s9, 8192, %s403_s14, [#allocation15], %s10255_s30, %s10255_s30, %s10256_s23  }
  0x7c   : > { %s10200_s19 = scalar_lea.vmem %s417_s28, 16  ;;  %s10207_s24 = scalar_lea.vmem %s417_s28, 32 }
  0x7d   : > { %p10201_p10 = scmp.ne.s32.totalorder %s417_s28, %s10200_s19  ;;  %p10208_p13 = scmp.lt.s32.totalorder %s417_s28, %s417_s28 }
  0x7e   : > { %p10209_p0 = scmp.lt.s32.totalorder %s10207_s24, %s10200_s19 }
  0x7f   : > { %p10203_p11 = pnand %p10201_p10, %p10357_p6 }
  0x80   : > { %p10210_p1 = por %p10209_p0, %p10208_p13 }
  0x81   : > { %p10204_p12 = pneg %p10203_p11 }
  0x83   : > { %p10211_p4 = pnand %p10210_p1, %p10204_p12 }
  0x85   : > { %10214 = shalt.err (!%p10211_p4)
}
  0x86   : > { %9810 = dma.hbm_to_vmem [thread:$0]  (!%p10347_p5), %s11383_s10, 16, %s417_s28, [#allocation18]  }
  0x87   : > { %438 = sbr.rel (%p10337_p3) target bundleno = 2098 (0x832), region = 64 }
  0x8c   : > { %10220 = dma.done.wait (%p9811_p2), [#allocation4], 96  }
  0x8d   : > { %10222 = vsyncadd (%p9811_p2), [#allocation4], 4294967200 }
  0x8e   : > { %10224 = dma.done.wait (%p9811_p2), [#allocation6], 784  }
  0x8f   : > { %10226 = vsyncadd (%p9811_p2), [#allocation6], 4294966512 }
  0x90   : > { %10228 = dma.done.wait (%p9811_p2), [#allocation9], 1552  }
  0x91   : > { %10230 = vsyncadd (%p9811_p2), [#allocation9], 4294965744 }
  0x92   : > { %10232 = dma.done.wait (%p9811_p2), [#allocation12], 86032  }
  0x93   : > { %10234 = vsyncadd (%p9811_p2), [#allocation12], 4294881264 }
  0x94   : > { %10236 = dma.done.wait (%p9811_p2), [#allocation15], 8320  }
  0x95   : > { %10238 = vsyncadd (%p9811_p2), [#allocation15], 4294958976 }
  0x96   : > { %10240 = dma.done.wait (%p9811_p2), [#allocation18], 16  }
  0x97   : > { %10242 = vsyncadd (%p9811_p2), [#allocation18], 4294967280  ;;  %s513_s21 = smul.u32 21, %s10332_s20  ;;  %v10262_v0 = vmov 0.0   ;;  %vm10263_vm0 = vmmov 0   ;;  %vm599_vm1 = vcmask 1041408  }
  0x98   : > { %9441 = vmatprep.subr.bf16.mxu0 %v10262_v0  ;;  %9443 = vmatprep.mubr.msk.bf16.mxu0 %vm10263_vm0, %v10262_v0  ;;  %v723_v1 = vld [vmem:[#allocation3] sm:$0x3]  ;;  %v557_v2 = vld [vmem:[#allocation3 + $0x2] sm:$0x3]  ;;  %v862_v3 = vld [vmem:[#allocation3 + $0x4] sm:$0x3] }
  0x99   : > { %p514_p3 = scmp.lt.s32.totalorder %s513_s21, 41  ;;  %9738 = vmatprep.subr.msk.bf16.mxu1 %vm599_vm1, %v723_v1  ;;  %v601_v4 = vsel %vm599_vm1, %v557_v2, 0  ;;  %v725_v5 = vsel %vm599_vm1, %v723_v1, 0  ;;  %vm565_vm2 = vcmask 31744   ;;  %v927_v22 = vsel %vm599_vm1, %v862_v3, 0  ;;  %v9858_v60 = vld [vmem:[#allocation7 + $0x18] sm:$0xff]  }
  0x9a   : > { %9442 = vmatpush3.bf16.msra.mxu0 %v601_v4  ;;  %9736 = vmatpush3.bf16.msra.mxu1 %v725_v5  ;;  %vm874_vm3 = vcmask 1043456   ;;  %v9859_v61 = vld [vmem:[#allocation7 + $0x10] sm:$0xff]   ;;  %v9860_v62 = vld [vmem:[#allocation7 + $0x8] sm:$0xff]   ;;  %v9861_v63 = vld [vmem:[#allocation7] sm:$0xff]   ;;  %vm1119_vm4 = vcmask 261120   ;;  %vm1708_vm5 = vcmask 523264  }
  0x9b   : > { %s11389_s21 = smov (!%p514_p3, %s513_s21), 41  ;;  %9737 = vmatprep.subr.msk.bf16.mxu0 %vm599_vm1, %v723_v1  ;;  %9739 = vmatprep.subr.msk.bf16.mxu1 %vm599_vm1, %v862_v3  ;;  %v10607_v1 = vld [vmem:[#allocation7 + $0x28] sm:$0xff]   ;;  %vm2289_vm6 = vcmask 519168   ;;  %s10264_s13 = smov 64   ;;  %vm2297_vm7 = vcmask 1043968  }
  0x9c   : > { %s8349_s26 = sshll.u32 %s11389_s21, 3  ;;  %p519_p2 = scmp.lt.s32.totalorder %s10332_s20, 1 }
  0x9d   : > { %s10493_s23 = scalar_lea.vmem %s11373_s0, %s8349_s26 }
  0x9e   : > { %v528_v6 = vld [vmem:[%s10493_s23 + $0x20] sm:$0xff]  ;;  %v529_v7 = vld [vmem:[%s10493_s23 + $0x28] sm:$0xff]  ;;  %v530_v11 = vld [vmem:[%s10493_s23 + $0x30] sm:$0xff]  ;;  %s11391_s20 = smov (!%p519_p2, %s10332_s20), 1 }
  0x9f   : > { %v524_v8 = vld [vmem:[%s10493_s23] sm:$0xff]  ;;  %v10501_v9 = vpack.c.bf16 %v529_v7, %v528_v6  ;;  %v525_v10 = vld [vmem:[%s10493_s23 + $0x8] sm:$0xff]  ;;  %v531_v12 = vld [vmem:[%s10493_s23 + $0x38] sm:$0xff]  ;;  %s8350_s25 = sshll.u32 %s11391_s20, 3 }
  0xa0   : > { %v10506_v13 = vpack.c.bf16 %v525_v10, %v524_v8  ;;  %v10509_v14 = vpack.c.bf16 %v531_v12, %v530_v11  ;;  %v532_v15 = vld [vmem:[%s10493_s23 + $0x40] sm:$0xff]  ;;  %v533_v16 = vld [vmem:[%s10493_s23 + $0x48] sm:$0xff]  ;;  %v526_v17 = vld [vmem:[%s10493_s23 + $0x10] sm:$0xff]  ;;  %s522_s28 = scalar_lea.vmem %s11384_s11, %s8350_s25 }
  0xa1   : > { %9493 = vmatprep.mubr.msk.bf16.mxu1 %vm565_vm2, %v10501_v9  ;;  %v549_v18 = vpack.c.bf16 %v533_v16, %v532_v15  ;;  %v527_v19 = vld [vmem:[%s10493_s23 + $0x18] sm:$0xff]  ;;  %v534_v20 = vld [vmem:[%s10493_s23 + $0x50] sm:$0xff]  ;;  %v536_v23 = vld [vmem:[%s10493_s23 + $0x60] sm:$0xff]  ;;  %v878_v26 = vrot.slane %v10501_v9, 4 }
  0xa2   : > { %v535_v21 = vld [vmem:[%s10493_s23 + $0x58] sm:$0xff]  ;;  %9444 = vmatmul.mubr.msk.bf16.vlgmr.msra.gmra.mxu0 %vm565_vm2, %v10506_v13  ;;  %9494 = vmatmul.mubr.msk.bf16.vlgmr.msra.gmra.mxu1 %vm565_vm2, %v10509_v14  ;;  %v537_v24 = vld [vmem:[%s10493_s23 + $0x68] sm:$0xff]  ;;  %v538_v25 = vld [vmem:[%s10493_s23 + $0x70] sm:$0xff]  ;;  %v10531_v27 = vpack.c.bf16 %v527_v19, %v526_v17  ;;  %v875_v35 = vrot.slane %v10506_v13, 4  ;;  %v880_v36 = vrot.slane %v10509_v14, 4 }
  0xa3   : > { %9488 = vmatpush3.bf16.msra.mxu0 %v725_v5  ;;  %9447 = vmatprep.mubr.msk.bf16.mxu0 %vm10263_vm0, %v10262_v0  ;;  %v539_v28 = vld [vmem:[%s10493_s23 + $0x78] sm:$0xff]  ;;  %v540_v29 = vld [vmem:[%s10493_s23 + $0x80] sm:$0xff]  ;;  %v541_v30 = vld [vmem:[%s10493_s23 + $0x88] sm:$0xff]  ;;  %v550_v31 = vpack.c.bf16 %v535_v21, %v534_v20  ;;  %v551_v32 = vpack.c.bf16 %v537_v24, %v536_v23  ;;  %v882_v41 = vrot.slane %v549_v18, 4 }
  0xa4   : > { %9497 = vmatprep.mubr.msk.bf16.mxu1 %vm565_vm2, %v549_v18  ;;  %v542_v33 = vld [vmem:[%s10493_s23 + $0x90] sm:$0xff]  ;;  %v543_v34 = vld [vmem:[%s10493_s23 + $0x98] sm:$0xff]  ;;  %9510 = vmatpush3.bf16.msra.mxu1 %v927_v22  ;;  %v544_v37 = vld [vmem:[%s10493_s23 + $0xa0] sm:$0xff]  ;;  %v552_v38 = vpack.c.bf16 %v539_v28, %v538_v25  ;;  %v553_v39 = vpack.c.bf16 %v541_v30, %v540_v29  ;;  %v876_v40 = vrot.slane %v10531_v27, 4  ;;  %v881_v52 = vsel %vm874_vm3, %v878_v26, %v880_v36 }
  0xa5   : > { %9531 = vmatprep.subr.bf16.mxu1 %v10262_v0  ;;  %v884_v42 = vrot.slane %v550_v31, 4  ;;  %v886_v43 = vrot.slane %v551_v32, 4  ;;  %v554_v44 = vpack.c.bf16 %v543_v34, %v542_v33  ;;  %v555_v47 = vpack.c.bf16 %v544_v37, %v544_v37  ;;  %9579 = vmatprep.subr.bf16.mxu0 %v9860_v62 }
  0xa6   : > { %v888_v45 = vrot.slane %v552_v38, 4  ;;  %v890_v46 = vrot.slane %v553_v39, 4  ;;  %v877_v50 = vsel %vm874_vm3, %v875_v35, %v876_v40  ;;  %v879_v51 = vsel %vm874_vm3, %v876_v40, %v878_v26 }
  0xa7   : > { %v892_v48 = vrot.slane %v554_v44, 4  ;;  %v894_v49 = vrot.slane %v555_v47, 4  ;;  %v883_v53 = vsel %vm874_vm3, %v880_v36, %v882_v41  ;;  %v885_v54 = vsel %vm874_vm3, %v882_v41, %v884_v42 }
  0xa8   : > { %v887_v55 = vsel %vm874_vm3, %v884_v42, %v886_v43  ;;  %v889_v56 = vsel %vm874_vm3, %v886_v43, %v888_v45  ;;  %v891_v57 = vsel %vm874_vm3, %v888_v45, %v890_v46 }
  0xa9   : > { %v893_v58 = vsel %vm874_vm3, %v890_v46, %v892_v48  ;;  %v895_v59 = vsel %vm874_vm3, %v892_v48, %v894_v49 }
  0xaa   : > { %9448 = vmatmul.mubr.msk.bf16.gmra.mxu0 %vm565_vm2, %v10531_v27  ;;  %9498 = vmatmul.mubr.msk.bf16.gmra.mxu1 %vm565_vm2, %v550_v31 }
  0xab   : > { %9451 = vmatprep.mubr.msk.bf16.mxu0 %vm10263_vm0, %v10262_v0  ;;  %9501 = vmatprep.mubr.msk.bf16.mxu1 %vm565_vm2, %v551_v32 }
  0xb2   : > { %9452 = vmatmul.mubr.msk.bf16.gmra.mxu0 %vm565_vm2, %v10501_v9  ;;  %9502 = vmatmul.mubr.msk.bf16.gmra.mxu1 %vm565_vm2, %v552_v38 }
  0xb3   : > { %9455 = vmatprep.mubr.msk.bf16.mxu0 %vm10263_vm0, %v10262_v0  ;;  %9505 = vmatprep.mubr.msk.bf16.mxu1 %vm565_vm2, %v553_v39 }
  0xba   : > { %9456 = vmatmul.mubr.msk.bf16.gmra.mxu0 %vm565_vm2, %v10509_v14  ;;  %9506 = vmatmul.mubr.msk.bf16.gmra.mxu1 %vm565_vm2, %v554_v44 }
  0xbb   : > { %9459 = vmatprep.mubr.msk.bf16.mxu0 %vm10263_vm0, %v10262_v0  ;;  %9511 = vmatprep.mubr.msk.bf16.mxu1 %vm565_vm2, %v877_v50 }
  0xc2   : > { %9460 = vmatmul.mubr.msk.bf16.gmra.mxu0 %vm565_vm2, %v549_v18  ;;  %9512 = vmatmul.mubr.msk.bf16.vlgmr.msra.gmra.mxu1 %vm565_vm2, %v879_v51 }
  0xc3   : > { %9463 = vmatprep.mubr.msk.bf16.mxu0 %vm10263_vm0, %v10262_v0  ;;  %9515 = vmatprep.mubr.msk.bf16.mxu1 %vm565_vm2, %v881_v52 }
  0xc4   : > { %9532 = vmatpush3.bf16.msra.mxu1 %v9858_v60 }
  0xc5   : > { %9533 = vmatprep.subr.bf16.mxu1 %v10262_v0 }
  0xc8   : > { %9534 = vmatpush3.bf16.msra.mxu1 %v9859_v61 }
  0xca   : > { %9464 = vmatmul.mubr.msk.bf16.gmra.mxu0 %vm565_vm2, %v550_v31  ;;  %9516 = vmatmul.mubr.msk.bf16.gmra.mxu1 %vm565_vm2, %v883_v53 }
  0xcb   : > { %9467 = vmatprep.mubr.msk.bf16.mxu0 %vm10263_vm0, %v10262_v0  ;;  %9519 = vmatprep.mubr.msk.bf16.mxu1 %vm565_vm2, %v885_v54 }
  0xd2   : > { %9468 = vmatmul.mubr.msk.bf16.gmra.mxu0 %vm565_vm2, %v551_v32  ;;  %9520 = vmatmul.mubr.msk.bf16.gmra.mxu1 %vm565_vm2, %v887_v55 }
  0xd3   : > { %9471 = vmatprep.mubr.msk.bf16.mxu0 %vm10263_vm0, %v10262_v0  ;;  %9523 = vmatprep.mubr.msk.bf16.mxu1 %vm565_vm2, %v889_v56 }
  0xda   : > { %9472 = vmatmul.mubr.msk.bf16.gmra.mxu0 %vm565_vm2, %v552_v38  ;;  %9524 = vmatmul.mubr.msk.bf16.gmra.mxu1 %vm565_vm2, %v891_v57  ;;  %v10648_v38 = vld [vmem:[#allocation5] ss:$0 sm:$0xff] }
  0xdb   : > { %9475 = vmatprep.mubr.msk.bf16.mxu0 %vm10263_vm0, %v10262_v0  ;;  %9527 = vmatprep.mubr.msk.bf16.mxu1 %vm565_vm2, %v893_v58 }
  0xe2   : > { %9476 = vmatmul.mubr.msk.bf16.gmra.mxu0 %vm565_vm2, %v553_v39  ;;  %9528 = vmatmul.mubr.msk.bf16.gmra.mxu1 %vm565_vm2, %v895_v59 }
  0xe3   : > { %9479 = vmatprep.mubr.msk.bf16.mxu0 %vm10263_vm0, %v10262_v0  ;;  %9535 = vmatprep.mubr.msk.bf16.mxu1 %vm10263_vm0, %v10262_v0 }
  0xea   : > { %9480 = vmatmul.mubr.msk.bf16.gmra.mxu0 %vm565_vm2, %v554_v44 }
  0xeb   : > { %9483 = vmatprep.mubr.msk.bf16.mxu0 %vm10263_vm0, %v10262_v0 }
  0xf2   : > { %9484 = vmatmul.mubr.msk.bf16.gmra.mxu0 %vm565_vm2, %v555_v47 }
  0xf3   : > { %9489 = vmatprep.mubr.msk.bf16.mxu0 %vm565_vm2, %v10506_v13 }
  0xfa   : > { %9490 = vmatmul.mubr.msk.bf16.vlgmr.msra.gmra.mxu0 %vm565_vm2, %v10531_v27 }
  0xfb   : > { %9580 = vmatpush3.bf16.msra.mxu0 %v9860_v62 }
  0xfc   : > { %9581 = vmatprep.subr.bf16.mxu0 %v9861_v63 }
  0xff   : > { %9582 = vmatpush3.bf16.msra.mxu0 %v9861_v63 }
 0x100   : > { %9603 = vmatprep.subr.bf16.mxu0 %v10607_v1 }
 0x162   : > { %v10610_v2 = vpop.f32.mrf.mxu0  ;;  %v9495_v3 = vpop.f32.mrf.mxu1 }
 0x164   : > { %v9445_v4 = vpop.f32.mrf.mxu0  ;;  %v10612_v5 = vpop.f32.mrf.mxu1 }
 0x166   : > { %v10614_v6 = vpop.f32.mrf.mxu0  ;;  %v10616_v7 = vpop.f32.mrf.mxu1 }
 0x168   : > { %v9446_v8 = vpop.f32.mrf.mxu0  ;;  %v780_v9 = vpop.f32.mrf.mxu1 }
 0x16a   : > { %v10618_v10 = vpop.f32.mrf.mxu0  ;;  %v9499_v11 = vpop.f32.mrf.mxu1 }
 0x16c   : > { %v9449_v12 = vpop.f32.mrf.mxu0  ;;  %v793_v13 = vpop.f32.mrf.mxu1 }
 0x16e   : > { %v10620_v14 = vpop.f32.mrf.mxu0  ;;  %v10622_v15 = vpop.f32.mrf.mxu1 }
 0x170   : > { %v9450_v16 = vpop.f32.mrf.mxu0  ;;  %v796_v17 = vpop.f32.mrf.mxu1 }
 0x172   : > { %v10624_v18 = vpop.f32.mrf.mxu0  ;;  %v10626_v19 = vpop.f32.mrf.mxu1 }
 0x174   : > { %v9453_v20 = vpop.f32.mrf.mxu0  ;;  %v10628_v21 = vpop.f32.mrf.mxu1 }
 0x176   : > { %v10630_v22 = vpop.f32.mrf.mxu0  ;;  %v10632_v23 = vpop.f32.mrf.mxu1 }
 0x178   : > { %v9454_v24 = vpop.f32.mrf.mxu0  ;;  %v10634_v25 = vpop.f32.mrf.mxu1 }
 0x17a   : > { %v661_v26 = vpop.f32.mrf.mxu0  ;;  %v10636_v27 = vpop.f32.mrf.mxu1 }
 0x17b   : > { %v662_v41 = vadd.f32 %v10648_v38, %v661_v26  ;;  %v10669_v26 = vld [vmem:[#allocation10 + $0x18] sm:$0xff]  }
 0x17c   : > { %v9457_v28 = vpop.f32.mrf.mxu0  ;;  %v10638_v29 = vpop.f32.mrf.mxu1  ;;  %9679 = vmatprep.subr.bf16.mxu1 %v10669_v26 }
 0x17d   : > { %v846_v47 = vadd.f32 %v780_v9, %v662_v41 }
 0x17e   : > { %v664_v30 = vpop.f32.mrf.mxu0  ;;  %v10640_v31 = vpop.f32.mrf.mxu1 }
 0x17f   : > { %v665_v44 = vadd.f32 %v10648_v38, %v664_v30 }
 0x180   : > { %v9458_v32 = vpop.f32.mrf.mxu0  ;;  %v10642_v33 = vpop.f32.mrf.mxu1 }
 0x181   : > { %v847_v51 = vadd.f32 %v9495_v3, %v665_v44 }
 0x182   : > { %v669_v34 = vpop.f32.mrf.mxu0  ;;  %v10644_v35 = vpop.f32.mrf.mxu1 }
 0x183   : > { %v670_v58 = vadd.f32 %v10648_v38, %v669_v34 }
 0x184   : > { %v9461_v36 = vpop.f32.mrf.mxu0  ;;  %v10646_v37 = vpop.f32.mrf.mxu1 }
 0x185   : > { %v848_v20 = vadd.f32 %v10616_v7, %v670_v58 }
 0x186   : > { %v672_v39 = vpop.f32.mrf.mxu0  ;;  %v10650_v40 = vpop.f32.mrf.mxu1 }
 0x187   : > { %v673_v4 = vadd.f32 %v10648_v38, %v672_v39 }
 0x188   : > { %v9462_v42 = vpop.f32.mrf.mxu0  ;;  %v10653_v43 = vpop.f32.mrf.mxu1 }
 0x189   : > { %v849_v32 = vadd.f32 %v793_v13, %v673_v4 }
 0x18a   : > { %v677_v45 = vpop.f32.mrf.mxu0  ;;  %v9517_v46 = vpop.f32.mrf.mxu1 }
 0x18b   : > { %v1048_v50 = vadd.f32 %v9517_v46, %v846_v47  ;;  %v678_v54 = vadd.f32 %v10648_v38, %v677_v45 }
 0x18c   : > { %v9465_v48 = vpop.f32.mrf.mxu0  ;;  %v10656_v49 = vpop.f32.mrf.mxu1 }
 0x18d   : > { %v1069_v59 = vmax.f32 %v1048_v50, 0.0  ;;  %v850_v8 = vadd.f32 %v796_v17, %v678_v54 }
 0x18e   : > { %v680_v52 = vpop.f32.mrf.mxu0  ;;  %v9518_v53 = vpop.f32.mrf.mxu1 }
 0x18f   : > { %v1049_v55 = vadd.f32 %v9518_v53, %v847_v51  ;;  %v681_v60 = vadd.f32 %v10648_v38, %v680_v52 }
 0x190   : > { %v9466_v56 = vpop.f32.mrf.mxu0  ;;  %v10659_v57 = vpop.f32.mrf.mxu1 }
 0x191   : > { %v1070_v61 = vmax.f32 %v1049_v55, 0.0  ;;  %v851_v24 = vadd.f32 %v9499_v11, %v681_v60 }
 0x192   : > { %v10663_v62 = vpop.f32.mrf.mxu0  ;;  %v9521_v63 = vpop.f32.mrf.mxu1 }
 0x193   : > { %v10666_v3 = vpack.c.bf16 %v1070_v61, %v1069_v59  ;;  %v1052_v16 = vadd.f32 %v9521_v63, %v850_v8 }
 0x194   : > { %v9469_v9 = vpop.f32.mrf.mxu0  ;;  %v995_v12 = vpop.f32.mrf.mxu1 }
 0x195   : > { %v1050_v34 = vadd.f32 %v995_v12, %v848_v20  ;;  %v1073_v42 = vmax.f32 %v1052_v16, 0.0  ;;  %v1444_v13 = vrot.slane %v10666_v3, 4 }
 0x196   : > { %v10671_v28 = vpop.f32.mrf.mxu0  ;;  %v9522_v30 = vpop.f32.mrf.mxu1 }
 0x197   : > { %v1053_v36 = vadd.f32 %v9522_v30, %v851_v24  ;;  %v1071_v46 = vmax.f32 %v1050_v34, 0.0  ;;  %v638_v34 = vadd.f32 %v10648_v38, %v10610_v2 }
 0x198   : > { %v9470_v39 = vpop.f32.mrf.mxu0  ;;  %v998_v41 = vpop.f32.mrf.mxu1 }
 0x199   : > { %v1074_v17 = vmax.f32 %v1053_v36, 0.0  ;;  %v1051_v44 = vadd.f32 %v998_v41, %v849_v32  ;;  %v657_v32 = vadd.f32 %v10648_v38, %v10630_v22  ;;  %v641_v39 = vadd.f32 %v10648_v38, %v10614_v6 }
 0x19a   : > { %v10674_v45 = vpop.f32.mrf.mxu0  ;;  %v649_v41 = vadd.f32 %v10648_v38, %v10620_v14 }
 0x19b   : > { %v10676_v7 = vpack.c.bf16 %v1074_v17, %v1073_v42  ;;  %v1072_v11 = vmax.f32 %v1051_v44, 0.0  ;;  %v10715_v42 = vpop.f32.mrf.mxu1  ;;  %v654_v44 = vadd.f32 %v10648_v38, %v10624_v18  ;;  %v845_v22 = vadd.f32 %v10612_v5, %v657_v32 }
 0x19c   : > { %v9473_v47 = vpop.f32.mrf.mxu0 }
 0x19d   : > { %v10678_v48 = vpack.c.bf16 %v1072_v11, %v1071_v46  ;;  %v1448_v52 = vrot.slane %v10676_v7, 4  ;;  %v646_v47 = vadd.f32 %v10648_v38, %v10618_v10  ;;  %v1047_v6 = vadd.f32 %v10659_v57, %v845_v22  ;;  %v9865_v57 = vld [vmem:[#allocation10 + $0x10] sm:$0xff]  }
 0x19e   : > { %v10680_v50 = vpop.f32.mrf.mxu0 }
 0x19f   : > { %v1446_v51 = vrot.slane %v10678_v48, 4 }
 0x1a0   : > { %v9474_v53 = vpop.f32.mrf.mxu0 }
 0x1a1   : > { %v10688_v54 = vsel %vm874_vm3, %v1444_v13, %v1446_v51  ;;  %v10695_v56 = vsel %vm874_vm3, %v1446_v51, %v1448_v52  ;;  %v1011_v51 = vpop.f32.mrf.mxu1 }
 0x1a2   : > { %v10690_v55 = vpop.f32.mrf.mxu0 }
 0x1a4   : > { %v9477_v58 = vpop.f32.mrf.mxu0 }
 0x1a6   : > { %v10697_v59 = vpop.f32.mrf.mxu0 }
 0x1a8   : > { %v9478_v60 = vpop.f32.mrf.mxu0 }
 0x1aa   : > { %v10699_v61 = vpop.f32.mrf.mxu0 }
 0x1ac   : > { %v9481_v63 = vpop.f32.mrf.mxu0 }
 0x1ae   : > { %v10701_v4 = vpop.f32.mrf.mxu0 }
 0x1b0   : > { %v9482_v8 = vpop.f32.mrf.mxu0 }
 0x1b1   : > { %v1068_v8 = vmax.f32 %v1047_v6, 0.0 }
 0x1b2   : > { %v717_v9 = vpop.f32.mrf.mxu0 }
 0x1b3   : > { %v718_v12 = vadd.f32 %v10648_v38, %v717_v9  ;;  %v9526_v9 = vpop.f32.mrf.mxu1 }
 0x1b4   : > { %v9485_v16 = vpop.f32.mrf.mxu0 }
 0x1b5   : > { %v10705_v20 = vadd.f32 %v10640_v31, %v718_v12  ;;  %v1042_v31 = vadd.f32 %v10646_v37, %v638_v34  ;;  %v9863_v34 = vld [vmem:[#allocation7 + $0x20] sm:$0xff]  }
 0x1b6   : > { %v720_v24 = vpop.f32.mrf.mxu0 }
 0x1b7   : > { %v1063_v58 = vmax.f32 %v1042_v31, 0.0  ;;  %v689_v31 = vadd.f32 %v10648_v38, %v10671_v28 }
 0x1b8   : > { %v9486_v30 = vpop.f32.mrf.mxu0 }
 0x1ba   : > { %v9491_v36 = vpop.f32.mrf.mxu0 }
 0x1bb   : > { %v843_v46 = vadd.f32 %v9491_v36, %v649_v41 }
 0x1bc   : > { %v761_v17 = vpop.f32.mrf.mxu0 }
 0x1bd   : > { %v841_v11 = vadd.f32 %v761_v17, %v641_v39  ;;  %v1045_v60 = vadd.f32 %v10650_v40, %v843_v46  ;;  %v1014_v40 = vpop.f32.mrf.mxu1 }
 0x1be   : > { %v9492_v2 = vpop.f32.mrf.mxu0 }
 0x1bf   : > { %v1043_v14 = vadd.f32 %v10653_v43, %v841_v11  ;;  %v844_v53 = vadd.f32 %v9492_v2, %v654_v44  ;;  %v1066_v24 = vmax.f32 %v1045_v60, 0.0  ;;  %v9529_v36 = vpop.f32.mrf.mxu1  ;;  %v686_v44 = vadd.f32 %v10648_v38, %v10663_v62 }
 0x1c0   : > { %v764_v37 = vpop.f32.mrf.mxu0  ;;  %v705_v62 = vadd.f32 %v10648_v38, %v10697_v59  ;;  %v694_v11 = vadd.f32 %v10648_v38, %v10674_v45 }
 0x1c1   : > { %v1064_v63 = vmax.f32 %v1043_v14, 0.0  ;;  %v1046_v18 = vadd.f32 %v10656_v49, %v844_v53  ;;  %v842_v5 = vadd.f32 %v764_v37, %v646_v47  ;;  %v1027_v22 = vpop.f32.mrf.mxu1  ;;  %v852_v28 = vadd.f32 %v10622_v15, %v686_v44 }
 0x1c2   : > { %v702_v47 = vadd.f32 %v10648_v38, %v10690_v55  ;;  %v857_v6 = vadd.f32 %v10638_v29, %v705_v62  ;;  %v854_v59 = vadd.f32 %v10634_v25, %v694_v11  ;;  %v710_v25 = vadd.f32 %v10648_v38, %v10699_v61 }
 0x1c3   : > { %v1084_v12 = vpack.c.bf16 %v1064_v63, %v1063_v58  ;;  %v1067_v16 = vmax.f32 %v1046_v18, 0.0  ;;  %v1044_v10 = vadd.f32 %v10644_v35, %v842_v5  ;;  %v9530_v2 = vpop.f32.mrf.mxu1 }
 0x1c4   : > { %v856_v53 = vadd.f32 %v10632_v23, %v702_v47  ;;  %v1056_v37 = vadd.f32 %v10715_v42, %v854_v59 }
 0x1c5   : > { %v1086_v30 = vpack.c.bf16 %v1068_v8, %v1067_v16  ;;  %v1065_v43 = vmax.f32 %v1044_v10, 0.0  ;;  %9536 = vmatmul.mubr.msk.bf16.vlgmr.msra.gmra.mxu1 %vm1119_vm4, %v1084_v12  ;;  %9583 = vmatprep.mubr.msk.bf16.mxu0 %vm1119_vm4, %v1084_v12  ;;  %v1439_v35 = vrot.slane %v1084_v12, 4  ;;  %v1030_v14 = vpop.f32.mrf.mxu1 }
 0x1c6   : > { %9539 = vmatprep.mubr.msk.bf16.mxu1 %vm10263_vm0, %v10262_v0  ;;  %9680 = vmatpush3.bf16.msra.mxu1 %v10669_v26  ;;  %v1058_v29 = vadd.f32 %v1027_v22, %v856_v53  ;;  %v1077_v18 = vmax.f32 %v1056_v37, 0.0 }
 0x1c7   : > { %v1442_v49 = vrot.slane %v1086_v30, 4  ;;  %v1085_v32 = vpack.c.bf16 %v1066_v24, %v1065_v43  ;;  %9681 = vmatprep.subr.bf16.mxu1 %v9865_v57  ;;  %v9867_v43 = vld [vmem:[#allocation10] sm:$0xff]  }
 0x1c8   : > { %v1079_v42 = vmax.f32 %v1058_v29, 0.0 }
 0x1c9   : > { %9584 = vmatmul.mubr.msk.bf16.vlgmr.msra.gmra.mxu0 %vm1119_vm4, %v1085_v32  ;;  %v1440_v39 = vrot.slane %v1085_v32, 4  ;;  %v10737_v41 = vsel %vm874_vm3, %v1442_v49, %v1444_v13  ;;  %v853_v13 = vadd.f32 %v10628_v21, %v689_v31  ;;  %v1054_v21 = vadd.f32 %v1011_v51, %v852_v28 }
 0x1ca   : > { %9587 = vmatprep.mubr.msk.bf16.mxu0 %vm1119_vm4, %v1086_v30  ;;  %9604 = vmatpush3.bf16.msra.mxu0 %v10607_v1  ;;  %v697_v1 = vadd.f32 %v10648_v38, %v10680_v50  ;;  %v713_v51 = vadd.f32 %v10648_v38, %v10701_v4  ;;  %v858_v4 = vadd.f32 %v10642_v33, %v710_v25 }
 0x1cb   : > { %9605 = vmatprep.subr.bf16.mxu0 %v9863_v34  ;;  %v1441_v26 = vsel %vm874_vm3, %v1439_v35, %v1440_v39  ;;  %v1443_v17 = vsel %vm874_vm3, %v1440_v39, %v1442_v49  ;;  %9682 = vmatpush3.bf16.msra.mxu1 %v9865_v57  ;;  %v1055_v46 = vadd.f32 %v1014_v40, %v853_v13  ;;  %v1075_v45 = vmax.f32 %v1054_v21, 0.0  ;;  %v9868_v40 = vld [vmem:[#allocation10 + $0x38] sm:$0xff]   ;;  %v9869_v49 = vld [vmem:[#allocation10 + $0x30] sm:$0xff]  }
 0x1cc   : > { %v855_v15 = vadd.f32 %v10626_v19, %v697_v1  ;;  %v1059_v19 = vadd.f32 %v1030_v14, %v857_v6  ;;  %v859_v60 = vadd.f32 %v10636_v27, %v713_v51  ;;  %v1060_v8 = vadd.f32 %v9529_v36, %v858_v4  ;;  %v10836_v36 = vld [vmem:[#allocation10 + $0x58] sm:$0xff]  }
 0x1cd   : > { %9540 = vmatmul.mubr.msk.bf16.gmra.mxu1 %vm1119_vm4, %v1085_v32  ;;  %v1076_v50 = vmax.f32 %v1055_v46, 0.0  ;;  %v9870_v32 = vld [vmem:[#allocation10 + $0x28] sm:$0xff]  }
 0x1ce   : > { %9543 = vmatprep.mubr.msk.bf16.mxu1 %vm10263_vm0, %v10262_v0  ;;  %9606 = vmatpush3.bf16.msra.mxu0 %v9863_v34  ;;  %v1057_v55 = vadd.f32 %v9526_v9, %v855_v15  ;;  %v1080_v63 = vmax.f32 %v1059_v19, 0.0  ;;  %v1061_v61 = vadd.f32 %v9530_v2, %v859_v60  ;;  %v1081_v9 = vmax.f32 %v1060_v8, 0.0  ;;  %v9871_v34 = vld [vmem:[#allocation10 + $0x20] sm:$0xff]   ;;  %v10873_v8 = vld [vmem:[#allocation8] ss:$0 sm:$0xff] }
 0x1cf   : > { %9627 = vmatprep.subr.bf16.mxu0 %v10262_v0  ;;  %v1090_v58 = vpack.c.bf16 %v1076_v50, %v1075_v45 }
 0x1d0   : > { %v1078_v23 = vmax.f32 %v1057_v55, 0.0  ;;  %v1092_v5 = vpack.c.bf16 %v1080_v63, %v1079_v42  ;;  %v1082_v27 = vmax.f32 %v1061_v61, 0.0 }
 0x1d1   : > { %9588 = vmatmul.mubr.msk.bf16.gmra.mxu0 %vm1119_vm4, %v10666_v3 }
 0x1d2   : > { %9591 = vmatprep.mubr.msk.bf16.mxu0 %vm1119_vm4, %v10678_v48  ;;  %v1091_v38 = vpack.c.bf16 %v1078_v23, %v1077_v18  ;;  %v1093_v33 = vpack.c.bf16 %v1082_v27, %v1081_v9 }
 0x1d4   : > { %v1456_v10 = vrot.slane %v1093_v33, 4 }
 0x1d5   : > { %9544 = vmatmul.mubr.msk.bf16.gmra.mxu1 %vm1119_vm4, %v1086_v30  ;;  %v9866_v30 = vld [vmem:[#allocation10 + $0x8] sm:$0xff]  }
 0x1d6   : > { %9547 = vmatprep.mubr.msk.bf16.mxu1 %vm10263_vm0, %v10262_v0  ;;  %9683 = vmatprep.subr.bf16.mxu1 %v9866_v30 }
 0x1d7   : > { %9684 = vmatpush3.bf16.msra.mxu1 %v9866_v30 }
 0x1d8   : > { %9685 = vmatprep.subr.bf16.mxu1 %v9867_v43 }
 0x1d9   : > { %9592 = vmatmul.mubr.msk.bf16.gmra.mxu0 %vm1119_vm4, %v10676_v7 }
 0x1da   : > { %9595 = vmatprep.mubr.msk.bf16.mxu0 %vm1119_vm4, %v1090_v58 }
 0x1db   : > { %9686 = vmatpush3.bf16.msra.mxu1 %v9867_v43 }
 0x1dc   : > { %9707 = vmatprep.subr.bf16.mxu1 %v10836_v36 }
 0x1dd   : > { %9548 = vmatmul.mubr.msk.bf16.gmra.mxu1 %vm1119_vm4, %v10666_v3  ;;  %v1450_v3 = vrot.slane %v1090_v58, 4 }
 0x1de   : > { %9551 = vmatprep.mubr.msk.bf16.mxu1 %vm10263_vm0, %v10262_v0 }
 0x1df   : > { %v1451_v12 = vsel %vm874_vm3, %v1448_v52, %v1450_v3 }
 0x1e1   : > { %9596 = vmatmul.mubr.msk.bf16.gmra.mxu0 %vm1119_vm4, %v1091_v38 }
 0x1e2   : > { %9599 = vmatprep.mubr.msk.bf16.mxu0 %vm1119_vm4, %v1092_v5 }
 0x1e5   : > { %9552 = vmatmul.mubr.msk.bf16.gmra.mxu1 %vm1119_vm4, %v10678_v48  ;;  %v1452_v48 = vrot.slane %v1091_v38, 4 }
 0x1e6   : > { %9555 = vmatprep.mubr.msk.bf16.mxu1 %vm10263_vm0, %v10262_v0 }
 0x1e7   : > { %v1453_v16 = vsel %vm874_vm3, %v1450_v3, %v1452_v48 }
 0x1e9   : > { %9600 = vmatmul.mubr.msk.bf16.gmra.mxu0 %vm1119_vm4, %v1093_v33 }
 0x1ea   : > { %9607 = vmatprep.mubr.msk.bf16.mxu0 %vm1119_vm4, %v1441_v26 }
 0x1ed   : > { %9556 = vmatmul.mubr.msk.bf16.gmra.mxu1 %vm1119_vm4, %v10676_v7 }
 0x1ee   : > { %9559 = vmatprep.mubr.msk.bf16.mxu1 %vm10263_vm0, %v10262_v0 }
 0x1f1   : > { %9608 = vmatmul.mubr.msk.bf16.vlgmr.msra.gmra.mxu0 %vm1119_vm4, %v1443_v17 }
 0x1f2   : > { %9611 = vmatprep.mubr.msk.bf16.mxu0 %vm1119_vm4, %v10737_v41  ;;  %9628 = vmatpush3.bf16.msra.mxu0 %v9868_v40 }
 0x1f3   : > { %9629 = vmatprep.subr.bf16.mxu0 %v10262_v0 }
 0x1f5   : > { %9560 = vmatmul.mubr.msk.bf16.gmra.mxu1 %vm1119_vm4, %v1090_v58 }
 0x1f6   : > { %9563 = vmatprep.mubr.msk.bf16.mxu1 %vm10263_vm0, %v10262_v0  ;;  %9630 = vmatpush3.bf16.msra.mxu0 %v9869_v49 }
 0x1f7   : > { %9631 = vmatprep.subr.bf16.mxu0 %v10262_v0 }
 0x1f9   : > { %9612 = vmatmul.mubr.msk.bf16.gmra.mxu0 %vm1119_vm4, %v10688_v54  ;;  %v1083_v54 = vmax.f32 %v10705_v20, 0.0 }
 0x1fa   : > { %9615 = vmatprep.mubr.msk.bf16.mxu0 %vm1119_vm4, %v10695_v56  ;;  %v1454_v56 = vrot.slane %v1092_v5, 4  ;;  %9632 = vmatpush3.bf16.msra.mxu0 %v9870_v32 }
 0x1fb   : > { %v1094_v57 = vpack.c.bf16 %v1083_v54, %v1083_v54  ;;  %9633 = vmatprep.subr.bf16.mxu0 %v10262_v0 }
 0x1fc   : > { %v1455_v7 = vsel %vm874_vm3, %v1452_v48, %v1454_v56  ;;  %v1457_v52 = vsel %vm874_vm3, %v1454_v56, %v1456_v10 }
 0x1fd   : > { %9564 = vmatmul.mubr.msk.bf16.gmra.mxu1 %vm1119_vm4, %v1091_v38  ;;  %v1458_v24 = vrot.slane %v1094_v57, 4 }
 0x1fe   : > { %9567 = vmatprep.mubr.msk.bf16.mxu1 %vm10263_vm0, %v10262_v0  ;;  %9634 = vmatpush3.bf16.msra.mxu0 %v9871_v34 }
 0x1ff   : > { %v1459_v20 = vsel %vm874_vm3, %v1456_v10, %v1458_v24 }
 0x201   : > { %9616 = vmatmul.mubr.msk.bf16.gmra.mxu0 %vm1119_vm4, %v1451_v12 }
 0x202   : > { %9619 = vmatprep.mubr.msk.bf16.mxu0 %vm1119_vm4, %v1453_v16 }
 0x205   : > { %9568 = vmatmul.mubr.msk.bf16.gmra.mxu1 %vm1119_vm4, %v1092_v5 }
 0x206   : > { %9571 = vmatprep.mubr.msk.bf16.mxu1 %vm10263_vm0, %v10262_v0 }
 0x209   : > { %9620 = vmatmul.mubr.msk.bf16.gmra.mxu0 %vm1119_vm4, %v1455_v7 }
 0x20a   : > { %9623 = vmatprep.mubr.msk.bf16.mxu0 %vm1119_vm4, %v1457_v52 }
 0x20d   : > { %9572 = vmatmul.mubr.msk.bf16.gmra.mxu1 %vm1119_vm4, %v1093_v33 }
 0x20e   : > { %9575 = vmatprep.mubr.msk.bf16.mxu1 %vm10263_vm0, %v10262_v0 }
 0x211   : > { %9624 = vmatmul.mubr.msk.bf16.gmra.mxu0 %vm1119_vm4, %v1459_v20 }
 0x212   : > { %9635 = vmatprep.mubr.msk.bf16.mxu0 %vm10263_vm0, %v10262_v0 }
 0x215   : > { %9576 = vmatmul.mubr.msk.bf16.gmra.mxu1 %vm1119_vm4, %v1094_v57 }
 0x285   : > { %v1187_v35 = vpop.f32.mrf.mxu1 }
 0x286   : > { %v1188_v10 = vadd.f32 %v10873_v8, %v1187_v35 }
 0x287   : > { %v9537_v39 = vpop.f32.mrf.mxu1 }
 0x289   : > { %v1190_v41 = vpop.f32.mrf.mxu1  ;;  %v9585_v31 = vpop.f32.mrf.mxu0 }
 0x28a   : > { %v1191_v16 = vadd.f32 %v10873_v8, %v1190_v41 }
 0x28b   : > { %v9538_v26 = vpop.f32.mrf.mxu1  ;;  %v1323_v17 = vpop.f32.mrf.mxu0 }
 0x28c   : > { %v1403_v20 = vadd.f32 %v1323_v17, %v1191_v16 }
 0x28d   : > { %v1195_v44 = vpop.f32.mrf.mxu1  ;;  %v10839_v22 = vpop.f32.mrf.mxu0 }
 0x28e   : > { %v1196_v3 = vadd.f32 %v10873_v8, %v1195_v44 }
 0x28f   : > { %v9541_v13 = vpop.f32.mrf.mxu1  ;;  %v1326_v1 = vpop.f32.mrf.mxu0 }
 0x290   : > { %v1404_v7 = vadd.f32 %v1326_v1, %v1196_v3 }
 0x291   : > { %v1198_v28 = vpop.f32.mrf.mxu1  ;;  %v10841_v46 = vpop.f32.mrf.mxu0 }
 0x292   : > { %v1199_v33 = vadd.f32 %v10873_v8, %v1198_v28 }
 0x293   : > { %v9542_v62 = vpop.f32.mrf.mxu1  ;;  %v10843_v11 = vpop.f32.mrf.mxu0 }
 0x294   : > { %v1405_v57 = vadd.f32 %v9585_v31, %v1199_v33 }
 0x295   : > { %v1203_v2 = vpop.f32.mrf.mxu1  ;;  %v10845_v21 = vpop.f32.mrf.mxu0 }
 0x296   : > { %v1204_v34 = vadd.f32 %v10873_v8, %v1203_v2 }
 0x297   : > { %v9545_v47 = vpop.f32.mrf.mxu1  ;;  %v1342_v15 = vpop.f32.mrf.mxu0 }
 0x298   : > { %v1406_v2 = vadd.f32 %v10839_v22, %v1204_v34 }
 0x299   : > { %v1206_v50 = vpop.f32.mrf.mxu1  ;;  %v10847_v6 = vpop.f32.mrf.mxu0 }
 0x29a   : > { %v1207_v13 = vadd.f32 %v10873_v8, %v1206_v50 }
 0x29b   : > { %v9546_v59 = vpop.f32.mrf.mxu1  ;;  %v10849_v14 = vpop.f32.mrf.mxu0 }
 0x29c   : > { %v1407_v50 = vadd.f32 %v10843_v11, %v1207_v13 }
 0x29d   : > { %v1211_v45 = vpop.f32.mrf.mxu1  ;;  %v10851_v53 = vpop.f32.mrf.mxu0 }
 0x29e   : > { %v1212_v26 = vadd.f32 %v10873_v8, %v1211_v45 }
 0x29f   : > { %v9549_v55 = vpop.f32.mrf.mxu1  ;;  %v10853_v51 = vpop.f32.mrf.mxu0 }
 0x2a0   : > { %v1408_v45 = vadd.f32 %v1342_v15, %v1212_v26 }
 0x2a1   : > { %v1214_v58 = vpop.f32.mrf.mxu1  ;;  %v10855_v19 = vpop.f32.mrf.mxu0 }
 0x2a2   : > { %v1215_v39 = vadd.f32 %v10873_v8, %v1214_v58 }
 0x2a3   : > { %v9550_v37 = vpop.f32.mrf.mxu1  ;;  %v10857_v25 = vpop.f32.mrf.mxu0 }
 0x2a4   : > { %v1409_v55 = vadd.f32 %v10841_v46, %v1215_v39 }
 0x2a5   : > { %v10859_v29 = vpop.f32.mrf.mxu1  ;;  %v10861_v23 = vpop.f32.mrf.mxu0 }
 0x2a6   : > { %v1220_v46 = vadd.f32 %v10873_v8, %v10859_v29 }
 0x2a7   : > { %v9553_v60 = vpop.f32.mrf.mxu1  ;;  %v10863_v63 = vpop.f32.mrf.mxu0 }
 0x2a9   : > { %v10865_v18 = vpop.f32.mrf.mxu1  ;;  %v10867_v4 = vpop.f32.mrf.mxu0 }
 0x2ab   : > { %v9554_v42 = vpop.f32.mrf.mxu1  ;;  %v10869_v38 = vpop.f32.mrf.mxu0 }
 0x2ac   : > { %v9873_v42 = vld [vmem:[#allocation10 + $0x50] sm:$0xff]  }
 0x2ad   : > { %v1227_v61 = vpop.f32.mrf.mxu1  ;;  %v10871_v5 = vpop.f32.mrf.mxu0 }
 0x2ae   : > { %v1228_v16 = vadd.f32 %v10873_v8, %v1227_v61 }
 0x2af   : > { %v9557_v27 = vpop.f32.mrf.mxu1  ;;  %v10875_v9 = vpop.f32.mrf.mxu0 }
 0x2b1   : > { %v1230_v48 = vpop.f32.mrf.mxu1  ;;  %v9609_v12 = vpop.f32.mrf.mxu0 }
 0x2b2   : > { %v1617_v40 = vadd.f32 %v9609_v12, %v1404_v7  ;;  %v1231_v11 = vadd.f32 %v10873_v8, %v1230_v48  ;;  %v1223_v7 = vadd.f32 %v10873_v8, %v10865_v18  ;;  %v1410_v48 = vadd.f32 %v10845_v21, %v1220_v46  ;;  %v9875_v18 = vld [vmem:[#allocation10 + $0x40] sm:$0xff]  }
 0x2b3   : > { %v9558_v54 = vpop.f32.mrf.mxu1  ;;  %v1536_v56 = vpop.f32.mrf.mxu0 }
 0x2b4   : > { %v1615_v30 = vadd.f32 %v1536_v56, %v1188_v10  ;;  %v1638_v28 = vmax.f32 %v1617_v40, 0.0  ;;  %v1411_v21 = vadd.f32 %v10849_v14, %v1223_v7 }
 0x2b5   : > { %v10881_v52 = vpop.f32.mrf.mxu1  ;;  %v9610_v24 = vpop.f32.mrf.mxu0 }
 0x2b6   : > { %v1618_v43 = vadd.f32 %v9610_v24, %v1405_v57  ;;  %v1636_v1 = vmax.f32 %v1615_v30, 0.0  ;;  %v9874_v57 = vld [vmem:[#allocation10 + $0x48] sm:$0xff]  }
 0x2b7   : > { %v9561_v49 = vpop.f32.mrf.mxu1  ;;  %v1539_v32 = vpop.f32.mrf.mxu0 }
 0x2b8   : > { %v1616_v41 = vadd.f32 %v1539_v32, %v1403_v20  ;;  %v1639_v44 = vmax.f32 %v1618_v43, 0.0  ;;  %v1412_v49 = vadd.f32 %v10853_v51, %v1228_v16  ;;  %v1236_v51 = vadd.f32 %v10873_v8, %v10881_v52 }
 0x2b9   : > { %v10886_v35 = vpop.f32.mrf.mxu1  ;;  %v9613_v31 = vpop.f32.mrf.mxu0 }
 0x2ba   : > { %v1637_v17 = vmax.f32 %v1616_v41, 0.0  ;;  %v10893_v58 = vpack.c.bf16 %v1639_v44, %v1638_v28  ;;  %v1621_v3 = vadd.f32 %v9613_v31, %v1408_v45  ;;  %v1414_v52 = vadd.f32 %v10851_v53, %v1236_v51 }
 0x2bb   : > { %v9562_v62 = vpop.f32.mrf.mxu1  ;;  %v1552_v47 = vpop.f32.mrf.mxu0 }
 0x2bc   : > { %v10889_v59 = vpack.c.bf16 %v1637_v17, %v1636_v1  ;;  %v1619_v27 = vadd.f32 %v1552_v47, %v1406_v2  ;;  %v1642_v30 = vmax.f32 %v1621_v3, 0.0  ;;  %v1239_v62 = vadd.f32 %v10873_v8, %v10886_v35 }
 0x2bd   : > { %v1243_v37 = vpop.f32.mrf.mxu1  ;;  %v9614_v60 = vpop.f32.mrf.mxu0 }
 0x2be   : > { %v1622_v33 = vadd.f32 %v9614_v60, %v1409_v55  ;;  %9636 = vmatmul.mubr.msk.bf16.vlgmr.msra.gmra.mxu0 %vm1708_vm5, %v10889_v59  ;;  %9687 = vmatprep.mubr.msk.bf16.mxu1 %vm1708_vm5, %v10889_v59  ;;  %v1640_v24 = vmax.f32 %v1619_v27, 0.0  ;;  %v1244_v1 = vadd.f32 %v10873_v8, %v1243_v37 }
 0x2bf   : > { %v9565_v22 = vpop.f32.mrf.mxu1  ;;  %v1555_v12 = vpop.f32.mrf.mxu0  ;;  %9688 = vmatmul.mubr.msk.bf16.vlgmr.msra.gmra.mxu1 %vm1708_vm5, %v10893_v58  ;;  %9639 = vmatprep.mubr.msk.bf16.mxu0 %vm10263_vm0, %v10262_v0 }
 0x2c0   : > { %v1620_v15 = vadd.f32 %v1555_v12, %v1407_v50  ;;  %9708 = vmatpush3.bf16.msra.mxu1 %v10836_v36  ;;  %v1643_v54 = vmax.f32 %v1622_v33, 0.0  ;;  %v1413_v36 = vadd.f32 %v10847_v6, %v1231_v11  ;;  %v1416_v27 = vadd.f32 %v10863_v63, %v1244_v1 }
 0x2c1   : > { %v1246_v56 = vpop.f32.mrf.mxu1  ;;  %v9617_v10 = vpop.f32.mrf.mxu0  ;;  %9709 = vmatprep.subr.bf16.mxu1 %v9873_v42  ;;  %v1415_v12 = vadd.f32 %v10857_v25, %v1239_v62  ;;  %v2048_v1 = vrot.slane %v10889_v59, 4 }
 0x2c2   : > { %v1641_v20 = vmax.f32 %v1620_v15, 0.0  ;;  %v10915_v61 = vpack.c.bf16 %v1643_v54, %v1642_v30  ;;  %v1625_v6 = vadd.f32 %v9617_v10, %v1412_v49  ;;  %v1247_v31 = vadd.f32 %v10873_v8, %v1246_v56 }
 0x2c3   : > { %v9566_v43 = vpop.f32.mrf.mxu1  ;;  %v1568_v29 = vpop.f32.mrf.mxu0 }
 0x2c4   : > { %v10911_v40 = vpack.c.bf16 %v1641_v20, %v1640_v24  ;;  %9710 = vmatpush3.bf16.msra.mxu1 %v9873_v42  ;;  %v1623_v39 = vadd.f32 %v1568_v29, %v1410_v48  ;;  %v1646_v55 = vmax.f32 %v1625_v6, 0.0  ;;  %v1417_v50 = vadd.f32 %v10855_v19, %v1247_v31 }
 0x2c5   : > { %v1251_v32 = vpop.f32.mrf.mxu1  ;;  %v9618_v34 = vpop.f32.mrf.mxu0  ;;  %9711 = vmatprep.subr.bf16.mxu1 %v9874_v57  ;;  %v2053_v62 = vrot.slane %v10915_v61, 4 }
 0x2c6   : > { %v1626_v41 = vadd.f32 %v9618_v34, %v1413_v36  ;;  %9640 = vmatmul.mubr.msk.bf16.gmra.mxu0 %vm1708_vm5, %v10893_v58  ;;  %9691 = vmatprep.mubr.msk.bf16.mxu1 %vm1708_vm5, %v10911_v40  ;;  %v1644_v47 = vmax.f32 %v1623_v39, 0.0  ;;  %v1252_v63 = vadd.f32 %v10873_v8, %v1251_v32  ;;  %v2051_v59 = vrot.slane %v10911_v40, 4 }
 0x2c7   : > { %v9569_v26 = vpop.f32.mrf.mxu1  ;;  %v1571_v44 = vpop.f32.mrf.mxu0  ;;  %9692 = vmatmul.mubr.msk.bf16.gmra.mxu1 %vm1708_vm5, %v10915_v61  ;;  %9643 = vmatprep.mubr.msk.bf16.mxu0 %vm10263_vm0, %v10262_v0 }
 0x2c8   : > { %v1624_v13 = vadd.f32 %v1571_v44, %v1411_v21  ;;  %9712 = vmatpush3.bf16.msra.mxu1 %v9874_v57  ;;  %v1647_v17 = vmax.f32 %v1626_v41, 0.0  ;;  %v1418_v48 = vadd.f32 %v10861_v23, %v1252_v63 }
 0x2c9   : > { %v1254_v14 = vpop.f32.mrf.mxu1  ;;  %v9621_v28 = vpop.f32.mrf.mxu0  ;;  %9713 = vmatprep.subr.bf16.mxu1 %v9875_v18 }
 0x2ca   : > { %v1645_v2 = vmax.f32 %v1624_v13, 0.0  ;;  %v10937_v37 = vpack.c.bf16 %v1647_v17, %v1646_v55  ;;  %v1629_v53 = vadd.f32 %v9621_v28, %v1416_v27  ;;  %v1255_v10 = vadd.f32 %v10873_v8, %v1254_v14 }
 0x2cb   : > { %v9570_v45 = vpop.f32.mrf.mxu1  ;;  %v1584_v60 = vpop.f32.mrf.mxu0  ;;  %v2049_v17 = vrot.slane %v10893_v58, 4 }
 0x2cc   : > { %v10933_v42 = vpack.c.bf16 %v1645_v2, %v1644_v47  ;;  %9714 = vmatpush3.bf16.msra.mxu1 %v9875_v18  ;;  %v1627_v22 = vadd.f32 %v1584_v60, %v1414_v52  ;;  %v1650_v24 = vmax.f32 %v1629_v53, 0.0  ;;  %v1419_v39 = vadd.f32 %v10869_v38, %v1255_v10  ;;  %v2434_v53 = vld [vmem:[#allocation13 + $0x1c0] sm:$0xff] }
 0x2cd   : > { %v1259_v33 = vpop.f32.mrf.mxu1  ;;  %v9622_v3 = vpop.f32.mrf.mxu0  ;;  %v2050_v28 = vsel %vm874_vm3, %v2048_v1, %v2049_v17  ;;  %v2052_v58 = vsel %vm874_vm3, %v2049_v17, %v2051_v59  ;;  %v2054_v47 = vsel %vm874_vm3, %v2051_v59, %v2053_v62  ;;  %v2562_v10 = vld [vmem:[#allocation13 + $0x5c0] sm:$0xff] }
 0x2ce   : > { %v1630_v35 = vadd.f32 %v9622_v3, %v1417_v50  ;;  %9644 = vmatmul.mubr.msk.bf16.gmra.mxu0 %vm1708_vm5, %v10911_v40  ;;  %9695 = vmatprep.mubr.msk.bf16.mxu1 %vm1708_vm5, %v10933_v42  ;;  %v1260_v19 = vadd.f32 %v10873_v8, %v1259_v33  ;;  %v1648_v25 = vmax.f32 %v1627_v22, 0.0  ;;  %v2055_v2 = vrot.slane %v10933_v42, 4  ;;  %v2398_v1 = vld [vmem:[#allocation13 + $0xa0] sm:$0xff] }
 0x2cf   : > { %v9573_v46 = vpop.f32.mrf.mxu1  ;;  %v1587_v11 = vpop.f32.mrf.mxu0  ;;  %9696 = vmatmul.mubr.msk.bf16.gmra.mxu1 %vm1708_vm5, %v10937_v37  ;;  %9647 = vmatprep.mubr.msk.bf16.mxu0 %vm10263_vm0, %v10262_v0  ;;  %v2057_v40 = vrot.slane %v10937_v37, 4  ;;  %v2522_v59 = vld [vmem:[#allocation13 + $0x480] sm:$0xff] }
 0x2d0   : > { %v1628_v15 = vadd.f32 %v1587_v11, %v1415_v12  ;;  %v1651_v16 = vmax.f32 %v1630_v35, 0.0  ;;  %v1420_v20 = vadd.f32 %v10875_v9, %v1260_v19  ;;  %v2438_v19 = vld [vmem:[#allocation13 + $0x1e0] sm:$0xff] }
 0x2d1   : > { %v1262_v54 = vpop.f32.mrf.mxu1  ;;  %v9625_v56 = vpop.f32.mrf.mxu0  ;;  %v2058_v55 = vsel %vm874_vm3, %v2055_v2, %v2057_v40  ;;  %v2426_v46 = vld [vmem:[#allocation13 + $0x180] sm:$0xff]  ;;  %v8542_v11 = vcombine.low %v2434_v53, %v2438_v19  ;;  %v8543_v63 = vcombine.high %v2434_v53, %v2438_v19 }
 0x2d2   : > { %v1649_v57 = vmax.f32 %v1628_v15, 0.0  ;;  %v1263_v7 = vadd.f32 %v10873_v8, %v1262_v54  ;;  %v10955_v36 = vpack.c.bf16 %v1651_v16, %v1650_v24  ;;  %v1633_v9 = vadd.f32 %v9625_v56, %v1420_v20  ;;  %v2430_v15 = vld [vmem:[#allocation13 + $0x1a0] sm:$0xff] }
 0x2d3   : > { %v9574_v30 = vpop.f32.mrf.mxu1  ;;  %v1600_v43 = vpop.f32.mrf.mxu0  ;;  %v8535_v16 = vcombine.high %v2426_v46, %v2430_v15  ;;  %v2418_v54 = vld [vmem:[#allocation13 + $0x140] sm:$0xff]  ;;  %6493 = vmatprep.subr.bf16.mxu0 %v8543_v63 }
 0x2d4   : > { %v1663_v29 = vpack.c.bf16 %v1649_v57, %v1648_v25  ;;  %v1421_v32 = vadd.f32 %v10867_v4, %v1263_v7  ;;  %v1631_v18 = vadd.f32 %v1600_v43, %v1418_v48  ;;  %v1654_v31 = vmax.f32 %v1633_v9, 0.0  ;;  %v2422_v56 = vld [vmem:[#allocation13 + $0x160] sm:$0xff]  ;;  %6494 = vmatpush1.bf16.msra.mxu0 %v8542_v11 }
 0x2d5   : > { %v1267_v49 = vpop.f32.mrf.mxu1  ;;  %v9626_v34 = vpop.f32.mrf.mxu0  ;;  %v2566_v25 = vld [vmem:[#allocation13 + $0x5e0] sm:$0xff]  ;;  %v8534_v57 = vcombine.low %v2426_v46, %v2430_v15  ;;  %6495 = vmatprep.subr.bf16.mxu0 %v8535_v16  ;;  %v8527_v30 = vcombine.high %v2418_v54, %v2422_v56 }
 0x2d6   : > { %9648 = vmatmul.mubr.msk.bf16.gmra.mxu0 %vm1708_vm5, %v10915_v61  ;;  %9699 = vmatprep.mubr.msk.bf16.mxu1 %vm1708_vm5, %v1663_v29  ;;  %v1634_v41 = vadd.f32 %v9626_v34, %v1421_v32  ;;  %v1652_v44 = vmax.f32 %v1631_v18, 0.0  ;;  %v2056_v61 = vsel %vm874_vm3, %v2053_v62, %v2055_v2  ;;  %v2059_v45 = vrot.slane %v1663_v29, 4  ;;  %v2554_v20 = vld [vmem:[#allocation13 + $0x580] sm:$0xff] }
 0x2d7   : > { %v9577_v21 = vpop.f32.mrf.mxu1  ;;  %v1603_v6 = vpop.f32.mrf.mxu0  ;;  %9700 = vmatmul.mubr.msk.bf16.gmra.mxu1 %vm1708_vm5, %v10955_v36  ;;  %9651 = vmatprep.mubr.msk.bf16.mxu0 %vm10263_vm0, %v10262_v0  ;;  %v1268_v60 = vadd.f32 %v10873_v8, %v1267_v49  ;;  %v8670_v7 = vcombine.low %v2562_v10, %v2566_v25  ;;  %v8671_v24 = vcombine.high %v2562_v10, %v2566_v25  ;;  %v2550_v48 = vld [vmem:[#allocation13 + $0x560] sm:$0xff] }
 0x2d8   : > { %v1632_v23 = vadd.f32 %v1603_v6, %v1419_v39  ;;  %v1655_v4 = vmax.f32 %v1634_v41, 0.0  ;;  %v2060_v50 = vsel %vm874_vm3, %v2057_v40, %v2059_v45  ;;  %v2414_v49 = vld [vmem:[#allocation13 + $0x120] sm:$0xff]  ;;  %6496 = vmatpush1.bf16.msra.mxu0 %v8534_v57  ;;  %v8526_v34 = vcombine.low %v2418_v54, %v2422_v56 }
 0x2d9   : > { %v1270_v26 = vpop.f32.mrf.mxu1  ;;  %v1422_v52 = vadd.f32 %v10871_v5, %v1268_v60  ;;  %6534 = vmatprep.subr.bf16.mxu1 %v8671_v24  ;;  %6497 = vmatprep.subr.bf16.mxu0 %v8527_v30  ;;  %v2538_v9 = vld [vmem:[#allocation13 + $0x500] sm:$0xff] }
 0x2da   : > { %v1653_v51 = vmax.f32 %v1632_v23, 0.0  ;;  %v1666_v14 = vpack.c.bf16 %v1655_v4, %v1654_v31  ;;  %v2542_v41 = vld [vmem:[#allocation13 + $0x520] sm:$0xff] }
 0x2db   : > { %v9578_v13 = vpop.f32.mrf.mxu1  ;;  %v1656_v27 = vmax.f32 %v1422_v52, 0.0  ;;  %v2402_v21 = vld [vmem:[#allocation13 + $0xc0] sm:$0xff]  ;;  %v8647_v26 = vcombine.high %v2538_v9, %v2542_v41 }
 0x2dc   : > { %v1665_v38 = vpack.c.bf16 %v1653_v51, %v1652_v44  ;;  %v2065_v33 = vrot.slane %v1666_v14, 4  ;;  %v2406_v6 = vld [vmem:[#allocation13 + $0xe0] sm:$0xff]  ;;  %6498 = vmatpush1.bf16.msra.mxu0 %v8526_v34 }
 0x2dd   : > { %v1667_v3 = vpack.c.bf16 %v1656_v27, %v1656_v27  ;;  %v8511_v44 = vcombine.high %v2402_v21, %v2406_v6  ;;  %v2530_v51 = vld [vmem:[#allocation13 + $0x4c0] sm:$0xff]  ;;  %v8510_v17 = vcombine.low %v2402_v21, %v2406_v6 }
 0x2de   : > { %9652 = vmatmul.mubr.msk.bf16.gmra.mxu0 %vm1708_vm5, %v10933_v42  ;;  %9703 = vmatprep.mubr.msk.bf16.mxu1 %vm1708_vm5, %v1665_v38  ;;  %v2061_v42 = vrot.slane %v10955_v36, 4  ;;  %v2063_v8 = vrot.slane %v1665_v38, 4  ;;  %v2534_v31 = vld [vmem:[#allocation13 + $0x4e0] sm:$0xff] }
 0x2df   : > { %9704 = vmatmul.mubr.msk.bf16.gmra.mxu1 %vm1708_vm5, %v1666_v14  ;;  %9655 = vmatprep.mubr.msk.bf16.mxu0 %vm10263_vm0, %v10262_v0  ;;  %v2067_v35 = vrot.slane %v1667_v3, 4  ;;  %v2394_v13 = vld [vmem:[#allocation13 + $0x80] sm:$0xff]  ;;  %v8638_v2 = vcombine.low %v2530_v51, %v2534_v31 }
 0x2e0   : > { %9715 = vmatprep.mubr.msk.bf16.mxu1 %vm1708_vm5, %v2050_v28  ;;  %v2064_v5 = vsel %vm874_vm3, %v2061_v42, %v2063_v8  ;;  %v2066_v22 = vsel %vm874_vm3, %v2063_v8, %v2065_v33  ;;  %v8503_v28 = vcombine.high %v2394_v13, %v2398_v1  ;;  %v2526_v62 = vld [vmem:[#allocation13 + $0x4a0] sm:$0xff]  ;;  %v8502_v40 = vcombine.low %v2394_v13, %v2398_v1 }
 0x2e1   : > { %v2068_v12 = vsel %vm874_vm3, %v2065_v33, %v2067_v35  ;;  %v2518_v60 = vld [vmem:[#allocation13 + $0x460] sm:$0xff] }
 0x2e2   : > { %v2382_v52 = vld [vmem:[#allocation13 + $0x20] sm:$0xff] }
 0x2e3   : > { %v2506_v33 = vld [vmem:[#allocation13 + $0x400] sm:$0xff] }
 0x2e4   : > { %v2626_v46 = vld [vmem:[#allocation13 + $0x7c0] sm:$0xff] }
 0x2e5   : > { %v2630_v11 = vld [vmem:[#allocation13 + $0x7e0] sm:$0xff] }
 0x2e6   : > { %9656 = vmatmul.mubr.msk.bf16.gmra.mxu0 %vm1708_vm5, %v10937_v37  ;;  %v2062_v37 = vsel %vm874_vm3, %v2059_v45, %v2061_v42  ;;  %v2514_v45 = vld [vmem:[#allocation13 + $0x440] sm:$0xff]  ;;  %v8735_v56 = vcombine.high %v2626_v46, %v2630_v11 }
 0x2e7   : > { %9716 = vmatmul.mubr.msk.bf16.vlgmr.msra.gmra.mxu1 %vm1708_vm5, %v2052_v58  ;;  %9659 = vmatprep.mubr.msk.bf16.mxu0 %vm10263_vm0, %v10262_v0  ;;  %v2386_v58 = vld [vmem:[#allocation13 + $0x40] sm:$0xff]  ;;  %v8623_v27 = vcombine.high %v2514_v45, %v2518_v60  ;;  %v8622_v35 = vcombine.low %v2514_v45, %v2518_v60 }
 0x2e8   : > { %9719 = vmatprep.mubr.msk.bf16.mxu1 %vm1708_vm5, %v2054_v47  ;;  %6535 = vmatpush1.bf16.msra.mxu1 %v8670_v7  ;;  %v2390_v47 = vld [vmem:[#allocation13 + $0x60] sm:$0xff] }
 0x2e9   : > { %v2378_v42 = vld [vmem:[#allocation13] sm:$0xff] }
 0x2ea   : > { %v8487_v8 = vcombine.high %v2378_v42, %v2382_v52  ;;  %v2490_v63 = vld [vmem:[#allocation13 + $0x380] sm:$0xff] }
 0x2eb   : > { %v2494_v15 = vld [vmem:[#allocation13 + $0x3a0] sm:$0xff] }
 0x2ec   : > { %v8599_v10 = vcombine.high %v2490_v63, %v2494_v15  ;;  %v2618_v25 = vld [vmem:[#allocation13 + $0x780] sm:$0xff] }
 0x2ed   : > { %v2622_v57 = vld [vmem:[#allocation13 + $0x7a0] sm:$0xff] }
 0x2ee   : > { %9660 = vmatmul.mubr.msk.bf16.gmra.mxu0 %vm1708_vm5, %v1663_v29  ;;  %v2546_v29 = vld [vmem:[#allocation13 + $0x540] sm:$0xff]  ;;  %v8727_v30 = vcombine.high %v2618_v25, %v2622_v57  ;;  %v8726_v34 = vcombine.low %v2618_v25, %v2622_v57 }
 0x2ef   : > { %9720 = vmatmul.mubr.msk.bf16.gmra.mxu1 %vm1708_vm5, %v2056_v61  ;;  %9663 = vmatprep.mubr.msk.bf16.mxu0 %vm10263_vm0, %v10262_v0  ;;  %v8655_v18 = vcombine.high %v2546_v29, %v2550_v48  ;;  %v8654_v23 = vcombine.low %v2546_v29, %v2550_v48  ;;  %v8631_v61 = vcombine.high %v2522_v59, %v2526_v62  ;;  %v2482_v7 = vld [vmem:[#allocation13 + $0x340] sm:$0xff] }
 0x2f0   : > { %9723 = vmatprep.mubr.msk.bf16.mxu1 %vm1708_vm5, %v2058_v55  ;;  %v8495_v55 = vcombine.high %v2386_v58, %v2390_v47  ;;  %v2486_v24 = vld [vmem:[#allocation13 + $0x360] sm:$0xff] }
 0x2f1   : > { %v2610_v29 = vld [vmem:[#allocation13 + $0x740] sm:$0xff] }
 0x2f2   : > { %v2614_v48 = vld [vmem:[#allocation13 + $0x760] sm:$0xff] }
 0x2f6   : > { %9664 = vmatmul.mubr.msk.bf16.gmra.mxu0 %vm1708_vm5, %v10955_v36  ;;  %v2410_v36 = vld [vmem:[#allocation13 + $0x100] sm:$0xff] }
 0x2f7   : > { %9724 = vmatmul.mubr.msk.bf16.gmra.mxu1 %vm1708_vm5, %v2060_v50  ;;  %9667 = vmatprep.mubr.msk.bf16.mxu0 %vm10263_vm0, %v10262_v0  ;;  %v8519_v39 = vcombine.high %v2410_v36, %v2414_v49  ;;  %v8518_v4 = vcombine.low %v2410_v36, %v2414_v49  ;;  %v8630_v50 = vcombine.low %v2522_v59, %v2526_v62  ;;  %v2474_v36 = vld [vmem:[#allocation13 + $0x300] sm:$0xff] }
 0x2f8   : > { %9727 = vmatprep.mubr.msk.bf16.mxu1 %vm1708_vm5, %v2062_v37  ;;  %v8494_v37 = vcombine.low %v2386_v58, %v2390_v47  ;;  %v2478_v49 = vld [vmem:[#allocation13 + $0x320] sm:$0xff] }
 0x2f9   : > { %6499 = vmatprep.subr.bf16.mxu0 %v8519_v39  ;;  %v8590_v39 = vcombine.low %v2482_v7, %v2486_v24  ;;  %v8583_v21 = vcombine.high %v2474_v36, %v2478_v49 }
 0x2fa   : > { %6500 = vmatpush1.bf16.msra.mxu0 %v8518_v4  ;;  %v2470_v4 = vld [vmem:[#allocation13 + $0x2e0] sm:$0xff] }
 0x2fb   : > { %6501 = vmatprep.subr.bf16.mxu0 %v8511_v44  ;;  %v8718_v44 = vcombine.low %v2610_v29, %v2614_v48 }
 0x2fe   : > { %9668 = vmatmul.mubr.msk.bf16.gmra.mxu0 %vm1708_vm5, %v1665_v38  ;;  %v8646_v38 = vcombine.low %v2538_v9, %v2542_v41  ;;  %v8719_v9 = vcombine.high %v2610_v29, %v2614_v48 }
 0x2ff   : > { %9728 = vmatmul.mubr.msk.bf16.gmra.mxu1 %vm1708_vm5, %v2064_v5  ;;  %9671 = vmatprep.mubr.msk.bf16.mxu0 %vm10263_vm0, %v10262_v0  ;;  %v2498_v5 = vld [vmem:[#allocation13 + $0x3c0] sm:$0xff] }
 0x300   : > { %9731 = vmatprep.mubr.msk.bf16.mxu1 %vm1708_vm5, %v2066_v22  ;;  %6502 = vmatpush1.bf16.msra.mxu0 %v8510_v17  ;;  %v2502_v22 = vld [vmem:[#allocation13 + $0x3e0] sm:$0xff] }
 0x301   : > { %6503 = vmatprep.subr.bf16.mxu0 %v8503_v28  ;;  %v8607_v19 = vcombine.high %v2498_v5, %v2502_v22  ;;  %v8606_v54 = vcombine.low %v2498_v5, %v2502_v22 }
 0x304   : > { %6504 = vmatpush1.bf16.msra.mxu0 %v8502_v40 }
 0x305   : > { %6505 = vmatprep.subr.bf16.mxu0 %v8495_v55 }
 0x306   : > { %9672 = vmatmul.mubr.msk.bf16.gmra.mxu0 %vm1708_vm5, %v1666_v14  ;;  %v8639_v14 = vcombine.high %v2530_v51, %v2534_v31  ;;  %v8582_v31 = vcombine.low %v2474_v36, %v2478_v49  ;;  %v2606_v49 = vld [vmem:[#allocation13 + $0x720] sm:$0xff] }
 0x307   : > { %9732 = vmatmul.mubr.msk.bf16.gmra.mxu1 %vm1708_vm5, %v2068_v12  ;;  %9675 = vmatprep.mubr.msk.bf16.mxu0 %vm10263_vm0, %v10262_v0  ;;  %v2558_v0 = vld [vmem:[#allocation13 + $0x5a0] sm:$0xff]  ;;  %v8486_v12 = vcombine.low %v2378_v42, %v2382_v52 }
 0x308   : > { %v8663_v43 = vcombine.high %v2554_v20, %v2558_v0  ;;  %v8662_v32 = vcombine.low %v2554_v20, %v2558_v0  ;;  %6506 = vmatpush1.bf16.msra.mxu0 %v8494_v37  ;;  %v8734_v20 = vcombine.low %v2626_v46, %v2630_v11  ;;  %v8598_v0 = vcombine.low %v2490_v63, %v2494_v15  ;;  %v11061_v15 = vld [vmem:[#allocation11] ss:$0 sm:$0xff] }
 0x309   : > { %6507 = vmatprep.subr.bf16.mxu0 %v8487_v8 }
 0x30a   : > { %6536 = vmatprep.subr.bf16.mxu1 %v8663_v43  ;;  %v8591_v43 = vcombine.high %v2482_v7, %v2486_v24 }
 0x30b   : > { %6537 = vmatpush1.bf16.msra.mxu1 %v8662_v32 }
 0x30c   : > { %6538 = vmatprep.subr.bf16.mxu1 %v8655_v18  ;;  %6508 = vmatpush1.bf16.msra.mxu0 %v8486_v12 }
 0x30d   : > { %6509 = vmatprep.subr.bf16.mxu0 %v8607_v19 }
 0x30e   : > { %9676 = vmatmul.mubr.msk.bf16.gmra.mxu0 %vm1708_vm5, %v1667_v3  ;;  %v2510_v3 = vld [vmem:[#allocation13 + $0x420] sm:$0xff] }
 0x30f   : > { %6539 = vmatpush1.bf16.msra.mxu1 %v8654_v23  ;;  %v8615_v53 = vcombine.high %v2506_v33, %v2510_v3  ;;  %v8614_v16 = vcombine.low %v2506_v33, %v2510_v3  ;;  %v2466_v23 = vld [vmem:[#allocation13 + $0x2c0] sm:$0xff] }
 0x310   : > { %6540 = vmatprep.subr.bf16.mxu1 %v8647_v26  ;;  %6510 = vmatpush2.bf16.msra.mxu0 %v8606_v54  ;;  %v8575_v1 = vcombine.high %v2466_v23, %v2470_v4  ;;  %v8574_v28 = vcombine.low %v2466_v23, %v2470_v4 }
 0x311   : > { %6511 = vmatprep.subr.bf16.mxu0 %v8599_v10 }
 0x313   : > { %6541 = vmatpush1.bf16.msra.mxu1 %v8646_v38 }
 0x314   : > { %6542 = vmatprep.subr.bf16.mxu1 %v8639_v14  ;;  %6512 = vmatpush2.bf16.msra.mxu0 %v8598_v0  ;;  %v2462_v0 = vld [vmem:[#allocation13 + $0x2a0] sm:$0xff] }
 0x315   : > { %6513 = vmatprep.subr.bf16.mxu0 %v8591_v43 }
 0x317   : > { %6543 = vmatpush1.bf16.msra.mxu1 %v8638_v2 }
 0x318   : > { %6544 = vmatprep.subr.bf16.mxu1 %v8631_v61  ;;  %6514 = vmatpush2.bf16.msra.mxu0 %v8590_v39 }
 0x319   : > { %6515 = vmatprep.subr.bf16.mxu0 %v8583_v21 }
 0x31b   : > { %6545 = vmatpush1.bf16.msra.mxu1 %v8630_v50 }
 0x31c   : > { %6546 = vmatprep.subr.bf16.mxu1 %v8623_v27  ;;  %6516 = vmatpush2.bf16.msra.mxu0 %v8582_v31 }
 0x31d   : > { %6517 = vmatprep.subr.bf16.mxu0 %v8575_v1  ;;  %v2454_v1 = vld [vmem:[#allocation13 + $0x260] sm:$0xff] }
 0x31f   : > { %6547 = vmatpush1.bf16.msra.mxu1 %v8622_v35 }
 0x320   : > { %6548 = vmatprep.subr.bf16.mxu1 %v8615_v53  ;;  %6518 = vmatpush2.bf16.msra.mxu0 %v8574_v28 }
 0x323   : > { %6549 = vmatpush1.bf16.msra.mxu1 %v8614_v16 }
 0x324   : > { %6550 = vmatprep.subr.bf16.mxu1 %v8735_v56 }
 0x327   : > { %6551 = vmatpush2.bf16.msra.mxu1 %v8734_v20  ;;  %v2458_v20 = vld [vmem:[#allocation13 + $0x280] sm:$0xff] }
 0x328   : > { %6552 = vmatprep.subr.bf16.mxu1 %v8727_v30  ;;  %v2602_v30 = vld [vmem:[#allocation13 + $0x700] sm:$0xff]  ;;  %v8566_v48 = vcombine.low %v2458_v20, %v2462_v0  ;;  %v8567_v36 = vcombine.high %v2458_v20, %v2462_v0 }
 0x329   : > { %v8710_v39 = vcombine.low %v2602_v30, %v2606_v49 }
 0x32a   : > { %6519 = vmatprep.subr.bf16.mxu0 %v8567_v36 }
 0x32b   : > { %6553 = vmatpush2.bf16.msra.mxu1 %v8726_v34  ;;  %6520 = vmatpush2.bf16.msra.mxu0 %v8566_v48 }
 0x32c   : > { %6554 = vmatprep.subr.bf16.mxu1 %v8719_v9  ;;  %v8711_v9 = vcombine.high %v2602_v30, %v2606_v49 }
 0x32f   : > { %6555 = vmatpush2.bf16.msra.mxu1 %v8718_v44 }
 0x330   : > { %6556 = vmatprep.subr.bf16.mxu1 %v8711_v9 }
 0x333   : > { %6557 = vmatpush2.bf16.msra.mxu1 %v8710_v39 }
 0x37e   : > { %v11019_v32 = vpop.f32.mrf.mxu0 }
 0x37f   : > { %v11021_v18 = vpop.f32.mrf.mxu1 }
 0x380   : > { %v9637_v41 = vpop.f32.mrf.mxu0 }
 0x381   : > { %v11023_v6 = vpop.f32.mrf.mxu1  ;;  %v1777_v41 = vadd.f32 %v11061_v15, %v11019_v32 }
 0x382   : > { %v1779_v26 = vpop.f32.mrf.mxu0 }
 0x383   : > { %v11025_v51 = vpop.f32.mrf.mxu1  ;;  %v1780_v7 = vadd.f32 %v11061_v15, %v1779_v26 }
 0x384   : > { %v9638_v13 = vpop.f32.mrf.mxu0 }
 0x385   : > { %v1931_v38 = vpop.f32.mrf.mxu1  ;;  %v2008_v31 = vadd.f32 %v11023_v6, %v1780_v7  ;;  %v2450_v13 = vld [vmem:[#allocation13 + $0x240] sm:$0xff] }
 0x386   : > { %v1784_v17 = vpop.f32.mrf.mxu0  ;;  %v8558_v32 = vcombine.low %v2450_v13, %v2454_v1  ;;  %v2446_v7 = vld [vmem:[#allocation13 + $0x220] sm:$0xff] }
 0x387   : > { %v11027_v14 = vpop.f32.mrf.mxu1  ;;  %v1785_v54 = vadd.f32 %v11061_v15, %v1784_v17 }
 0x388   : > { %v9641_v59 = vpop.f32.mrf.mxu0 }
 0x389   : > { %v11029_v62 = vpop.f32.mrf.mxu1  ;;  %v2009_v43 = vadd.f32 %v1931_v38, %v1785_v54  ;;  %v2594_v38 = vld [vmem:[#allocation13 + $0x6c0] sm:$0xff] }
 0x38a   : > { %v1787_v58 = vpop.f32.mrf.mxu0 }
 0x38b   : > { %v11031_v47 = vpop.f32.mrf.mxu1  ;;  %v1788_v25 = vadd.f32 %v11061_v15, %v1787_v58  ;;  %v8559_v58 = vcombine.high %v2450_v13, %v2454_v1  ;;  %v2582_v13 = vld [vmem:[#allocation13 + $0x660] sm:$0xff] }
 0x38c   : > { %v9642_v2 = vpop.f32.mrf.mxu0  ;;  %v11099_v1 = vld [vmem:[#allocation13 + $0x9c0] sm:$0xff] }
 0x38d   : > { %v11033_v40 = vpop.f32.mrf.mxu1  ;;  %v2010_v4 = vadd.f32 %v11021_v18, %v1788_v25  ;;  %v2598_v2 = vld [vmem:[#allocation13 + $0x6e0] sm:$0xff]  ;;  %6521 = vmatprep.subr.bf16.mxu0 %v8559_v58 }
 0x38e   : > { %v1792_v61 = vpop.f32.mrf.mxu0  ;;  %6522 = vmatpush2.bf16.msra.mxu0 %v8558_v32 }
 0x38f   : > { %v11035_v55 = vpop.f32.mrf.mxu1  ;;  %v1793_v18 = vadd.f32 %v11061_v15, %v1792_v61  ;;  %v2442_v61 = vld [vmem:[#allocation13 + $0x200] sm:$0xff] }
 0x390   : > { %v9645_v45 = vpop.f32.mrf.mxu0  ;;  %v8550_v49 = vcombine.low %v2442_v61, %v2446_v7 }
 0x391   : > { %v11037_v60 = vpop.f32.mrf.mxu1  ;;  %v2011_v48 = vadd.f32 %v11025_v51, %v1793_v18 }
 0x392   : > { %v11039_v42 = vpop.f32.mrf.mxu0 }
 0x393   : > { %v11041_v52 = vpop.f32.mrf.mxu1 }
 0x394   : > { %v9646_v50 = vpop.f32.mrf.mxu0 }
 0x395   : > { %v11043_v37 = vpop.f32.mrf.mxu1 }
 0x396   : > { %v1800_v27 = vpop.f32.mrf.mxu0 }
 0x397   : > { %v11045_v8 = vpop.f32.mrf.mxu1  ;;  %v1801_v26 = vadd.f32 %v11061_v15, %v1800_v27  ;;  %v8702_v27 = vcombine.low %v2594_v38, %v2598_v2 }
 0x398   : > { %v9649_v33 = vpop.f32.mrf.mxu0 }
 0x399   : > { %v11047_v3 = vpop.f32.mrf.mxu1  ;;  %v8703_v33 = vcombine.high %v2594_v38, %v2598_v2  ;;  %v2013_v30 = vadd.f32 %v11033_v40, %v1801_v26 }
 0x39a   : > { %v1803_v5 = vpop.f32.mrf.mxu0 }
 0x39b   : > { %v11049_v22 = vpop.f32.mrf.mxu1  ;;  %v1804_v45 = vadd.f32 %v11061_v15, %v1803_v5  ;;  %6558 = vmatprep.subr.bf16.mxu1 %v8703_v33  ;;  %v2586_v5 = vld [vmem:[#allocation13 + $0x680] sm:$0xff] }
 0x39c   : > { %v9650_v35 = vpop.f32.mrf.mxu0  ;;  %6559 = vmatpush2.bf16.msra.mxu1 %v8702_v27 }
 0x39d   : > { %v11051_v12 = vpop.f32.mrf.mxu1 }
 0x39e   : > { %v11053_v53 = vpop.f32.mrf.mxu0 }
 0x39f   : > { %v11055_v19 = vpop.f32.mrf.mxu1  ;;  %v1809_v40 = vadd.f32 %v11061_v15, %v11053_v53 }
 0x3a0   : > { %v9653_v46 = vpop.f32.mrf.mxu0 }
 0x3a1   : > { %v11057_v11 = vpop.f32.mrf.mxu1 }
 0x3a2   : > { %v11059_v63 = vpop.f32.mrf.mxu0 }
 0x3a3   : > { %v11063_v16 = vpop.f32.mrf.mxu1 }
 0x3a4   : > { %v9654_v56 = vpop.f32.mrf.mxu0 }
 0x3a5   : > { %v11066_v10 = vpop.f32.mrf.mxu1  ;;  %v1796_v56 = vadd.f32 %v11061_v15, %v11039_v42  ;;  %v2014_v42 = vadd.f32 %v11027_v14, %v1804_v45 }
 0x3a6   : > { %v11069_v57 = vpop.f32.mrf.mxu0 }
 0x3a7   : > { %v9717_v24 = vpop.f32.mrf.mxu1  ;;  %v1817_v26 = vadd.f32 %v11061_v15, %v11069_v57  ;;  %v11103_v57 = vld [vmem:[#allocation13 + $0x9e0] sm:$0xff] }
 0x3a8   : > { %v9657_v29 = vpop.f32.mrf.mxu0  ;;  %v2238_v21 = vadd.f32 %v9717_v24, %v2009_v43  ;;  %v8798_v58 = vcombine.low %v11099_v1, %v11103_v57  ;;  %v8799_v2 = vcombine.high %v11099_v1, %v11103_v57  ;;  %v2658_v1 = vld [vmem:[#allocation13 + $0x8c0] sm:$0xff] }
 0x3a9   : > { %v2157_v34 = vpop.f32.mrf.mxu1  ;;  %v2590_v29 = vld [vmem:[#allocation13 + $0x6a0] sm:$0xff] }
 0x3aa   : > { %v11074_v23 = vpop.f32.mrf.mxu0  ;;  %v2236_v17 = vadd.f32 %v2157_v34, %v1777_v41  ;;  %v2259_v6 = vmax.f32 %v2238_v21, 0.0  ;;  %v8551_v34 = vcombine.high %v2442_v61, %v2446_v7  ;;  %v8695_v14 = vcombine.high %v2586_v5, %v2590_v29  ;;  %v2662_v57 = vld [vmem:[#allocation13 + $0x8e0] sm:$0xff] }
 0x3ab   : > { %v9718_v44 = vpop.f32.mrf.mxu1  ;;  %v2017_v7 = vadd.f32 %v11043_v37, %v1817_v26  ;;  %v11120_v37 = vld [vmem:[#allocation13 + $0xdc0] sm:$0xff] }
 0x3ac   : > { %v2239_v28 = vadd.f32 %v9718_v44, %v2010_v4  ;;  %v9658_v59 = vpop.f32.mrf.mxu0  ;;  %v2257_v24 = vmax.f32 %v2236_v17, 0.0  ;;  %v8694_v4 = vcombine.low %v2586_v5, %v2590_v29  ;;  %v2012_v44 = vadd.f32 %v11029_v62, %v1796_v56  ;;  %6523 = vmatprep.subr.bf16.mxu0 %v8551_v34  ;;  %6560 = vmatprep.subr.bf16.mxu1 %v8695_v14 }
 0x3ad   : > { %v2160_v50 = vpop.f32.mrf.mxu1  ;;  %6524 = vmatpush2.bf16.msra.mxu0 %v8550_v49  ;;  %v1820_v62 = vadd.f32 %v11061_v15, %v11074_v23  ;;  %v1812_v23 = vadd.f32 %v11061_v15, %v11059_v63 }
 0x3ae   : > { %v11081_v35 = vmax.f32 %v2239_v28, 0.0  ;;  %v2237_v46 = vadd.f32 %v2160_v50, %v2008_v31  ;;  %v11083_v54 = vpop.f32.mrf.mxu0  ;;  %v2578_v31 = vld [vmem:[#allocation13 + $0x640] sm:$0xff]  ;;  %6561 = vmatpush2.bf16.msra.mxu1 %v8694_v4  ;;  %6575 = vmatprep.subr.bf16.mxu0 %v8799_v2 }
 0x3af   : > { %v9721_v25 = vpop.f32.mrf.mxu1  ;;  %v8687_v53 = vcombine.high %v2578_v31, %v2582_v13  ;;  %v8686_v33 = vcombine.low %v2578_v31, %v2582_v13 }
 0x3b0   : > { %v2279_v20 = vpack.c.bf16 %v11081_v35, %v2259_v6  ;;  %v2258_v0 = vmax.f32 %v2237_v46, 0.0  ;;  %v9661_v43 = vpop.f32.mrf.mxu0  ;;  %v2242_v9 = vadd.f32 %v9721_v25, %v2013_v30  ;;  %v9230_v59 = vpack.c.bf16 %v11081_v35, %v11081_v35  ;;  %v2570_v35 = vld [vmem:[#allocation13 + $0x600] sm:$0xff] }
 0x3b1   : > { %v2173_v36 = vpop.f32.mrf.mxu1  ;;  %6562 = vmatprep.subr.bf16.mxu1 %v8687_v53  ;;  %v2574_v46 = vld [vmem:[#allocation13 + $0x620] sm:$0xff] }
 0x3b2   : > { %v2278_v39 = vpack.c.bf16 %v2258_v0, %v2257_v24  ;;  %v11091_v41 = vpop.f32.mrf.mxu0  ;;  %v9229_v21 = vpack.c.bf16 %v2258_v0, %v2258_v0  ;;  %2299 = vst.msk [vmem:[#allocation2 + $0x4] sm:$0xf] %vm2289_vm6, %v2279_v20  ;;  %v2240_v38 = vadd.f32 %v2173_v36, %v2011_v48  ;;  %v2263_v18 = vmax.f32 %v2242_v9, 0.0  ;;  %6563 = vmatpush2.bf16.msra.mxu1 %v8686_v33  ;;  %v11126_v9 = vld [vmem:[#allocation13 + $0xde0] sm:$0xff] }
 0x3b3   : > { %v9722_v51 = vpop.f32.mrf.mxu1  ;;  %v2015_v24 = vadd.f32 %v11031_v47, %v1809_v40  ;;  %v2018_v0 = vadd.f32 %v11035_v55, %v1820_v62  ;;  %v8679_v30 = vcombine.high %v2570_v35, %v2574_v46  ;;  %v8678_v36 = vcombine.low %v2570_v35, %v2574_v46 }
 0x3b4   : > { %v2243_v17 = vadd.f32 %v9722_v51, %v2014_v42  ;;  %v9662_v28 = vpop.f32.mrf.mxu0  ;;  %2294 = vrot.lane.b32.xlu1 %v9229_v21, %s10264_s13  ;;  %2290 = vst.msk [vmem:[#allocation2] sm:$0xf] %vm2289_vm6, %v2278_v39  ;;  %v2261_v56 = vmax.f32 %v2240_v38, 0.0  ;;  %v2016_v55 = vadd.f32 %v11037_v60, %v1812_v23  ;;  %v1825_v21 = vadd.f32 %v11061_v15, %v11083_v54 }
 0x3b5   : > { %v2176_v32 = vpop.f32.mrf.mxu1  ;;  %6564 = vmatprep.subr.bf16.mxu1 %v8679_v30  ;;  %v8926_v26 = vcombine.low %v11120_v37, %v11126_v9  ;;  %v8927_v51 = vcombine.high %v11120_v37, %v11126_v9  ;;  %v1828_v38 = vadd.f32 %v11061_v15, %v11091_v41  ;;  %v8766_v37 = vcombine.low %v2658_v1, %v2662_v57 }
 0x3b6   : > { %v2264_v45 = vmax.f32 %v2243_v17, 0.0  ;;  %v2241_v50 = vadd.f32 %v2176_v32, %v2012_v44  ;;  %v1832_v27 = vpop.f32.mrf.mxu0  ;;  %6565 = vmatpush2.bf16.msra.mxu1 %v8678_v36 }
 0x3b7   : > { %v9725_v6 = vpop.f32.mrf.mxu1  ;;  %v1833_v49 = vadd.f32 %v11061_v15, %v1832_v27  ;;  %6616 = vmatprep.subr.bf16.mxu1 %v8927_v51  ;;  %v2020_v35 = vadd.f32 %v11047_v3, %v1828_v38 }
 0x3b8   : > { %v2281_v25 = vpack.c.bf16 %v2264_v45, %v2263_v18  ;;  %v2262_v61 = vmax.f32 %v2241_v50, 0.0  ;;  %v9665_v5 = vpop.f32.mrf.mxu0  ;;  %2303 = vrot.lane.b32.xlu1 %v9230_v59, %s10264_s13  ;;  %v2246_v43 = vadd.f32 %v9725_v6, %v2017_v7  ;;  %v9232_v4 = vpack.c.bf16 %v2264_v45, %v2264_v45 }
 0x3b9   : > { %v2189_v20 = vpop.f32.mrf.mxu1  ;;  %v2021_v62 = vadd.f32 %v11051_v12, %v1833_v49  ;;  %v2019_v45 = vadd.f32 %v11041_v52, %v1825_v21 }
 0x3ba   : > { %v2280_v63 = vpack.c.bf16 %v2262_v61, %v2261_v56  ;;  %v1835_v29 = vpop.f32.mrf.mxu0  ;;  %v9231_v48 = vpack.c.bf16 %v2262_v61, %v2262_v61  ;;  %2315 = vst.msk [vmem:[#allocation2 + $0xc] sm:$0xf] %vm2289_vm6, %v2281_v25  ;;  %v2244_v34 = vadd.f32 %v2189_v20, %v2015_v24  ;;  %v2267_v44 = vmax.f32 %v2246_v43, 0.0 }
 0x3bb   : > { %v9726_v42 = vpop.f32.mrf.mxu1  ;;  %v1836_v14 = vadd.f32 %v11061_v15, %v1835_v29 }
 0x3bc   : > { %v2247_v47 = vadd.f32 %v9726_v42, %v2018_v0  ;;  %v9666_v39 = vpop.f32.mrf.mxu0  ;;  %2311 = vrot.lane.b32.xlu0 %v9231_v48, %s10264_s13  ;;  %2307 = vst.msk [vmem:[#allocation2 + $0x8] sm:$0xf] %vm2289_vm6, %v2280_v63  ;;  %v2265_v54 = vmax.f32 %v2244_v34, 0.0 }
 0x3bd   : > { %v2192_v40 = vpop.f32.mrf.mxu1  ;;  %v2022_v27 = vadd.f32 %v11045_v8, %v1836_v14 }
 0x3be   : > { %v2268_v31 = vmax.f32 %v2247_v47, 0.0  ;;  %v2245_v60 = vadd.f32 %v2192_v40, %v2016_v55  ;;  %v1840_v13 = vpop.f32.mrf.mxu0 }
 0x3bf   : > { %v9729_v17 = vpop.f32.mrf.mxu1  ;;  %v1841_v46 = vadd.f32 %v11061_v15, %v1840_v13 }
 0x3c0   : > { %v2283_v28 = vpack.c.bf16 %v2268_v31, %v2267_v44  ;;  %v2266_v53 = vmax.f32 %v2245_v60, 0.0  ;;  %v9669_v59 = vpop.f32.mrf.mxu0  ;;  %2319 = vrot.lane.b32.xlu0 %v9232_v4, %s10264_s13  ;;  %v2250_v18 = vadd.f32 %v9729_v17, %v2021_v62  ;;  %v9234_v47 = vpack.c.bf16 %v2268_v31, %v2268_v31 }
 0x3c1   : > { %v2205_v32 = vpop.f32.mrf.mxu1  ;;  %v2023_v36 = vadd.f32 %v11049_v22, %v1841_v46  ;;  %v2678_v46 = vld [vmem:[#allocation13 + $0x960] sm:$0xff] }
 0x3c2   : > { %v2282_v2 = vpack.c.bf16 %v2266_v53, %v2265_v54  ;;  %v1843_v50 = vpop.f32.mrf.mxu0  ;;  %2331 = vst.msk [vmem:[#allocation2 + $0x14] sm:$0xf] %vm2289_vm6, %v2283_v28  ;;  %v2248_v33 = vadd.f32 %v2205_v32, %v2019_v45  ;;  %v2271_v56 = vmax.f32 %v2250_v18, 0.0  ;;  %v9233_v40 = vpack.c.bf16 %v2266_v53, %v2266_v53 }
 0x3c3   : > { %v9730_v41 = vpop.f32.mrf.mxu1  ;;  %v1844_v7 = vadd.f32 %v11061_v15, %v1843_v50  ;;  %v2682_v50 = vld [vmem:[#allocation13 + $0x980] sm:$0xff] }
 0x3c4   : > { %v2251_v23 = vadd.f32 %v9730_v41, %v2022_v27  ;;  %v9670_v6 = vpop.f32.mrf.mxu0  ;;  %2323 = vst.msk [vmem:[#allocation2 + $0x10] sm:$0xf] %vm2289_vm6, %v2282_v2  ;;  %v2269_v24 = vmax.f32 %v2248_v33, 0.0  ;;  %v2686_v27 = vld [vmem:[#allocation13 + $0x9a0] sm:$0xff] }
 0x3c5   : > { %v2208_v12 = vpop.f32.mrf.mxu1 }
 0x3c6   : > { %v2272_v25 = vmax.f32 %v2251_v23, 0.0  ;;  %v2249_v61 = vadd.f32 %v2208_v12, %v2020_v35  ;;  %v1848_v52 = vpop.f32.mrf.mxu0  ;;  %v8791_v35 = vcombine.high %v2682_v50, %v2686_v27  ;;  %v2674_v12 = vld [vmem:[#allocation13 + $0x940] sm:$0xff] }
 0x3c7   : > { %v1849_v8 = vadd.f32 %v11061_v15, %v1848_v52  ;;  %v9733_v5 = vpop.f32.mrf.mxu1  ;;  %v2670_v52 = vld [vmem:[#allocation13 + $0x920] sm:$0xff] }
 0x3c8   : > { %v2285_v20 = vpack.c.bf16 %v2272_v25, %v2271_v56  ;;  %v9236_v0 = vpack.c.bf16 %v2272_v25, %v2272_v25  ;;  %v2270_v30 = vmax.f32 %v2249_v61, 0.0  ;;  %v9673_v63 = vpop.f32.mrf.mxu0  ;;  %v8790_v56 = vcombine.low %v2682_v50, %v2686_v27  ;;  %v2666_v61 = vld [vmem:[#allocation13 + $0x900] sm:$0xff] }
 0x3c9   : > { %v2025_v3 = vadd.f32 %v11066_v10, %v1849_v8  ;;  %v2221_v43 = vpop.f32.mrf.mxu1  ;;  %v2024_v10 = vadd.f32 %v11057_v11, %v1844_v7  ;;  %v8783_v25 = vcombine.high %v2674_v12, %v2678_v46  ;;  %v2810_v7 = vld [vmem:[#allocation13 + $0xd80] sm:$0xff]  ;;  %v8775_v63 = vcombine.high %v2666_v61, %v2670_v52 }
 0x3ca   : > { %v2284_v29 = vpack.c.bf16 %v2270_v30, %v2269_v24  ;;  %v9235_v48 = vpack.c.bf16 %v2270_v30, %v2270_v30  ;;  %v1851_v42 = vpop.f32.mrf.mxu0  ;;  %2351 = vrot.lane.b32.xlu1 %v9236_v0, %s10264_s13  ;;  %2347 = vst.msk [vmem:[#allocation2 + $0x1c] sm:$0xf] %vm2289_vm6, %v2285_v20  ;;  %v2252_v39 = vadd.f32 %v2221_v43, %v2023_v36  ;;  %v2814_v8 = vld [vmem:[#allocation13 + $0xda0] sm:$0xff] }
 0x3cb   : > { %v1852_v49 = vadd.f32 %v11061_v15, %v1851_v42  ;;  %v9734_v34 = vpop.f32.mrf.mxu1  ;;  %v2254_v21 = vadd.f32 %v9733_v5, %v2025_v3  ;;  %v8782_v0 = vcombine.low %v2674_v12, %v2678_v46  ;;  %v8919_v3 = vcombine.high %v2810_v7, %v2814_v8  ;;  %v2806_v43 = vld [vmem:[#allocation13 + $0xd60] sm:$0xff] }
 0x3cc   : > { %v9674_v55 = vpop.f32.mrf.mxu0  ;;  %2343 = vrot.lane.b32.xlu0 %v9235_v48, %s10264_s13  ;;  %2339 = vst.msk [vmem:[#allocation2 + $0x18] sm:$0xf] %vm2289_vm6, %v2284_v29  ;;  %v2273_v60 = vmax.f32 %v2252_v39, 0.0  ;;  %v8774_v48 = vcombine.low %v2666_v61, %v2670_v52  ;;  %v8918_v36 = vcombine.low %v2810_v7, %v2814_v8  ;;  %v2654_v39 = vld [vmem:[#allocation13 + $0x8a0] sm:$0xff] }
 0x3cd   : > { %v2026_v22 = vadd.f32 %v11055_v19, %v1852_v49  ;;  %v2224_v4 = vpop.f32.mrf.mxu1  ;;  %v2275_v11 = vmax.f32 %v2254_v21, 0.0  ;;  %v8767_v49 = vcombine.high %v2658_v1, %v2662_v57  ;;  %v2794_v55 = vld [vmem:[#allocation13 + $0xd00] sm:$0xff] }
 0x3ce   : > { %v2253_v51 = vadd.f32 %v2224_v4, %v2024_v10  ;;  %v1856_v44 = vpop.f32.mrf.mxu0  ;;  %2335 = vrot.lane.b32.xlu1 %v9234_v47, %s10264_s13  ;;  %v2650_v47 = vld [vmem:[#allocation13 + $0x880] sm:$0xff] }
 0x3cf   : > { %v2255_v14 = vadd.f32 %v9734_v34, %v2026_v22  ;;  %v1857_v31 = vadd.f32 %v11061_v15, %v1856_v44  ;;  %v2798_v10 = vld [vmem:[#allocation13 + $0xd20] sm:$0xff] }
 0x3d0   : > { %v2274_v13 = vmax.f32 %v2253_v51, 0.0  ;;  %v9677_v38 = vpop.f32.mrf.mxu0  ;;  %2327 = vrot.lane.b32.xlu0 %v9233_v40, %s10264_s13  ;;  %v8903_v22 = vcombine.high %v2794_v55, %v2798_v10  ;;  %v2642_v4 = vld [vmem:[#allocation13 + $0x840] sm:$0xff] }
 0x3d1   : > { %v2276_v17 = vmax.f32 %v2255_v14, 0.0  ;;  %v2027_v54 = vadd.f32 %v11063_v16, %v1857_v31  ;;  %v2646_v40 = vld [vmem:[#allocation13 + $0x860] sm:$0xff]  ;;  %v8902_v38 = vcombine.low %v2794_v55, %v2798_v10 }
 0x3d2   : > { %v2286_v28 = vpack.c.bf16 %v2274_v13, %v2273_v60  ;;  %v9237_v19 = vpack.c.bf16 %v2274_v13, %v2274_v13  ;;  %v1859_v62 = vpop.f32.mrf.mxu0  ;;  %v2786_v51 = vld [vmem:[#allocation13 + $0xcc0] sm:$0xff]  ;;  %v8758_v13 = vcombine.low %v2650_v47, %v2654_v39 }
 0x3d3   : > { %v2287_v53 = vpack.c.bf16 %v2276_v17, %v2275_v11  ;;  %v9238_v59 = vpack.c.bf16 %v2276_v17, %v2276_v17  ;;  %v2277_v32 = vmax.f32 %v2027_v54, 0.0  ;;  %v2790_v44 = vld [vmem:[#allocation13 + $0xce0] sm:$0xff]  ;;  %v8751_v17 = vcombine.high %v2642_v4, %v2646_v40 }
 0x3d4   : > { %2355 = vst.msk [vmem:[#allocation2 + $0x20] sm:$0xf] %vm2289_vm6, %v2286_v28  ;;  %v9678_v2 = vpop.f32.mrf.mxu0  ;;  %2359 = vrot.lane.b32.xlu0 %v9237_v19, %s10264_s13  ;;  %v8895_v54 = vcombine.high %v2786_v51, %v2790_v44  ;;  %v2634_v28 = vld [vmem:[#allocation13 + $0x800] sm:$0xff] }
 0x3d5   : > { %v2288_v15 = vpack.c.bf16 %v2277_v32, %v2277_v32  ;;  %2363 = vst.msk [vmem:[#allocation2 + $0x24] sm:$0xf] %vm2289_vm6, %v2287_v53  ;;  %2367 = vrot.lane.b32.xlu1 %v9238_v59, %s10264_s13  ;;  %v2638_v19 = vld [vmem:[#allocation13 + $0x820] sm:$0xff]  ;;  %v8750_v32 = vcombine.low %v2642_v4, %v2646_v40 }
 0x3d6   : > { %v2778_v62 = vld [vmem:[#allocation13 + $0xc80] sm:$0xff] }
 0x3d7   : > { %2371 = vst.msk [vmem:[#allocation2 + $0x28] sm:$0xf] %vm2289_vm6, %v2288_v15  ;;  %v2782_v53 = vld [vmem:[#allocation13 + $0xca0] sm:$0xff]  ;;  %v8894_v15 = vcombine.low %v2786_v51, %v2790_v44 }
 0x3d8   : > { %v2758_v50 = vld [vmem:[#allocation13 + $0xbe0] sm:$0xff] }
 0x3d9   : > { %v2770_v27 = vld [vmem:[#allocation13 + $0xc40] sm:$0xff] }
 0x3da   : > { %v2762_v61 = vld [vmem:[#allocation13 + $0xc00] sm:$0xff] }
 0x3db   : > { %v2766_v52 = vld [vmem:[#allocation13 + $0xc20] sm:$0xff] }
 0x3dc   : > { %v2886_v1 = vld [vmem:[#allocation13 + $0xfe0] sm:$0xff] }
 0x3dd   : > { %v2722_v10 = vld [vmem:[#allocation13 + $0xac0] sm:$0xff] }
 0x3de   : > { %v2714_v51 = vld [vmem:[#allocation13 + $0xa80] sm:$0xff] }
 0x3df   : > { %v2718_v44 = vld [vmem:[#allocation13 + $0xaa0] sm:$0xff] }
 0x426   : > { %v2295_v16 = vpop.permute.xlu1 %2294 }
 0x427   : > { %2298 = vst.msk [vmem:[#allocation2] sm:$0xf] %vm2297_vm7, %v2295_v16  ;;  %v8743_v16 = vcombine.high %v2634_v28, %v2638_v19 }
 0x42a   : > { %v2304_v18 = vpop.permute.xlu1 %2303 }
 0x42b   : > { %2306 = vst.msk [vmem:[#allocation2 + $0x4] sm:$0xf] %vm2297_vm7, %v2304_v18  ;;  %v8887_v18 = vcombine.high %v2778_v62, %v2782_v53 }
 0x42e   : > { %v2312_v45 = vpop.permute.xlu0 %2311 }
 0x42f   : > { %2314 = vst.msk [vmem:[#allocation2 + $0x8] sm:$0xf] %vm2297_vm7, %v2312_v45  ;;  %v2754_v45 = vld [vmem:[#allocation13 + $0xbc0] sm:$0xff] }
 0x430   : > { %v8863_v12 = vcombine.high %v2754_v45, %v2758_v50  ;;  %v8862_v7 = vcombine.low %v2754_v45, %v2758_v50  ;;  %v2698_v45 = vld [vmem:[#allocation13 + $0xa00] sm:$0xff] }
 0x431   : > { %v2702_v50 = vld [vmem:[#allocation13 + $0xa20] sm:$0xff] }
 0x432   : > { %v2320_v41 = vpop.permute.xlu0 %2319  ;;  %v2372_v33 = vld [vmem:[#allocation2] sm:$0xff] }
 0x433   : > { %2322 = vst.msk [vmem:[#allocation2 + $0xc] sm:$0xf] %vm2297_vm7, %v2320_v41  ;;  %v11169_v23 = vcombine.low %v2372_v33, %v2372_v33  ;;  %v11171_v6 = vcombine.high %v2372_v33, %v2372_v33  ;;  %v2774_v41 = vld [vmem:[#allocation13 + $0xc60] sm:$0xff]  ;;  %v8742_v33 = vcombine.low %v2634_v28, %v2638_v19 }
 0x434   : > { %v8879_v46 = vcombine.high %v2770_v27, %v2774_v41  ;;  %v8878_v8 = vcombine.low %v2770_v27, %v2774_v41  ;;  %v2706_v28 = vld [vmem:[#allocation13 + $0xa40] sm:$0xff] }
 0x435   : > { %6525 = vmatprep.mubr.bf16.mxu0 %v11171_v6  ;;  %v2710_v19 = vld [vmem:[#allocation13 + $0xa60] sm:$0xff] }
 0x436   : > { %6526 = vmatmul.mubr.bf16.vlgmr.msra.gmra.mxu0 %v11169_v23  ;;  %v2842_v27 = vld [vmem:[#allocation13 + $0xe80] sm:$0xff] }
 0x437   : > { %6576 = vmatpush1.bf16.msra.mxu0 %v8798_v58  ;;  %v2802_v58 = vld [vmem:[#allocation13 + $0xd40] sm:$0xff] }
 0x438   : > { %6577 = vmatprep.subr.bf16.mxu0 %v8791_v35  ;;  %v8911_v34 = vcombine.high %v2802_v58, %v2806_v43  ;;  %v8910_v9 = vcombine.low %v2802_v58, %v2806_v43  ;;  %v8886_v35 = vcombine.low %v2778_v62, %v2782_v53  ;;  %v8870_v58 = vcombine.low %v2762_v61, %v2766_v52  ;;  %v2850_v62 = vld [vmem:[#allocation13 + $0xec0] sm:$0xff] }
 0x439   : > { %v2854_v53 = vld [vmem:[#allocation13 + $0xee0] sm:$0xff] }
 0x43a   : > { %v2373_v5 = vld [vmem:[#allocation2 + $0x8] sm:$0xff] }
 0x43b   : > { %6578 = vmatpush1.bf16.msra.mxu0 %v8790_v56  ;;  %v11178_v24 = vcombine.low %v2373_v5, %v2373_v5  ;;  %v11180_v20 = vcombine.high %v2373_v5, %v2373_v5  ;;  %v2746_v56 = vld [vmem:[#allocation13 + $0xb80] sm:$0xff] }
 0x43c   : > { %v2352_v30 = vpop.permute.xlu1 %2351  ;;  %6579 = vmatprep.subr.bf16.mxu0 %v8783_v25  ;;  %v2750_v25 = vld [vmem:[#allocation13 + $0xba0] sm:$0xff] }
 0x43d   : > { %2354 = vst.msk [vmem:[#allocation2 + $0x1c] sm:$0xf] %vm2297_vm7, %v2352_v30  ;;  %6566 = vmatprep.mubr.bf16.mxu1 %v11180_v20  ;;  %v8855_v5 = vcombine.high %v2746_v56, %v2750_v25  ;;  %v2738_v30 = vld [vmem:[#allocation13 + $0xb40] sm:$0xff]  ;;  %v8854_v57 = vcombine.low %v2746_v56, %v2750_v25 }
 0x43e   : > { %6567 = vmatmul.mubr.bf16.vlgmr.msra.gmra.mxu1 %v11178_v24  ;;  %v2344_v29 = vpop.permute.xlu0 %2343  ;;  %v2846_v41 = vld [vmem:[#allocation13 + $0xea0] sm:$0xff] }
 0x43f   : > { %6580 = vmatpush1.bf16.msra.mxu0 %v8782_v0  ;;  %6617 = vmatpush1.bf16.msra.mxu1 %v8926_v26  ;;  %2346 = vst.msk [vmem:[#allocation2 + $0x18] sm:$0xf] %vm2297_vm7, %v2344_v29  ;;  %v8759_v26 = vcombine.high %v2650_v47, %v2654_v39  ;;  %v8871_v0 = vcombine.high %v2762_v61, %v2766_v52  ;;  %v2834_v56 = vld [vmem:[#allocation13 + $0xe40] sm:$0xff] }
 0x440   : > { %v2336_v42 = vpop.permute.xlu1 %2335  ;;  %6581 = vmatprep.subr.bf16.mxu0 %v8775_v63  ;;  %6618 = vmatprep.subr.bf16.mxu1 %v8919_v3  ;;  %v2742_v63 = vld [vmem:[#allocation13 + $0xb60] sm:$0xff] }
 0x441   : > { %2338 = vst.msk [vmem:[#allocation2 + $0x14] sm:$0xf] %vm2297_vm7, %v2336_v42  ;;  %v2882_v3 = vld [vmem:[#allocation13 + $0xfc0] sm:$0xff]  ;;  %v8847_v43 = vcombine.high %v2738_v30, %v2742_v63 }
 0x442   : > { %v2328_v21 = vpop.permute.xlu0 %2327  ;;  %v8991_v29 = vcombine.high %v2882_v3, %v2886_v1  ;;  %v2874_v42 = vld [vmem:[#allocation13 + $0xf80] sm:$0xff]  ;;  %v8990_v47 = vcombine.low %v2882_v3, %v2886_v1 }
 0x443   : > { %6582 = vmatpush1.bf16.msra.mxu0 %v8774_v48  ;;  %6619 = vmatpush1.bf16.msra.mxu1 %v8918_v36  ;;  %2330 = vst.msk [vmem:[#allocation2 + $0x10] sm:$0xf] %vm2297_vm7, %v2328_v21  ;;  %v2730_v48 = vld [vmem:[#allocation13 + $0xb00] sm:$0xff] }
 0x444   : > { %6583 = vmatprep.subr.bf16.mxu0 %v8767_v49  ;;  %6620 = vmatprep.subr.bf16.mxu1 %v8911_v34  ;;  %v2734_v36 = vld [vmem:[#allocation13 + $0xb20] sm:$0xff]  ;;  %v8846_v34 = vcombine.low %v2738_v30, %v2742_v63 }
 0x445   : > { %v2878_v49 = vld [vmem:[#allocation13 + $0xfa0] sm:$0xff]  ;;  %v8839_v39 = vcombine.high %v2730_v48, %v2734_v36 }
 0x446   : > { %v2360_v14 = vpop.permute.xlu0 %2359  ;;  %v11191_v31 = vld [vmem:[#allocation2 + $0x18] sm:$0xff]  ;;  %v8983_v55 = vcombine.high %v2874_v42, %v2878_v49  ;;  %v2726_v21 = vld [vmem:[#allocation13 + $0xae0] sm:$0xff] }
 0x447   : > { %6584 = vmatpush1.bf16.msra.mxu0 %v8766_v37  ;;  %6621 = vmatpush1.bf16.msra.mxu1 %v8910_v9  ;;  %2362 = vst.msk [vmem:[#allocation2 + $0x20] sm:$0xf] %vm2297_vm7, %v2360_v14  ;;  %v2368_v60 = vpop.permute.xlu1 %2367  ;;  %v11196_v11 = vcombine.high %v11191_v31, %v11191_v31  ;;  %v2866_v37 = vld [vmem:[#allocation13 + $0xf40] sm:$0xff]  ;;  %v8831_v4 = vcombine.high %v2722_v10, %v2726_v21 }
 0x448   : > { %2370 = vst.msk [vmem:[#allocation2 + $0x24] sm:$0xf] %vm2297_vm7, %v2368_v60  ;;  %6585 = vmatprep.subr.bf16.mxu0 %v8759_v26  ;;  %6622 = vmatprep.subr.bf16.mxu1 %v8903_v22  ;;  %v2870_v9 = vld [vmem:[#allocation13 + $0xf60] sm:$0xff]  ;;  %v8838_v26 = vcombine.low %v2730_v48, %v2734_v36  ;;  %v8982_v22 = vcombine.low %v2874_v42, %v2878_v49 }
 0x449   : > { %6648 = vmatprep.mubr.bf16.mxu1 %v11196_v11  ;;  %v8975_v40 = vcombine.high %v2866_v37, %v2870_v9  ;;  %v2858_v14 = vld [vmem:[#allocation13 + $0xf00] sm:$0xff] }
 0x44a   : > { %v11200_v59 = vld [vmem:[#allocation2 + $0x10] sm:$0xff]  ;;  %v2862_v60 = vld [vmem:[#allocation13 + $0xf20] sm:$0xff] }
 0x44b   : > { %6586 = vmatpush1.bf16.msra.mxu0 %v8758_v13  ;;  %6623 = vmatpush1.bf16.msra.mxu1 %v8902_v38  ;;  %v11204_v2 = vcombine.high %v11200_v59, %v11200_v59  ;;  %v8830_v13 = vcombine.low %v2722_v10, %v2726_v21  ;;  %v8974_v38 = vcombine.low %v2866_v37, %v2870_v9  ;;  %v2838_v25 = vld [vmem:[#allocation13 + $0xe60] sm:$0xff] }
 0x44c   : > { %6587 = vmatprep.subr.bf16.mxu0 %v8751_v17  ;;  %6624 = vmatprep.subr.bf16.mxu1 %v8895_v54  ;;  %v8823_v17 = vcombine.high %v2714_v51, %v2718_v44  ;;  %v8967_v54 = vcombine.high %v2858_v14, %v2862_v60  ;;  %v2946_v61 = vld [vmem:[#allocation13 + $0x11c0] sm:$0xff] }
 0x44d   : > { %6607 = vmatprep.mubr.bf16.mxu0 %v11204_v2  ;;  %v2950_v52 = vld [vmem:[#allocation13 + $0x11e0] sm:$0xff] }
 0x44e   : > { %v2826_v30 = vld [vmem:[#allocation13 + $0xe00] sm:$0xff] }
 0x44f   : > { %6588 = vmatpush1.bf16.msra.mxu0 %v8750_v32  ;;  %6625 = vmatpush1.bf16.msra.mxu1 %v8894_v15  ;;  %v8822_v32 = vcombine.low %v2714_v51, %v2718_v44  ;;  %v8966_v15 = vcombine.low %v2858_v14, %v2862_v60  ;;  %v2830_v63 = vld [vmem:[#allocation13 + $0xe20] sm:$0xff]  ;;  %v11221_v51 = vcombine.low %v11191_v31, %v11191_v31 }
 0x450   : > { %6589 = vmatprep.subr.bf16.mxu0 %v8743_v16  ;;  %6626 = vmatprep.subr.bf16.mxu1 %v8887_v18  ;;  %v8815_v16 = vcombine.high %v2706_v28, %v2710_v19  ;;  %v8959_v18 = vcombine.high %v2850_v62, %v2854_v53  ;;  %v2938_v3 = vld [vmem:[#allocation13 + $0x1180] sm:$0xff]  ;;  %v8935_v48 = vcombine.high %v2826_v30, %v2830_v63 }
 0x451   : > { %v2942_v1 = vld [vmem:[#allocation13 + $0x11a0] sm:$0xff] }
 0x452   : > { %v2930_v36 = vld [vmem:[#allocation13 + $0x1140] sm:$0xff]  ;;  %v9047_v42 = vcombine.high %v2938_v3, %v2942_v1  ;;  %v9046_v10 = vcombine.low %v2938_v3, %v2942_v1 }
 0x453   : > { %6590 = vmatpush1.bf16.msra.mxu0 %v8742_v33  ;;  %6627 = vmatpush1.bf16.msra.mxu1 %v8886_v35  ;;  %v8814_v33 = vcombine.low %v2706_v28, %v2710_v19  ;;  %v8958_v35 = vcombine.low %v2850_v62, %v2854_v53  ;;  %v2934_v49 = vld [vmem:[#allocation13 + $0x1160] sm:$0xff] }
 0x454   : > { %6591 = vmatprep.subr.bf16.mxu0 %v8863_v12  ;;  %6628 = vmatprep.subr.bf16.mxu1 %v8879_v46  ;;  %v8807_v12 = vcombine.high %v2698_v45, %v2702_v50  ;;  %v8951_v46 = vcombine.high %v2842_v27, %v2846_v41  ;;  %v2922_v37 = vld [vmem:[#allocation13 + $0x1100] sm:$0xff] }
 0x455   : > { %v2926_v9 = vld [vmem:[#allocation13 + $0x1120] sm:$0xff] }
 0x456   : > { %v9031_v44 = vcombine.high %v2922_v37, %v2926_v9  ;;  %v2914_v60 = vld [vmem:[#allocation13 + $0x10c0] sm:$0xff] }
 0x457   : > { %6592 = vmatpush2.bf16.msra.mxu0 %v8862_v7  ;;  %6629 = vmatpush1.bf16.msra.mxu1 %v8878_v8  ;;  %v8806_v7 = vcombine.low %v2698_v45, %v2702_v50  ;;  %v8950_v8 = vcombine.low %v2842_v27, %v2846_v41  ;;  %v2906_v31 = vld [vmem:[#allocation13 + $0x1080] sm:$0xff] }
 0x458   : > { %6593 = vmatprep.subr.bf16.mxu0 %v8855_v5  ;;  %6630 = vmatprep.subr.bf16.mxu1 %v8871_v0  ;;  %v8943_v5 = vcombine.high %v2834_v56, %v2838_v25  ;;  %v9055_v0 = vcombine.high %v2946_v61, %v2950_v52  ;;  %v2910_v53 = vld [vmem:[#allocation13 + $0x10a0] sm:$0xff] }
 0x459   : > { %v9015_v50 = vcombine.high %v2906_v31, %v2910_v53  ;;  %v2898_v41 = vld [vmem:[#allocation13 + $0x1040] sm:$0xff] }
 0x45a   : > { %v3010_v1 = vld [vmem:[#allocation13 + $0x13c0] sm:$0xff] }
 0x45b   : > { %6594 = vmatpush2.bf16.msra.mxu0 %v8854_v57  ;;  %6631 = vmatpush1.bf16.msra.mxu1 %v8870_v58  ;;  %v8942_v57 = vcombine.low %v2834_v56, %v2838_v25  ;;  %v9054_v58 = vcombine.low %v2946_v61, %v2950_v52  ;;  %v2890_v52 = vld [vmem:[#allocation13 + $0x1000] sm:$0xff] }
 0x45c   : > { %6595 = vmatprep.subr.bf16.mxu0 %v8847_v43  ;;  %6632 = vmatprep.subr.bf16.mxu1 %v8991_v29  ;;  %v11207_v43 = vld [vmem:[#allocation2 + $0x20] sm:$0xff]  ;;  %v11211_v29 = vcombine.low %v11200_v59, %v11200_v59  ;;  %v9039_v59 = vcombine.high %v2930_v36, %v2934_v49 }
 0x45f   : > { %6596 = vmatpush2.bf16.msra.mxu0 %v8846_v34  ;;  %6633 = vmatpush2.bf16.msra.mxu1 %v8990_v47  ;;  %v3042_v34 = vld [vmem:[#allocation13 + $0x14c0] sm:$0xff] }
 0x460   : > { %6597 = vmatprep.subr.bf16.mxu0 %v8839_v39  ;;  %6634 = vmatprep.subr.bf16.mxu1 %v8983_v55  ;;  %v3046_v47 = vld [vmem:[#allocation13 + $0x14e0] sm:$0xff]  ;;  %v11216_v39 = vcombine.high %v11207_v43, %v11207_v43  ;;  %v8934_v55 = vcombine.low %v2826_v30, %v2830_v63 }
 0x461   : > { %v9151_v21 = vcombine.high %v3042_v34, %v3046_v47  ;;  %v9886_v63 = vld [vmem:[#allocation2 + $0x28] ss:$0 sps:$4 sm:$0xff]  }
 0x463   : > { %6598 = vmatpush2.bf16.msra.mxu0 %v8838_v26  ;;  %6635 = vmatpush2.bf16.msra.mxu1 %v8982_v22  ;;  %v3034_v26 = vld [vmem:[#allocation13 + $0x1480] sm:$0xff] }
 0x464   : > { %6599 = vmatprep.subr.bf16.mxu0 %v8831_v4  ;;  %6636 = vmatprep.subr.bf16.mxu1 %v8975_v40  ;;  %v3038_v22 = vld [vmem:[#allocation13 + $0x14a0] sm:$0xff]  ;;  %v9038_v4 = vcombine.low %v2930_v36, %v2934_v49  ;;  %v9150_v40 = vcombine.low %v3042_v34, %v3046_v47  ;;  %v2423_v36 = vld [vmem:[#allocation13 + $0x168] sm:$0xff] }
 0x465   : > { %v9143_v14 = vcombine.high %v3034_v26, %v3038_v22  ;;  %v9142_v28 = vcombine.low %v3034_v26, %v3038_v22 }
 0x467   : > { %6600 = vmatpush2.bf16.msra.mxu0 %v8830_v13  ;;  %6637 = vmatpush2.bf16.msra.mxu1 %v8974_v38  ;;  %v2918_v13 = vld [vmem:[#allocation13 + $0x10e0] sm:$0xff] }
 0x468   : > { %6601 = vmatprep.subr.bf16.mxu0 %v8823_v17  ;;  %6638 = vmatprep.subr.bf16.mxu1 %v8967_v54  ;;  %v3026_v38 = vld [vmem:[#allocation13 + $0x1440] sm:$0xff]  ;;  %v9030_v54 = vcombine.low %v2922_v37, %v2926_v9  ;;  %v9023_v19 = vcombine.high %v2914_v60, %v2918_v13 }
 0x469   : > { %v3030_v17 = vld [vmem:[#allocation13 + $0x1460] sm:$0xff] }
 0x46a   : > { %v9135_v62 = vcombine.high %v3026_v38, %v3030_v17  ;;  %v9134_v45 = vcombine.low %v3026_v38, %v3030_v17 }
 0x46b   : > { %6602 = vmatpush2.bf16.msra.mxu0 %v8822_v32  ;;  %6639 = vmatpush2.bf16.msra.mxu1 %v8966_v15  ;;  %v3018_v32 = vld [vmem:[#allocation13 + $0x1400] sm:$0xff] }
 0x46c   : > { %6603 = vmatprep.subr.bf16.mxu0 %v8815_v16  ;;  %6640 = vmatprep.subr.bf16.mxu1 %v8959_v18  ;;  %v3022_v15 = vld [vmem:[#allocation13 + $0x1420] sm:$0xff]  ;;  %v10265_v16 = vmov 0   ;;  %v9022_v18 = vcombine.low %v2914_v60, %v2918_v13 }
 0x46d   : > { %v9127_v27 = vcombine.high %v3018_v32, %v3022_v15  ;;  %v9126_v56 = vcombine.low %v3018_v32, %v3022_v15 }
 0x46f   : > { %6604 = vmatpush2.bf16.msra.mxu0 %v8814_v33  ;;  %6641 = vmatpush2.bf16.msra.mxu1 %v8958_v35  ;;  %v2902_v33 = vld [vmem:[#allocation13 + $0x1060] sm:$0xff]  ;;  %v2435_v35 = vld [vmem:[#allocation13 + $0x1c8] sm:$0xff] }
 0x470   : > { %6605 = vmatprep.subr.bf16.mxu0 %v8807_v12  ;;  %6642 = vmatprep.subr.bf16.mxu1 %v8951_v46  ;;  %v2439_v12 = vld [vmem:[#allocation13 + $0x1e8] sm:$0xff]  ;;  %v9014_v46 = vcombine.low %v2906_v31, %v2910_v53  ;;  %v9007_v25 = vcombine.high %v2898_v41, %v2902_v33 }
 0x471   : > { %v8545_v61 = vcombine.high %v2435_v35, %v2439_v12  ;;  %v8544_v30 = vcombine.low %v2435_v35, %v2439_v12 }
 0x473   : > { %6606 = vmatpush2.bf16.msra.mxu0 %v8806_v7  ;;  %6643 = vmatpush2.bf16.msra.mxu1 %v8950_v8  ;;  %v2894_v7 = vld [vmem:[#allocation13 + $0x1020] sm:$0xff]  ;;  %v2427_v8 = vld [vmem:[#allocation13 + $0x188] sm:$0xff] }
 0x474   : > { %6644 = vmatprep.subr.bf16.mxu1 %v8943_v5  ;;  %6657 = vmatprep.subr.bf16.mxu0 %v9055_v0  ;;  %v2431_v5 = vld [vmem:[#allocation13 + $0x1a8] sm:$0xff]  ;;  %v9006_v0 = vcombine.low %v2898_v41, %v2902_v33  ;;  %v8999_v3 = vcombine.high %v2890_v52, %v2894_v7 }
 0x475   : > { %v8536_v49 = vcombine.low %v2427_v8, %v2431_v5 }
 0x476   : > { %6608 = vmatmul.mubr.bf16.vlgmr.msra.gmra.mxu0 %v11211_v29 }
 0x477   : > { %6645 = vmatpush2.bf16.msra.mxu1 %v8942_v57  ;;  %6658 = vmatpush1.bf16.msra.mxu0 %v9054_v58  ;;  %v8537_v57 = vcombine.high %v2427_v8, %v2431_v5  ;;  %v3014_v58 = vld [vmem:[#allocation13 + $0x13e0] sm:$0xff] }
 0x478   : > { %6689 = vmatprep.mubr.bf16.mxu0 %v11216_v39  ;;  %6646 = vmatprep.subr.bf16.mxu1 %v8935_v48  ;;  %v2419_v48 = vld [vmem:[#allocation13 + $0x148] sm:$0xff]  ;;  %v9119_v34 = vcombine.high %v3010_v1, %v3014_v58  ;;  %v9118_v37 = vcombine.low %v3010_v1, %v3014_v58 }
 0x479   : > { %6659 = vmatprep.subr.bf16.mxu0 %v9047_v42  ;;  %v8998_v42 = vcombine.low %v2890_v52, %v2894_v7  ;;  %v8529_v47 = vcombine.high %v2419_v48, %v2423_v36  ;;  %v8528_v9 = vcombine.low %v2419_v48, %v2423_v36  ;;  %v2954_v36 = vld [vmem:[#allocation13 + $0x1200] sm:$0xff] }
 0x47b   : > { %6647 = vmatpush2.bf16.msra.mxu1 %v8934_v55  ;;  %6660 = vmatpush1.bf16.msra.mxu0 %v9046_v10  ;;  %v3002_v55 = vld [vmem:[#allocation13 + $0x1380] sm:$0xff] }
 0x47c   : > { %6661 = vmatprep.subr.bf16.mxu0 %v9039_v59  ;;  %6706 = vmatprep.subr.bf16.mxu1 %v9151_v21  ;;  %v3006_v10 = vld [vmem:[#allocation13 + $0x13a0] sm:$0xff]  ;;  %v2411_v59 = vld [vmem:[#allocation13 + $0x108] sm:$0xff] }
 0x47d   : > { %v2415_v21 = vld [vmem:[#allocation13 + $0x128] sm:$0xff]  ;;  %v9111_v26 = vcombine.high %v3002_v55, %v3006_v10  ;;  %v9110_v60 = vcombine.low %v3002_v55, %v3006_v10 }
 0x47e   : > { %6649 = vmatmul.mubr.bf16.vlgmr.msra.gmra.mxu1 %v11221_v51  ;;  %v8521_v22 = vcombine.high %v2411_v59, %v2415_v21  ;;  %v8520_v13 = vcombine.low %v2411_v59, %v2415_v21  ;;  %v2483_v21 = vld [vmem:[#allocation13 + $0x348] sm:$0xff] }
 0x47f   : > { %6662 = vmatpush1.bf16.msra.mxu0 %v9038_v4  ;;  %6707 = vmatpush1.bf16.msra.mxu1 %v9150_v40  ;;  %v2994_v4 = vld [vmem:[#allocation13 + $0x1340] sm:$0xff] }
 0x480   : > { %6663 = vmatprep.subr.bf16.mxu0 %v9031_v44  ;;  %6708 = vmatprep.subr.bf16.mxu1 %v9143_v14  ;;  %v2998_v40 = vld [vmem:[#allocation13 + $0x1360] sm:$0xff]  ;;  %v2403_v44 = vld [vmem:[#allocation13 + $0xc8] sm:$0xff] }
 0x481   : > { %6730 = vmatprep.mubr.bf16.mxu1 %v10265_v16  ;;  %v2407_v14 = vld [vmem:[#allocation13 + $0xe8] sm:$0xff]  ;;  %v9103_v38 = vcombine.high %v2994_v4, %v2998_v40  ;;  %v9102_v31 = vcombine.low %v2994_v4, %v2998_v40 }
 0x482   : > { %v8513_v17 = vcombine.high %v2403_v44, %v2407_v14  ;;  %v8512_v53 = vcombine.low %v2403_v44, %v2407_v14  ;;  %v2475_v14 = vld [vmem:[#allocation13 + $0x308] sm:$0xff] }
 0x483   : > { %6664 = vmatpush1.bf16.msra.mxu0 %v9030_v54  ;;  %6709 = vmatpush1.bf16.msra.mxu1 %v9142_v28  ;;  %v2986_v54 = vld [vmem:[#allocation13 + $0x1300] sm:$0xff] }
 0x484   : > { %6665 = vmatprep.subr.bf16.mxu0 %v9023_v19  ;;  %6710 = vmatprep.subr.bf16.mxu1 %v9135_v62  ;;  %v2990_v28 = vld [vmem:[#allocation13 + $0x1320] sm:$0xff]  ;;  %v2395_v19 = vld [vmem:[#allocation13 + $0x88] sm:$0xff] }
 0x485   : > { %v2399_v62 = vld [vmem:[#allocation13 + $0xa8] sm:$0xff]  ;;  %v9095_v32 = vcombine.high %v2986_v54, %v2990_v28  ;;  %v9094_v41 = vcombine.low %v2986_v54, %v2990_v28  ;;  %v11229_v28 = vcombine.low %v11207_v43, %v11207_v43 }
 0x486   : > { %v8505_v15 = vcombine.high %v2395_v19, %v2399_v62  ;;  %v8504_v33 = vcombine.low %v2395_v19, %v2399_v62  ;;  %v2467_v62 = vld [vmem:[#allocation13 + $0x2c8] sm:$0xff] }
 0x487   : > { %6666 = vmatpush1.bf16.msra.mxu0 %v9022_v18  ;;  %6711 = vmatpush1.bf16.msra.mxu1 %v9134_v45  ;;  %v2978_v18 = vld [vmem:[#allocation13 + $0x12c0] sm:$0xff] }
 0x488   : > { %6667 = vmatprep.subr.bf16.mxu0 %v9015_v50  ;;  %6712 = vmatprep.subr.bf16.mxu1 %v9127_v27  ;;  %v2982_v45 = vld [vmem:[#allocation13 + $0x12e0] sm:$0xff]  ;;  %v2387_v50 = vld [vmem:[#allocation13 + $0x48] sm:$0xff] }
 0x489   : > { %v2391_v27 = vld [vmem:[#allocation13 + $0x68] sm:$0xff]  ;;  %v9087_v35 = vcombine.high %v2978_v18, %v2982_v45  ;;  %v9086_v52 = vcombine.low %v2978_v18, %v2982_v45 }
 0x48a   : > { %v8497_v12 = vcombine.high %v2387_v50, %v2391_v27  ;;  %v8496_v7 = vcombine.low %v2387_v50, %v2391_v27  ;;  %v2459_v27 = vld [vmem:[#allocation13 + $0x288] sm:$0xff] }
 0x48b   : > { %6668 = vmatpush1.bf16.msra.mxu0 %v9014_v46  ;;  %6713 = vmatpush1.bf16.msra.mxu1 %v9126_v56  ;;  %v2970_v46 = vld [vmem:[#allocation13 + $0x1280] sm:$0xff] }
 0x48c   : > { %6669 = vmatprep.subr.bf16.mxu0 %v9007_v25  ;;  %6739 = vmatprep.subr.bf16.mxu1 %v8545_v61  ;;  %v2974_v56 = vld [vmem:[#allocation13 + $0x12a0] sm:$0xff]  ;;  %v2379_v25 = vld [vmem:[#allocation13 + $0x8] sm:$0xff] }
 0x48d   : > { %v2383_v61 = vld [vmem:[#allocation13 + $0x28] sm:$0xff]  ;;  %v9079_v8 = vcombine.high %v2970_v46, %v2974_v56  ;;  %v9078_v1 = vcombine.low %v2970_v46, %v2974_v56 }
 0x48e   : > { %9158 = vmatmul.mubr.msk.bf16.vlgmr.msra.gmra.mxu1 %vm1708_vm5, %v9886_v63  ;;  %v8489_v5 = vcombine.high %v2379_v25, %v2383_v61  ;;  %v2499_v63 = vld [vmem:[#allocation13 + $0x3c8] sm:$0xff] }
 0x48f   : > { %6670 = vmatpush1.bf16.msra.mxu0 %v9006_v0  ;;  %6740 = vmatpush1.bf16.msra.mxu1 %v8544_v30  ;;  %v2962_v0 = vld [vmem:[#allocation13 + $0x1240] sm:$0xff] }
 0x490   : > { %6771 = vmatprep.mubr.bf16.mxu1 %v11171_v6  ;;  %6671 = vmatprep.subr.bf16.mxu0 %v8999_v3  ;;  %v2966_v30 = vld [vmem:[#allocation13 + $0x1260] sm:$0xff]  ;;  %v2503_v3 = vld [vmem:[#allocation13 + $0x3e8] sm:$0xff] }
 0x491   : > { %6741 = vmatprep.subr.bf16.mxu1 %v8537_v57  ;;  %v8488_v57 = vcombine.low %v2379_v25, %v2383_v61  ;;  %v9071_v58 = vcombine.high %v2962_v0, %v2966_v30  ;;  %v8609_v48 = vcombine.high %v2499_v63, %v2503_v3  ;;  %v8608_v55 = vcombine.low %v2499_v63, %v2503_v3  ;;  %v2451_v61 = vld [vmem:[#allocation13 + $0x248] sm:$0xff] }
 0x492   : > { %v2443_v3 = vld [vmem:[#allocation13 + $0x208] sm:$0xff] }
 0x493   : > { %6672 = vmatpush1.bf16.msra.mxu0 %v8998_v42  ;;  %6742 = vmatpush1.bf16.msra.mxu1 %v8536_v49  ;;  %v2958_v42 = vld [vmem:[#allocation13 + $0x1220] sm:$0xff]  ;;  %v2491_v49 = vld [vmem:[#allocation13 + $0x388] sm:$0xff] }
 0x494   : > { %6673 = vmatprep.subr.bf16.mxu0 %v9119_v34  ;;  %6743 = vmatprep.subr.bf16.mxu1 %v8529_v47  ;;  %v2495_v34 = vld [vmem:[#allocation13 + $0x3a8] sm:$0xff]  ;;  %v9070_v47 = vcombine.low %v2962_v0, %v2966_v30  ;;  %v9063_v10 = vcombine.high %v2954_v36, %v2958_v42 }
 0x495   : > { %v8601_v59 = vcombine.high %v2491_v49, %v2495_v34  ;;  %v8600_v4 = vcombine.low %v2491_v49, %v2495_v34  ;;  %v2515_v34 = vld [vmem:[#allocation13 + $0x448] sm:$0xff] }
 0x497   : > { %6674 = vmatpush2.bf16.msra.mxu0 %v9118_v37  ;;  %6744 = vmatpush1.bf16.msra.mxu1 %v8528_v9  ;;  %v2487_v37 = vld [vmem:[#allocation13 + $0x368] sm:$0xff] }
 0x498   : > { %6675 = vmatprep.subr.bf16.mxu0 %v9111_v26  ;;  %6745 = vmatprep.subr.bf16.mxu1 %v8521_v22  ;;  %v2563_v9 = vld [vmem:[#allocation13 + $0x5c8] sm:$0xff]  ;;  %v9062_v22 = vcombine.low %v2954_v36, %v2958_v42  ;;  %v8593_v40 = vcombine.high %v2483_v21, %v2487_v37 }
 0x499   : > { %v2567_v26 = vld [vmem:[#allocation13 + $0x5e8] sm:$0xff] }
 0x49a   : > { %v8673_v44 = vcombine.high %v2563_v9, %v2567_v26  ;;  %v8672_v54 = vcombine.low %v2563_v9, %v2567_v26  ;;  %v2507_v26 = vld [vmem:[#allocation13 + $0x408] sm:$0xff] }
 0x49b   : > { %6676 = vmatpush2.bf16.msra.mxu0 %v9110_v60  ;;  %6746 = vmatpush1.bf16.msra.mxu1 %v8520_v13  ;;  %v2479_v60 = vld [vmem:[#allocation13 + $0x328] sm:$0xff] }
 0x49c   : > { %6677 = vmatprep.subr.bf16.mxu0 %v9103_v38  ;;  %6747 = vmatprep.subr.bf16.mxu1 %v8513_v17  ;;  %v2555_v13 = vld [vmem:[#allocation13 + $0x588] sm:$0xff]  ;;  %v8592_v17 = vcombine.low %v2483_v21, %v2487_v37  ;;  %v8585_v19 = vcombine.high %v2475_v14, %v2479_v60  ;;  %v8584_v18 = vcombine.low %v2475_v14, %v2479_v60 }
 0x49d   : > { %v2559_v38 = vld [vmem:[#allocation13 + $0x5a8] sm:$0xff] }
 0x49e   : > { %v8664_v45 = vcombine.low %v2555_v13, %v2559_v38 }
 0x49f   : > { %6678 = vmatpush2.bf16.msra.mxu0 %v9102_v31  ;;  %6748 = vmatpush1.bf16.msra.mxu1 %v8512_v53  ;;  %v8665_v31 = vcombine.high %v2555_v13, %v2559_v38  ;;  %v2471_v53 = vld [vmem:[#allocation13 + $0x2e8] sm:$0xff] }
 0x4a0   : > { %6679 = vmatprep.subr.bf16.mxu0 %v9095_v32  ;;  %6749 = vmatprep.subr.bf16.mxu1 %v8505_v15  ;;  %v2547_v32 = vld [vmem:[#allocation13 + $0x548] sm:$0xff]  ;;  %v8577_v50 = vcombine.high %v2467_v62, %v2471_v53 }
 0x4a1   : > { %v2551_v15 = vld [vmem:[#allocation13 + $0x568] sm:$0xff] }
 0x4a2   : > { %v8657_v43 = vcombine.high %v2547_v32, %v2551_v15  ;;  %v8656_v46 = vcombine.low %v2547_v32, %v2551_v15  ;;  %v2627_v13 = vld [vmem:[#allocation13 + $0x7c8] sm:$0xff] }
 0x4a3   : > { %6680 = vmatpush2.bf16.msra.mxu0 %v9094_v41  ;;  %6750 = vmatpush1.bf16.msra.mxu1 %v8504_v33  ;;  %v2463_v41 = vld [vmem:[#allocation13 + $0x2a8] sm:$0xff] }
 0x4a4   : > { %6681 = vmatprep.subr.bf16.mxu0 %v9087_v35  ;;  %6751 = vmatprep.subr.bf16.mxu1 %v8497_v12  ;;  %v2539_v33 = vld [vmem:[#allocation13 + $0x508] sm:$0xff]  ;;  %v8576_v12 = vcombine.low %v2467_v62, %v2471_v53  ;;  %v8569_v56 = vcombine.high %v2459_v27, %v2463_v41 }
 0x4a5   : > { %v2543_v35 = vld [vmem:[#allocation13 + $0x528] sm:$0xff] }
 0x4a6   : > { %v8649_v25 = vcombine.high %v2539_v33, %v2543_v35  ;;  %v8648_v0 = vcombine.low %v2539_v33, %v2543_v35  ;;  %v2619_v15 = vld [vmem:[#allocation13 + $0x788] sm:$0xff] }
 0x4a7   : > { %6682 = vmatpush2.bf16.msra.mxu0 %v9086_v52  ;;  %6752 = vmatpush1.bf16.msra.mxu1 %v8496_v7  ;;  %v2455_v52 = vld [vmem:[#allocation13 + $0x268] sm:$0xff] }
 0x4a8   : > { %6683 = vmatprep.subr.bf16.mxu0 %v9079_v8  ;;  %6753 = vmatprep.subr.bf16.mxu1 %v8489_v5  ;;  %v2531_v7 = vld [vmem:[#allocation13 + $0x4c8] sm:$0xff]  ;;  %v8568_v5 = vcombine.low %v2459_v27, %v2463_v41  ;;  %v8561_v30 = vcombine.high %v2451_v61, %v2455_v52 }
 0x4a9   : > { %v2535_v8 = vld [vmem:[#allocation13 + $0x4e8] sm:$0xff] }
 0x4aa   : > { %v8641_v63 = vcombine.high %v2531_v7, %v2535_v8  ;;  %v8640_v36 = vcombine.low %v2531_v7, %v2535_v8  ;;  %v2611_v35 = vld [vmem:[#allocation13 + $0x748] sm:$0xff] }
 0x4ab   : > { %6684 = vmatpush2.bf16.msra.mxu0 %v9078_v1  ;;  %6754 = vmatpush1.bf16.msra.mxu1 %v8488_v57  ;;  %v2447_v1 = vld [vmem:[#allocation13 + $0x228] sm:$0xff] }
 0x4ac   : > { %6685 = vmatprep.subr.bf16.mxu0 %v9071_v58  ;;  %6755 = vmatprep.subr.bf16.mxu1 %v8609_v48  ;;  %v2523_v57 = vld [vmem:[#allocation13 + $0x488] sm:$0xff]  ;;  %v8560_v48 = vcombine.low %v2451_v61, %v2455_v52  ;;  %v8553_v42 = vcombine.high %v2443_v3, %v2447_v1 }
 0x4ad   : > { %v2527_v58 = vld [vmem:[#allocation13 + $0x4a8] sm:$0xff] }
 0x4ae   : > { %v8633_v49 = vcombine.high %v2523_v57, %v2527_v58  ;;  %v8632_v21 = vcombine.low %v2523_v57, %v2527_v58  ;;  %v2603_v8 = vld [vmem:[#allocation13 + $0x708] sm:$0xff] }
 0x4af   : > { %6686 = vmatpush2.bf16.msra.mxu0 %v9070_v47  ;;  %6756 = vmatpush2.bf16.msra.mxu1 %v8608_v55  ;;  %v2519_v47 = vld [vmem:[#allocation13 + $0x468] sm:$0xff] }
 0x4b0   : > { %6687 = vmatprep.subr.bf16.mxu0 %v9063_v10  ;;  %6757 = vmatprep.subr.bf16.mxu1 %v8601_v59  ;;  %v2691_v55 = vld [vmem:[#allocation13 + $0x9c8] sm:$0xff]  ;;  %v8552_v59 = vcombine.low %v2443_v3, %v2447_v1  ;;  %v8625_v37 = vcombine.high %v2515_v34, %v2519_v47 }
 0x4b1   : > { %v2695_v10 = vld [vmem:[#allocation13 + $0x9e8] sm:$0xff] }
 0x4b2   : > { %v8801_v9 = vcombine.high %v2691_v55, %v2695_v10  ;;  %v8800_v14 = vcombine.low %v2691_v55, %v2695_v10  ;;  %v2595_v58 = vld [vmem:[#allocation13 + $0x6c8] sm:$0xff] }
 0x4b3   : > { %6688 = vmatpush2.bf16.msra.mxu0 %v9062_v22  ;;  %6758 = vmatpush2.bf16.msra.mxu1 %v8600_v4  ;;  %v2511_v22 = vld [vmem:[#allocation13 + $0x428] sm:$0xff] }
 0x4b4   : > { %6759 = vmatprep.subr.bf16.mxu1 %v8593_v40  ;;  %6780 = vmatprep.subr.bf16.mxu0 %v8673_v44  ;;  %v2683_v4 = vld [vmem:[#allocation13 + $0x988] sm:$0xff]  ;;  %v8624_v44 = vcombine.low %v2515_v34, %v2519_v47  ;;  %v8617_v60 = vcombine.high %v2507_v26, %v2511_v22  ;;  %v8616_v62 = vcombine.low %v2507_v26, %v2511_v22 }
 0x4b5   : > { %v2687_v40 = vld [vmem:[#allocation13 + $0x9a8] sm:$0xff] }
 0x4b6   : > { %6690 = vmatmul.mubr.bf16.vlgmr.msra.gmra.mxu0 %v11229_v28  ;;  %v8793_v38 = vcombine.high %v2683_v4, %v2687_v40  ;;  %v2587_v10 = vld [vmem:[#allocation13 + $0x688] sm:$0xff] }
 0x4b7   : > { %6760 = vmatpush2.bf16.msra.mxu1 %v8592_v17  ;;  %6781 = vmatpush1.bf16.msra.mxu0 %v8672_v54  ;;  %v2631_v17 = vld [vmem:[#allocation13 + $0x7e8] sm:$0xff] }
 0x4b8   : > { %6812 = vmatprep.mubr.bf16.mxu0 %v11180_v20  ;;  %6761 = vmatprep.subr.bf16.mxu1 %v8585_v19  ;;  %v2675_v54 = vld [vmem:[#allocation13 + $0x948] sm:$0xff]  ;;  %v8737_v53 = vcombine.high %v2627_v13, %v2631_v17 }
 0x4b9   : > { %6782 = vmatprep.subr.bf16.mxu0 %v8665_v31  ;;  %v2679_v19 = vld [vmem:[#allocation13 + $0x968] sm:$0xff]  ;;  %v8792_v31 = vcombine.low %v2683_v4, %v2687_v40 }
 0x4ba   : > { %v8785_v32 = vcombine.high %v2675_v54, %v2679_v19  ;;  %v8784_v27 = vcombine.low %v2675_v54, %v2679_v19  ;;  %v2579_v40 = vld [vmem:[#allocation13 + $0x648] sm:$0xff] }
 0x4bb   : > { %6762 = vmatpush2.bf16.msra.mxu1 %v8584_v18  ;;  %6783 = vmatpush1.bf16.msra.mxu0 %v8664_v45  ;;  %v2623_v18 = vld [vmem:[#allocation13 + $0x7a8] sm:$0xff] }
 0x4bc   : > { %6763 = vmatprep.subr.bf16.mxu1 %v8577_v50  ;;  %6784 = vmatprep.subr.bf16.mxu0 %v8657_v43  ;;  %v2667_v45 = vld [vmem:[#allocation13 + $0x908] sm:$0xff]  ;;  %v8736_v43 = vcombine.low %v2627_v13, %v2631_v17  ;;  %v8729_v41 = vcombine.high %v2619_v15, %v2623_v18 }
 0x4bd   : > { %v2671_v50 = vld [vmem:[#allocation13 + $0x928] sm:$0xff] }
 0x4be   : > { %v8777_v33 = vcombine.high %v2667_v45, %v2671_v50  ;;  %v8776_v61 = vcombine.low %v2667_v45, %v2671_v50  ;;  %v2571_v19 = vld [vmem:[#allocation13 + $0x608] sm:$0xff] }
 0x4bf   : > { %6764 = vmatpush2.bf16.msra.mxu1 %v8576_v12  ;;  %6785 = vmatpush1.bf16.msra.mxu0 %v8656_v46  ;;  %v2615_v12 = vld [vmem:[#allocation13 + $0x768] sm:$0xff] }
 0x4c0   : > { %6765 = vmatprep.subr.bf16.mxu1 %v8569_v56  ;;  %6786 = vmatprep.subr.bf16.mxu0 %v8649_v25  ;;  %v2659_v46 = vld [vmem:[#allocation13 + $0x8c8] sm:$0xff]  ;;  %v8728_v25 = vcombine.low %v2619_v15, %v2623_v18  ;;  %v8721_v52 = vcombine.high %v2611_v35, %v2615_v12 }
 0x4c1   : > { %v2663_v56 = vld [vmem:[#allocation13 + $0x8e8] sm:$0xff] }
 0x4c2   : > { %v8769_v7 = vcombine.high %v2659_v46, %v2663_v56  ;;  %v8768_v3 = vcombine.low %v2659_v46, %v2663_v56  ;;  %v2739_v50 = vld [vmem:[#allocation13 + $0xb48] sm:$0xff] }
 0x4c3   : > { %6766 = vmatpush2.bf16.msra.mxu1 %v8568_v5  ;;  %6787 = vmatpush1.bf16.msra.mxu0 %v8648_v0  ;;  %v2607_v5 = vld [vmem:[#allocation13 + $0x728] sm:$0xff] }
 0x4c4   : > { %6767 = vmatprep.subr.bf16.mxu1 %v8561_v30  ;;  %6788 = vmatprep.subr.bf16.mxu0 %v8641_v63  ;;  %v2651_v0 = vld [vmem:[#allocation13 + $0x888] sm:$0xff]  ;;  %v8720_v63 = vcombine.low %v2611_v35, %v2615_v12  ;;  %v8713_v1 = vcombine.high %v2603_v8, %v2607_v5 }
 0x4c5   : > { %v2655_v30 = vld [vmem:[#allocation13 + $0x8a8] sm:$0xff] }
 0x4c6   : > { %v8761_v57 = vcombine.high %v2651_v0, %v2655_v30  ;;  %v8760_v34 = vcombine.low %v2651_v0, %v2655_v30 }
 0x4c7   : > { %6768 = vmatpush2.bf16.msra.mxu1 %v8560_v48  ;;  %6789 = vmatpush1.bf16.msra.mxu0 %v8640_v36  ;;  %v2599_v48 = vld [vmem:[#allocation13 + $0x6e8] sm:$0xff] }
 0x4c8   : > { %6769 = vmatprep.subr.bf16.mxu1 %v8553_v42  ;;  %6790 = vmatprep.subr.bf16.mxu0 %v8633_v49  ;;  %v2643_v36 = vld [vmem:[#allocation13 + $0x848] sm:$0xff]  ;;  %v8712_v49 = vcombine.low %v2603_v8, %v2607_v5  ;;  %v8705_v47 = vcombine.high %v2595_v58, %v2599_v48 }
 0x4c9   : > { %v2647_v42 = vld [vmem:[#allocation13 + $0x868] sm:$0xff] }
 0x4ca   : > { %v8753_v55 = vcombine.high %v2643_v36, %v2647_v42  ;;  %v8752_v26 = vcombine.low %v2643_v36, %v2647_v42  ;;  %v2815_v8 = vld [vmem:[#allocation13 + $0xda8] sm:$0xff]  ;;  %v3050_v36 = vld [vmem:[#allocation14] sm:$0xff] }
 0x4cb   : > { %6770 = vmatpush2.bf16.msra.mxu1 %v8552_v59  ;;  %6791 = vmatpush1.bf16.msra.mxu0 %v8632_v21  ;;  %v2591_v59 = vld [vmem:[#allocation13 + $0x6a8] sm:$0xff] }
 0x4cc   : > { %6792 = vmatprep.subr.bf16.mxu0 %v8625_v37  ;;  %6821 = vmatprep.subr.bf16.mxu1 %v8801_v9  ;;  %v2635_v21 = vld [vmem:[#allocation13 + $0x808] sm:$0xff]  ;;  %v8704_v9 = vcombine.low %v2595_v58, %v2599_v48  ;;  %v8697_v22 = vcombine.high %v2587_v10, %v2591_v59  ;;  %v8696_v13 = vcombine.low %v2587_v10, %v2591_v59 }
 0x4cd   : > { %v2639_v37 = vld [vmem:[#allocation13 + $0x828] sm:$0xff] }
 0x4ce   : > { %6772 = vmatmul.mubr.bf16.vlgmr.msra.gmra.mxu1 %v11169_v23  ;;  %v8745_v4 = vcombine.high %v2635_v21, %v2639_v37  ;;  %v2803_v58 = vld [vmem:[#allocation13 + $0xd48] sm:$0xff] }
 0x4cf   : > { %6793 = vmatpush1.bf16.msra.mxu0 %v8624_v44  ;;  %6822 = vmatpush1.bf16.msra.mxu1 %v8800_v14  ;;  %v2583_v44 = vld [vmem:[#allocation13 + $0x668] sm:$0xff] }
 0x4d0   : > { %6853 = vmatprep.mubr.bf16.mxu1 %v11204_v2  ;;  %6794 = vmatprep.subr.bf16.mxu0 %v8617_v60  ;;  %v2755_v14 = vld [vmem:[#allocation13 + $0xbc8] sm:$0xff]  ;;  %v8689_v17 = vcombine.high %v2579_v40, %v2583_v44 }
 0x4d1   : > { %6823 = vmatprep.subr.bf16.mxu1 %v8793_v38  ;;  %v2759_v60 = vld [vmem:[#allocation13 + $0xbe8] sm:$0xff]  ;;  %v8744_v38 = vcombine.low %v2635_v21, %v2639_v37 }
 0x4d2   : > { %v8865_v54 = vcombine.high %v2755_v14, %v2759_v60  ;;  %v8864_v15 = vcombine.low %v2755_v14, %v2759_v60  ;;  %v2807_v48 = vld [vmem:[#allocation13 + $0xd68] sm:$0xff] }
 0x4d3   : > { %6795 = vmatpush1.bf16.msra.mxu0 %v8616_v62  ;;  %6824 = vmatpush1.bf16.msra.mxu1 %v8792_v31  ;;  %v2575_v62 = vld [vmem:[#allocation13 + $0x628] sm:$0xff]  ;;  %v8913_v59 = vcombine.high %v2803_v58, %v2807_v48  ;;  %v8912_v14 = vcombine.low %v2803_v58, %v2807_v48 }
 0x4d4   : > { %6796 = vmatprep.subr.bf16.mxu0 %v8737_v53  ;;  %6825 = vmatprep.subr.bf16.mxu1 %v8785_v32  ;;  %v2747_v31 = vld [vmem:[#allocation13 + $0xb88] sm:$0xff]  ;;  %v8688_v32 = vcombine.low %v2579_v40, %v2583_v44  ;;  %v8681_v18 = vcombine.high %v2571_v19, %v2575_v62  ;;  %v8680_v35 = vcombine.low %v2571_v19, %v2575_v62 }
 0x4d5   : > { %v2751_v53 = vld [vmem:[#allocation13 + $0xba8] sm:$0xff] }
 0x4d6   : > { %v8857_v45 = vcombine.high %v2747_v31, %v2751_v53  ;;  %v8856_v12 = vcombine.low %v2747_v31, %v2751_v53  ;;  %v2715_v21 = vld [vmem:[#allocation13 + $0xa88] sm:$0xff] }
 0x4d7   : > { %6797 = vmatpush2.bf16.msra.mxu0 %v8736_v43  ;;  %6826 = vmatpush1.bf16.msra.mxu1 %v8784_v27  ;;  %v2743_v43 = vld [vmem:[#allocation13 + $0xb68] sm:$0xff] }
 0x4d8   : > { %6798 = vmatprep.subr.bf16.mxu0 %v8729_v41  ;;  %6827 = vmatprep.subr.bf16.mxu1 %v8777_v33  ;;  %v2819_v27 = vld [vmem:[#allocation13 + $0xdc8] sm:$0xff]  ;;  %v3052_v33 = vlaneseq  ;;  %v8849_v46 = vcombine.high %v2739_v50, %v2743_v43  ;;  %v8848_v5 = vcombine.low %v2739_v50, %v2743_v43 }
 0x4d9   : > { %v2823_v41 = vld [vmem:[#allocation13 + $0xde8] sm:$0xff] }
 0x4da   : > { %v8929_v56 = vcombine.high %v2819_v27, %v2823_v41  ;;  %v8928_v0 = vcombine.low %v2819_v27, %v2823_v41  ;;  %v2711_v19 = vld [vmem:[#allocation13 + $0xa68] sm:$0xff] }
 0x4db   : > { %6799 = vmatpush2.bf16.msra.mxu0 %v8728_v25  ;;  %6828 = vmatpush1.bf16.msra.mxu1 %v8776_v61  ;;  %v11235_v25 = vshrl.u32 %v3052_v33, 7  ;;  %v2731_v61 = vld [vmem:[#allocation13 + $0xb08] sm:$0xff] }
 0x4dc   : > { %6800 = vmatprep.subr.bf16.mxu0 %v8721_v52  ;;  %6829 = vmatprep.subr.bf16.mxu1 %v8769_v7  ;;  %v2735_v52 = vld [vmem:[#allocation13 + $0xb28] sm:$0xff] }
 0x4dd   : > { %v2811_v7 = vld [vmem:[#allocation13 + $0xd88] sm:$0xff]  ;;  %v8841_v30 = vcombine.high %v2731_v61, %v2735_v52 }
 0x4de   : > { %v2787_v62 = vld [vmem:[#allocation13 + $0xcc8] sm:$0xff] }
 0x4df   : > { %6801 = vmatpush2.bf16.msra.mxu0 %v8720_v63  ;;  %6830 = vmatpush1.bf16.msra.mxu1 %v8768_v3  ;;  %v2723_v63 = vld [vmem:[#allocation13 + $0xac8] sm:$0xff]  ;;  %v3054_v3 = vsub.s32 0, %v11235_v25 }
 0x4e0   : > { %6802 = vmatprep.subr.bf16.mxu0 %v8713_v1  ;;  %6831 = vmatprep.subr.bf16.mxu1 %v8761_v57  ;;  %v8921_v1 = vcombine.high %v2811_v7, %v2815_v8  ;;  %v2727_v57 = vld [vmem:[#allocation13 + $0xae8] sm:$0xff] }
 0x4e1   : > { %v8833_v10 = vcombine.high %v2723_v63, %v2727_v57  ;;  %v3055_v37 = vrot.slane %v3050_v36, %v3054_v3  ;;  %v8832_v44 = vcombine.low %v2723_v63, %v2727_v57  ;;  %v2791_v31 = vld [vmem:[#allocation13 + $0xce8] sm:$0xff] }
 0x4e2   : > { %v8897_v27 = vcombine.high %v2787_v62, %v2791_v31  ;;  %v2699_v41 = vld [vmem:[#allocation13 + $0xa08] sm:$0xff] }
 0x4e3   : > { %6803 = vmatpush2.bf16.msra.mxu0 %v8712_v49  ;;  %6832 = vmatpush1.bf16.msra.mxu1 %v8760_v34  ;;  %v3058_v49 = vsub.s32 1, %v11235_v25  ;;  %v8840_v34 = vcombine.low %v2731_v61, %v2735_v52  ;;  %v8896_v52 = vcombine.low %v2787_v62, %v2791_v31  ;;  %v2947_v63 = vld [vmem:[#allocation13 + $0x11c8] sm:$0xff] }
 0x4e4   : > { %6804 = vmatprep.subr.bf16.mxu0 %v8705_v47  ;;  %6833 = vmatprep.subr.bf16.mxu1 %v8753_v55  ;;  %v8920_v47 = vcombine.low %v2811_v7, %v2815_v8  ;;  %v2951_v3 = vld [vmem:[#allocation13 + $0x11e8] sm:$0xff] }
 0x4e5   : > { %v3059_v40 = vrot.slane %v3050_v36, %v3058_v49  ;;  %v9057_v48 = vcombine.high %v2947_v63, %v2951_v3  ;;  %v2763_v36 = vld [vmem:[#allocation13 + $0xc08] sm:$0xff] }
 0x4e6   : > { %v2939_v49 = vld [vmem:[#allocation13 + $0x1188] sm:$0xff] }
 0x4e7   : > { %6805 = vmatpush2.bf16.msra.mxu0 %v8704_v9  ;;  %6834 = vmatpush1.bf16.msra.mxu1 %v8752_v26  ;;  %v2719_v9 = vld [vmem:[#allocation13 + $0xaa8] sm:$0xff] }
 0x4e8   : > { %6806 = vmatprep.subr.bf16.mxu0 %v8697_v22  ;;  %6835 = vmatprep.subr.bf16.mxu1 %v8745_v4  ;;  %v2795_v26 = vld [vmem:[#allocation13 + $0xd08] sm:$0xff] }
 0x4e9   : > { %v2799_v22 = vld [vmem:[#allocation13 + $0xd28] sm:$0xff] }
 0x4ea   : > { %v2867_v31 = vld [vmem:[#allocation13 + $0xf48] sm:$0xff] }
 0x4eb   : > { %6807 = vmatpush2.bf16.msra.mxu0 %v8696_v13  ;;  %6836 = vmatpush1.bf16.msra.mxu1 %v8744_v38  ;;  %v8825_v13 = vcombine.high %v2715_v21, %v2719_v9  ;;  %v8905_v38 = vcombine.high %v2795_v26, %v2799_v22 }
 0x4ec   : > { %6808 = vmatprep.subr.bf16.mxu0 %v8689_v17  ;;  %6837 = vmatprep.subr.bf16.mxu1 %v8865_v54  ;;  %v2707_v17 = vld [vmem:[#allocation13 + $0xa48] sm:$0xff] }
 0x4ed   : > { %v8817_v43 = vcombine.high %v2707_v17, %v2711_v19  ;;  %v8816_v61 = vcombine.low %v2707_v17, %v2711_v19 }
 0x4ef   : > { %6809 = vmatpush2.bf16.msra.mxu0 %v8688_v32  ;;  %6838 = vmatpush2.bf16.msra.mxu1 %v8864_v15  ;;  %v8824_v32 = vcombine.low %v2715_v21, %v2719_v9  ;;  %v2931_v9 = vld [vmem:[#allocation13 + $0x1148] sm:$0xff] }
 0x4f0   : > { %6810 = vmatprep.subr.bf16.mxu0 %v8681_v18  ;;  %6839 = vmatprep.subr.bf16.mxu1 %v8857_v45  ;;  %v8904_v45 = vcombine.low %v2795_v26, %v2799_v22  ;;  %v2935_v26 = vld [vmem:[#allocation13 + $0x1168] sm:$0xff] }
 0x4f3   : > { %6811 = vmatpush2.bf16.msra.mxu0 %v8680_v35  ;;  %6840 = vmatpush2.bf16.msra.mxu1 %v8856_v12  ;;  %v2703_v35 = vld [vmem:[#allocation13 + $0xa28] sm:$0xff] }
 0x4f4   : > { %6841 = vmatprep.subr.bf16.mxu1 %v8849_v46  ;;  %6862 = vmatprep.subr.bf16.mxu0 %v8929_v56  ;;  %v2779_v12 = vld [vmem:[#allocation13 + $0xc88] sm:$0xff]  ;;  %v8809_v8 = vcombine.high %v2699_v41, %v2703_v35 }
 0x4f5   : > { %v2783_v46 = vld [vmem:[#allocation13 + $0xca8] sm:$0xff] }
 0x4f6   : > { %6813 = vmatmul.mubr.bf16.vlgmr.msra.gmra.mxu0 %v11178_v24  ;;  %v6527_v42 = vpop.f32.mrf.mxu0  ;;  %v8888_v57 = vcombine.low %v2779_v12, %v2783_v46 }
 0x4f7   : > { %6842 = vmatpush2.bf16.msra.mxu1 %v8848_v5  ;;  %6863 = vmatpush1.bf16.msra.mxu0 %v8928_v0  ;;  %v6528_v54 = vadd.f32 %v6527_v42, %v3055_v37  ;;  %v8889_v5 = vcombine.high %v2779_v12, %v2783_v46  ;;  %v2771_v0 = vld [vmem:[#allocation13 + $0xc48] sm:$0xff] }
 0x4f8   : > { %6894 = vmatprep.mubr.bf16.mxu0 %v11196_v11  ;;  %v6529_v55 = vpop.f32.mrf.mxu0  ;;  %6843 = vmatprep.subr.bf16.mxu1 %v8841_v30  ;;  %v2775_v30 = vld [vmem:[#allocation13 + $0xc68] sm:$0xff] }
 0x4f9   : > { %6864 = vmatprep.subr.bf16.mxu0 %v8921_v1  ;;  %v6530_v15 = vadd.f32 %v6529_v55, %v3059_v40  ;;  %v8808_v1 = vcombine.low %v2699_v41, %v2703_v35  ;;  %v8881_v58 = vcombine.high %v2771_v0, %v2775_v30  ;;  %v2767_v42 = vld [vmem:[#allocation13 + $0xc28] sm:$0xff]  ;;  %v9056_v55 = vcombine.low %v2947_v63, %v2951_v3 }
 0x4fa   : > { %v6531_v4 = vpop.f32.mrf.mxu0  ;;  %v2887_v37 = vld [vmem:[#allocation13 + $0xfe8] sm:$0xff]  ;;  %v8872_v22 = vcombine.low %v2763_v36, %v2767_v42 }
 0x4fb   : > { %6844 = vmatpush2.bf16.msra.mxu1 %v8840_v34  ;;  %6865 = vmatpush1.bf16.msra.mxu0 %v8920_v47  ;;  %v2943_v34 = vld [vmem:[#allocation13 + $0x11a8] sm:$0xff]  ;;  %v8880_v47 = vcombine.low %v2771_v0, %v2775_v30 }
 0x4fc   : > { %v6532_v60 = vpop.f32.mrf.mxu0  ;;  %6845 = vmatprep.subr.bf16.mxu1 %v8833_v10  ;;  %6866 = vmatprep.subr.bf16.mxu0 %v8913_v59  ;;  %v8873_v10 = vcombine.high %v2763_v36, %v2767_v42  ;;  %v2883_v59 = vld [vmem:[#allocation13 + $0xfc8] sm:$0xff]  ;;  %v9049_v21 = vcombine.high %v2939_v49, %v2943_v34  ;;  %v9048_v4 = vcombine.low %v2939_v49, %v2943_v34 }
 0x4fd   : > { %v8993_v40 = vcombine.high %v2883_v59, %v2887_v37  ;;  %v2879_v60 = vld [vmem:[#allocation13 + $0xfa8] sm:$0xff]  ;;  %v8992_v17 = vcombine.low %v2883_v59, %v2887_v37 }
 0x4fe   : > { %v6568_v53 = vpop.f32.mrf.mxu1  ;;  %v2859_v41 = vld [vmem:[#allocation13 + $0xf08] sm:$0xff] }
 0x4ff   : > { %v11241_v18 = vadd.f32 %v6568_v53, %v6528_v54  ;;  %6846 = vmatpush2.bf16.msra.mxu1 %v8832_v44  ;;  %6867 = vmatpush1.bf16.msra.mxu0 %v8912_v14  ;;  %v9041_v44 = vcombine.high %v2931_v9, %v2935_v26  ;;  %v2875_v14 = vld [vmem:[#allocation13 + $0xf88] sm:$0xff]  ;;  %v9040_v54 = vcombine.low %v2931_v9, %v2935_v26 }
 0x500   : > { %v6570_v50 = vpop.f32.mrf.mxu1  ;;  %6847 = vmatprep.subr.bf16.mxu1 %v8825_v13  ;;  %6868 = vmatprep.subr.bf16.mxu0 %v8905_v38  ;;  %v2923_v13 = vld [vmem:[#allocation13 + $0x1108] sm:$0xff]  ;;  %v8985_v19 = vcombine.high %v2875_v14, %v2879_v60 }
 0x501   : > { %v11243_v33 = vadd.f32 %v6570_v50, %v6530_v15  ;;  %v2927_v38 = vld [vmem:[#allocation13 + $0x1128] sm:$0xff] }
 0x502   : > { %v6572_v56 = vpop.f32.mrf.mxu1  ;;  %v9033_v62 = vcombine.high %v2923_v13, %v2927_v38  ;;  %v2871_v53 = vld [vmem:[#allocation13 + $0xf68] sm:$0xff]  ;;  %v9032_v50 = vcombine.low %v2923_v13, %v2927_v38 }
 0x503   : > { %6848 = vmatpush2.bf16.msra.mxu1 %v8824_v32  ;;  %6869 = vmatpush1.bf16.msra.mxu0 %v8904_v45  ;;  %v2915_v32 = vld [vmem:[#allocation13 + $0x10c8] sm:$0xff]  ;;  %v8984_v45 = vcombine.low %v2875_v14, %v2879_v60  ;;  %v8976_v56 = vcombine.low %v2867_v31, %v2871_v53 }
 0x504   : > { %v6573_v7 = vpop.f32.mrf.mxu1  ;;  %6849 = vmatprep.subr.bf16.mxu1 %v8817_v43  ;;  %6870 = vmatprep.subr.bf16.mxu0 %v8897_v27  ;;  %v2919_v15 = vld [vmem:[#allocation13 + $0x10e8] sm:$0xff]  ;;  %v8977_v43 = vcombine.high %v2867_v31, %v2871_v53 }
 0x505   : > { %v9025_v27 = vcombine.high %v2915_v32, %v2919_v15  ;;  %v2863_v35 = vld [vmem:[#allocation13 + $0xf28] sm:$0xff] }
 0x506   : > { %v2907_v12 = vld [vmem:[#allocation13 + $0x1088] sm:$0xff]  ;;  %v8968_v63 = vcombine.low %v2859_v41, %v2863_v35 }
 0x507   : > { %6850 = vmatpush2.bf16.msra.mxu1 %v8816_v61  ;;  %6871 = vmatpush1.bf16.msra.mxu0 %v8896_v52  ;;  %v2911_v46 = vld [vmem:[#allocation13 + $0x10a8] sm:$0xff]  ;;  %v9024_v61 = vcombine.low %v2915_v32, %v2919_v15  ;;  %v8969_v52 = vcombine.high %v2859_v41, %v2863_v35 }
 0x508   : > { %6851 = vmatprep.subr.bf16.mxu1 %v8809_v8  ;;  %6872 = vmatprep.subr.bf16.mxu0 %v8889_v5  ;;  %v9017_v7 = vcombine.high %v2907_v12, %v2911_v46  ;;  %v2851_v8 = vld [vmem:[#allocation13 + $0xec8] sm:$0xff]  ;;  %v9016_v3 = vcombine.low %v2907_v12, %v2911_v46 }
 0x509   : > { %v2855_v5 = vld [vmem:[#allocation13 + $0xee8] sm:$0xff] }
 0x50a   : > { %v2899_v0 = vld [vmem:[#allocation13 + $0x1048] sm:$0xff]  ;;  %v8960_v49 = vcombine.low %v2851_v8, %v2855_v5 }
 0x50b   : > { %6852 = vmatpush2.bf16.msra.mxu1 %v8808_v1  ;;  %6873 = vmatpush1.bf16.msra.mxu0 %v8888_v57  ;;  %v2903_v30 = vld [vmem:[#allocation13 + $0x1068] sm:$0xff]  ;;  %v8961_v1 = vcombine.high %v2851_v8, %v2855_v5 }
 0x50c   : > { %6874 = vmatprep.subr.bf16.mxu0 %v8881_v58  ;;  %6903 = vmatprep.subr.bf16.mxu1 %v9057_v48  ;;  %v9009_v57 = vcombine.high %v2899_v0, %v2903_v30  ;;  %v2843_v58 = vld [vmem:[#allocation13 + $0xe88] sm:$0xff]  ;;  %v9008_v34 = vcombine.low %v2899_v0, %v2903_v30 }
 0x50d   : > { %v2847_v48 = vld [vmem:[#allocation13 + $0xea8] sm:$0xff] }
 0x50e   : > { %6854 = vmatmul.mubr.bf16.vlgmr.msra.gmra.mxu1 %v11211_v29  ;;  %v2891_v36 = vld [vmem:[#allocation13 + $0x1008] sm:$0xff]  ;;  %v8952_v9 = vcombine.low %v2843_v58, %v2847_v48 }
 0x50f   : > { %6875 = vmatpush1.bf16.msra.mxu0 %v8880_v47  ;;  %6904 = vmatpush1.bf16.msra.mxu1 %v9056_v55  ;;  %v2895_v42 = vld [vmem:[#allocation13 + $0x1028] sm:$0xff]  ;;  %v8953_v47 = vcombine.high %v2843_v58, %v2847_v48 }
 0x510   : > { %6935 = vmatprep.mubr.bf16.mxu1 %v11216_v39  ;;  %6876 = vmatprep.subr.bf16.mxu0 %v8873_v10  ;;  %v9001_v55 = vcombine.high %v2891_v36, %v2895_v42  ;;  %v2835_v10 = vld [vmem:[#allocation13 + $0xe48] sm:$0xff]  ;;  %v9000_v26 = vcombine.low %v2891_v36, %v2895_v42 }
 0x511   : > { %6905 = vmatprep.subr.bf16.mxu1 %v9049_v21  ;;  %v2839_v59 = vld [vmem:[#allocation13 + $0xe68] sm:$0xff] }
 0x512   : > { %v3011_v21 = vld [vmem:[#allocation13 + $0x13c8] sm:$0xff]  ;;  %v8944_v13 = vcombine.low %v2835_v10, %v2839_v59 }
 0x513   : > { %6877 = vmatpush1.bf16.msra.mxu0 %v8872_v22  ;;  %6906 = vmatpush1.bf16.msra.mxu1 %v9048_v4  ;;  %v3015_v37 = vld [vmem:[#allocation13 + $0x13e8] sm:$0xff]  ;;  %v8945_v22 = vcombine.high %v2835_v10, %v2839_v59 }
 0x514   : > { %6878 = vmatprep.subr.bf16.mxu0 %v8993_v40  ;;  %6907 = vmatprep.subr.bf16.mxu1 %v9041_v44  ;;  %v9121_v4 = vcombine.high %v3011_v21, %v3015_v37  ;;  %v2827_v40 = vld [vmem:[#allocation13 + $0xe08] sm:$0xff]  ;;  %v9120_v38 = vcombine.low %v3011_v21, %v3015_v37 }
 0x515   : > { %v2831_v44 = vld [vmem:[#allocation13 + $0xe28] sm:$0xff] }
 0x516   : > { %v3003_v14 = vld [vmem:[#allocation13 + $0x1388] sm:$0xff]  ;;  %v8936_v32 = vcombine.low %v2827_v40, %v2831_v44 }
 0x517   : > { %6879 = vmatpush2.bf16.msra.mxu0 %v8992_v17  ;;  %6908 = vmatpush1.bf16.msra.mxu1 %v9040_v54  ;;  %v3007_v60 = vld [vmem:[#allocation13 + $0x13a8] sm:$0xff]  ;;  %v8937_v17 = vcombine.high %v2827_v40, %v2831_v44 }
 0x518   : > { %6880 = vmatprep.subr.bf16.mxu0 %v8985_v19  ;;  %6909 = vmatprep.subr.bf16.mxu1 %v9033_v62  ;;  %v9113_v54 = vcombine.high %v3003_v14, %v3007_v60  ;;  %v2995_v19 = vld [vmem:[#allocation13 + $0x1348] sm:$0xff]  ;;  %v9112_v15 = vcombine.low %v3003_v14, %v3007_v60 }
 0x519   : > { %v2999_v62 = vld [vmem:[#allocation13 + $0x1368] sm:$0xff] }
 0x51a   : > { %v3043_v31 = vld [vmem:[#allocation13 + $0x14c8] sm:$0xff]  ;;  %v9104_v12 = vcombine.low %v2995_v19, %v2999_v62 }
 0x51b   : > { %6881 = vmatpush2.bf16.msra.mxu0 %v8984_v45  ;;  %6910 = vmatpush1.bf16.msra.mxu1 %v9032_v50  ;;  %v3047_v53 = vld [vmem:[#allocation13 + $0x14e8] sm:$0xff]  ;;  %v9105_v45 = vcombine.high %v2995_v19, %v2999_v62  ;;  %v2428_v62 = vld [vmem:[#allocation13 + $0x190] sm:$0xff] }
 0x51c   : > { %6882 = vmatprep.subr.bf16.mxu0 %v8977_v43  ;;  %6911 = vmatprep.subr.bf16.mxu1 %v9025_v27  ;;  %v9153_v50 = vcombine.high %v3043_v31, %v3047_v53  ;;  %v2987_v43 = vld [vmem:[#allocation13 + $0x1308] sm:$0xff]  ;;  %v9152_v46 = vcombine.low %v3043_v31, %v3047_v53  ;;  %v2432_v31 = vld [vmem:[#allocation13 + $0x1b0] sm:$0xff] }
 0x51d   : > { %v2991_v27 = vld [vmem:[#allocation13 + $0x1328] sm:$0xff] }
 0x51e   : > { %v3035_v41 = vld [vmem:[#allocation13 + $0x1488] sm:$0xff] }
 0x51f   : > { %6883 = vmatpush2.bf16.msra.mxu0 %v8976_v56  ;;  %6912 = vmatpush1.bf16.msra.mxu1 %v9024_v61  ;;  %v3039_v35 = vld [vmem:[#allocation13 + $0x14a8] sm:$0xff]  ;;  %v9097_v56 = vcombine.high %v2987_v43, %v2991_v27 }
 0x520   : > { %6884 = vmatprep.subr.bf16.mxu0 %v8969_v52  ;;  %6913 = vmatprep.subr.bf16.mxu1 %v9017_v7  ;;  %v9145_v61 = vcombine.high %v3035_v41, %v3039_v35  ;;  %v2979_v52 = vld [vmem:[#allocation13 + $0x12c8] sm:$0xff] }
 0x521   : > { %v2983_v7 = vld [vmem:[#allocation13 + $0x12e8] sm:$0xff] }
 0x522   : > { %v3027_v8 = vld [vmem:[#allocation13 + $0x1448] sm:$0xff] }
 0x523   : > { %6885 = vmatpush2.bf16.msra.mxu0 %v8968_v63  ;;  %6914 = vmatpush1.bf16.msra.mxu1 %v9016_v3  ;;  %v3031_v5 = vld [vmem:[#allocation13 + $0x1468] sm:$0xff]  ;;  %v9096_v63 = vcombine.low %v2987_v43, %v2991_v27  ;;  %v9144_v3 = vcombine.low %v3035_v41, %v3039_v35  ;;  %v8539_v43 = vcombine.high %v2428_v62, %v2432_v31  ;;  %v2424_v27 = vld [vmem:[#allocation13 + $0x170] sm:$0xff] }
 0x524   : > { %6886 = vmatprep.subr.bf16.mxu0 %v8961_v1  ;;  %6915 = vmatprep.subr.bf16.mxu1 %v9009_v57  ;;  %v9089_v57 = vcombine.high %v2979_v52, %v2983_v7  ;;  %v9137_v58 = vcombine.high %v3027_v8, %v3031_v5  ;;  %v2971_v48 = vld [vmem:[#allocation13 + $0x1288] sm:$0xff]  ;;  %v2564_v41 = vld [vmem:[#allocation13 + $0x5d0] sm:$0xff] }
 0x525   : > { %v2975_v42 = vld [vmem:[#allocation13 + $0x12a8] sm:$0xff]  ;;  %v2568_v35 = vld [vmem:[#allocation13 + $0x5f0] sm:$0xff] }
 0x526   : > { %v9081_v59 = vcombine.high %v2971_v48, %v2975_v42  ;;  %v2963_v37 = vld [vmem:[#allocation13 + $0x1248] sm:$0xff]  ;;  %v9080_v40 = vcombine.low %v2971_v48, %v2975_v42  ;;  %v2548_v48 = vld [vmem:[#allocation13 + $0x550] sm:$0xff] }
 0x527   : > { %6887 = vmatpush2.bf16.msra.mxu0 %v8960_v49  ;;  %6916 = vmatpush1.bf16.msra.mxu1 %v9008_v34  ;;  %v3019_v49 = vld [vmem:[#allocation13 + $0x1408] sm:$0xff] }
 0x528   : > { %6888 = vmatprep.subr.bf16.mxu0 %v8953_v47  ;;  %6917 = vmatprep.subr.bf16.mxu1 %v9001_v55  ;;  %v3023_v34 = vld [vmem:[#allocation13 + $0x1428] sm:$0xff]  ;;  %v9136_v55 = vcombine.low %v3027_v8, %v3031_v5  ;;  %v2416_v8 = vld [vmem:[#allocation13 + $0x130] sm:$0xff] }
 0x529   : > { %v9129_v21 = vcombine.high %v3019_v49, %v3023_v34  ;;  %v9128_v44 = vcombine.low %v3019_v49, %v3023_v34  ;;  %v2556_v5 = vld [vmem:[#allocation13 + $0x590] sm:$0xff] }
 0x52b   : > { %6889 = vmatpush2.bf16.msra.mxu0 %v8952_v9  ;;  %6918 = vmatpush1.bf16.msra.mxu1 %v9000_v26  ;;  %v2967_v9 = vld [vmem:[#allocation13 + $0x1268] sm:$0xff]  ;;  %v2436_v26 = vld [vmem:[#allocation13 + $0x1d0] sm:$0xff] }
 0x52c   : > { %6890 = vmatprep.subr.bf16.mxu0 %v8945_v22  ;;  %6919 = vmatprep.subr.bf16.mxu1 %v9121_v4  ;;  %v2440_v22 = vld [vmem:[#allocation13 + $0x1f0] sm:$0xff]  ;;  %v9073_v60 = vcombine.high %v2963_v37, %v2967_v9  ;;  %v9072_v53 = vcombine.low %v2963_v37, %v2967_v9 }
 0x52d   : > { %v2544_v37 = vld [vmem:[#allocation13 + $0x530] sm:$0xff] }
 0x52f   : > { %6891 = vmatpush2.bf16.msra.mxu0 %v8944_v13  ;;  %6920 = vmatpush2.bf16.msra.mxu1 %v9120_v38  ;;  %v8547_v13 = vcombine.high %v2436_v26, %v2440_v22 }
 0x530   : > { %6892 = vmatprep.subr.bf16.mxu0 %v8937_v17  ;;  %6921 = vmatprep.subr.bf16.mxu1 %v9113_v54  ;;  %v2955_v17 = vld [vmem:[#allocation13 + $0x1208] sm:$0xff] }
 0x531   : > { %v2959_v54 = vld [vmem:[#allocation13 + $0x1228] sm:$0xff] }
 0x533   : > { %6893 = vmatpush2.bf16.msra.mxu0 %v8936_v32  ;;  %6922 = vmatpush2.bf16.msra.mxu1 %v9112_v15  ;;  %v8546_v32 = vcombine.low %v2436_v26, %v2440_v22 }
 0x534   : > { %6923 = vmatprep.subr.bf16.mxu1 %v9105_v45  ;;  %6952 = vmatprep.subr.bf16.mxu0 %v9153_v50  ;;  %v9065_v45 = vcombine.high %v2955_v17, %v2959_v54  ;;  %v2420_v50 = vld [vmem:[#allocation13 + $0x150] sm:$0xff] }
 0x536   : > { %v6609_v0 = vpop.f32.mrf.mxu0  ;;  %6895 = vmatmul.mubr.bf16.vlgmr.msra.gmra.mxu0 %v11221_v51 }
 0x537   : > { %v6610_v30 = vadd.f32 %v6609_v0, %v11241_v18  ;;  %6924 = vmatpush2.bf16.msra.mxu1 %v9104_v12  ;;  %6953 = vmatpush1.bf16.msra.mxu0 %v9152_v46  ;;  %v9088_v18 = vcombine.low %v2979_v52, %v2983_v7  ;;  %v11255_v12 = vld [vmem:[#allocation2 + $0x28] ss:$0 sps:$4 sm:$0xff]   ;;  %v9064_v46 = vcombine.low %v2955_v17, %v2959_v54  ;;  %v2412_v7 = vld [vmem:[#allocation13 + $0x110] sm:$0xff] }
 0x538   : > { %v6611_v1 = vpop.f32.mrf.mxu0  ;;  %6925 = vmatprep.subr.bf16.mxu1 %v9097_v56  ;;  %6954 = vmatprep.subr.bf16.mxu0 %v9145_v61  ;;  %v8538_v56 = vcombine.low %v2428_v62, %v2432_v31  ;;  %v8531_v61 = vcombine.high %v2420_v50, %v2424_v27  ;;  %v8675_v52 = vcombine.high %v2564_v41, %v2568_v35  ;;  %v2560_v0 = vld [vmem:[#allocation13 + $0x5b0] sm:$0xff] }
 0x539   : > { %v6612_v36 = vadd.f32 %v6611_v1, %v11243_v33  ;;  %6976 = vmatprep.mubr.bf16.mxu0 %v10265_v16  ;;  %v2404_v1 = vld [vmem:[#allocation13 + $0xd0] sm:$0xff]  ;;  %v8522_v49 = vcombine.low %v2412_v7, %v2416_v8  ;;  %v8666_v34 = vcombine.low %v2556_v5, %v2560_v0 }
 0x53a   : > { %v6613_v47 = vpop.f32.mrf.mxu0  ;;  %v2536_v17 = vld [vmem:[#allocation13 + $0x4f0] sm:$0xff] }
 0x53b   : > { %6926 = vmatpush2.bf16.msra.mxu1 %v9096_v63  ;;  %6955 = vmatpush1.bf16.msra.mxu0 %v9144_v3  ;;  %v8674_v63 = vcombine.low %v2564_v41, %v2568_v35  ;;  %v8523_v3 = vcombine.high %v2412_v7, %v2416_v8  ;;  %v2500_v35 = vld [vmem:[#allocation13 + $0x3d0] sm:$0xff] }
 0x53c   : > { %v6614_v10 = vpop.f32.mrf.mxu0  ;;  %6927 = vmatprep.subr.bf16.mxu1 %v9089_v57  ;;  %6956 = vmatprep.subr.bf16.mxu0 %v9137_v58  ;;  %v8667_v57 = vcombine.high %v2556_v5, %v2560_v0  ;;  %v2408_v58 = vld [vmem:[#allocation13 + $0xf0] sm:$0xff] }
 0x53d   : > { %v2396_v10 = vld [vmem:[#allocation13 + $0x90] sm:$0xff]  ;;  %v8514_v26 = vcombine.low %v2404_v1, %v2408_v58 }
 0x53e   : > { %v6650_v33 = vpop.f32.mrf.mxu1  ;;  %v2492_v0 = vld [vmem:[#allocation13 + $0x390] sm:$0xff] }
 0x53f   : > { %v11251_v4 = vadd.f32 %v6650_v33, %v6610_v30  ;;  %6928 = vmatpush2.bf16.msra.mxu1 %v9088_v18  ;;  %6957 = vmatpush1.bf16.msra.mxu0 %v9136_v55  ;;  %v8530_v30 = vcombine.low %v2420_v50, %v2424_v27  ;;  %v8515_v18 = vcombine.high %v2404_v1, %v2408_v58 }
 0x540   : > { %v6652_v14 = vpop.f32.mrf.mxu1  ;;  %6929 = vmatprep.subr.bf16.mxu1 %v9081_v59  ;;  %6958 = vmatprep.subr.bf16.mxu0 %v9129_v21  ;;  %v2400_v59 = vld [vmem:[#allocation13 + $0xb0] sm:$0xff] }
 0x541   : > { %v11253_v38 = vadd.f32 %v6652_v14, %v6612_v36  ;;  %v2552_v36 = vld [vmem:[#allocation13 + $0x570] sm:$0xff]  ;;  %v8506_v54 = vcombine.low %v2396_v10, %v2400_v59 }
 0x542   : > { %v6654_v19 = vpop.f32.mrf.mxu1  ;;  %v8659_v55 = vcombine.high %v2548_v48, %v2552_v36  ;;  %v2540_v21 = vld [vmem:[#allocation13 + $0x510] sm:$0xff]  ;;  %v8658_v22 = vcombine.low %v2548_v48, %v2552_v36 }
 0x543   : > { %6930 = vmatpush2.bf16.msra.mxu1 %v9080_v40  ;;  %6959 = vmatpush1.bf16.msra.mxu0 %v9128_v44  ;;  %v8507_v40 = vcombine.high %v2396_v10, %v2400_v59  ;;  %v8651_v44 = vcombine.high %v2540_v21, %v2544_v37  ;;  %v2388_v14 = vld [vmem:[#allocation13 + $0x50] sm:$0xff]  ;;  %v8650_v19 = vcombine.low %v2540_v21, %v2544_v37 }
 0x544   : > { %v6655_v15 = vpop.f32.mrf.mxu1  ;;  %6931 = vmatprep.subr.bf16.mxu1 %v9073_v60  ;;  %6985 = vmatprep.subr.bf16.mxu0 %v8547_v13  ;;  %v2392_v60 = vld [vmem:[#allocation13 + $0x70] sm:$0xff] }
 0x545   : > { %v2532_v13 = vld [vmem:[#allocation13 + $0x4d0] sm:$0xff]  ;;  %v8499_v62 = vcombine.high %v2388_v14, %v2392_v60  ;;  %v8498_v50 = vcombine.low %v2388_v14, %v2392_v60 }
 0x546   : > { %9159 = vmatmul.mubr.msk.bf16.vlgmr.msra.gmra.mxu0 %vm1708_vm5, %v11255_v12  ;;  %v8643_v31 = vcombine.high %v2532_v13, %v2536_v17  ;;  %v2524_v15 = vld [vmem:[#allocation13 + $0x490] sm:$0xff] }
 0x547   : > { %6932 = vmatpush2.bf16.msra.mxu1 %v9072_v53  ;;  %6986 = vmatpush1.bf16.msra.mxu0 %v8546_v32  ;;  %v2380_v53 = vld [vmem:[#allocation13 + $0x10] sm:$0xff] }
 0x548   : > { %7017 = vmatprep.mubr.bf16.mxu0 %v11171_v6  ;;  %6933 = vmatprep.subr.bf16.mxu1 %v9065_v45  ;;  %v2384_v32 = vld [vmem:[#allocation13 + $0x30] sm:$0xff] }
 0x549   : > { %6987 = vmatprep.subr.bf16.mxu0 %v8539_v43  ;;  %v2528_v45 = vld [vmem:[#allocation13 + $0x4b0] sm:$0xff]  ;;  %v8642_v43 = vcombine.low %v2532_v13, %v2536_v17  ;;  %v8491_v27 = vcombine.high %v2380_v53, %v2384_v32 }
 0x54a   : > { %v8635_v41 = vcombine.high %v2524_v15, %v2528_v45  ;;  %v8634_v7 = vcombine.low %v2524_v15, %v2528_v45  ;;  %v2484_v36 = vld [vmem:[#allocation13 + $0x350] sm:$0xff] }
 0x54b   : > { %6934 = vmatpush2.bf16.msra.mxu1 %v9064_v46  ;;  %6988 = vmatpush1.bf16.msra.mxu0 %v8538_v56  ;;  %v2504_v46 = vld [vmem:[#allocation13 + $0x3f0] sm:$0xff] }
 0x54c   : > { %6989 = vmatprep.subr.bf16.mxu0 %v8531_v61  ;;  %7026 = vmatprep.subr.bf16.mxu1 %v8675_v52  ;;  %v2516_v56 = vld [vmem:[#allocation13 + $0x450] sm:$0xff]  ;;  %v8490_v52 = vcombine.low %v2380_v53, %v2384_v32  ;;  %v8611_v8 = vcombine.high %v2500_v35, %v2504_v46  ;;  %v8610_v1 = vcombine.low %v2500_v35, %v2504_v46 }
 0x54d   : > { %v2520_v61 = vld [vmem:[#allocation13 + $0x470] sm:$0xff] }
 0x54e   : > { %v11260_v42 = vpop.f32.mrf.mxu1  ;;  %6936 = vmatmul.mubr.bf16.vlgmr.msra.gmra.mxu1 %v11229_v28  ;;  %v8627_v5 = vcombine.high %v2516_v56, %v2520_v61  ;;  %v2476_v37 = vld [vmem:[#allocation13 + $0x310] sm:$0xff] }
 0x54f   : > { %6990 = vmatpush1.bf16.msra.mxu0 %v8530_v30  ;;  %7027 = vmatpush1.bf16.msra.mxu1 %v8674_v63  ;;  %v2496_v30 = vld [vmem:[#allocation13 + $0x3b0] sm:$0xff] }
 0x550   : > { %7058 = vmatprep.mubr.bf16.mxu1 %v11180_v20  ;;  %v11264_v47 = vpop.f32.mrf.mxu1  ;;  %6991 = vmatprep.subr.bf16.mxu0 %v8523_v3  ;;  %v2508_v63 = vld [vmem:[#allocation13 + $0x410] sm:$0xff]  ;;  %v8603_v58 = vcombine.high %v2492_v0, %v2496_v30 }
 0x551   : > { %7028 = vmatprep.subr.bf16.mxu1 %v8667_v57  ;;  %v2512_v3 = vld [vmem:[#allocation13 + $0x430] sm:$0xff]  ;;  %v8626_v57 = vcombine.low %v2516_v56, %v2520_v61 }
 0x552   : > { %v6736_v9 = vpop.f32.mrf.mxu1  ;;  %v8619_v48 = vcombine.high %v2508_v63, %v2512_v3  ;;  %v8618_v10 = vcombine.low %v2508_v63, %v2512_v3  ;;  %v2468_v60 = vld [vmem:[#allocation13 + $0x2d0] sm:$0xff] }
 0x553   : > { %6992 = vmatpush1.bf16.msra.mxu0 %v8522_v49  ;;  %7029 = vmatpush1.bf16.msra.mxu1 %v8666_v34  ;;  %v2488_v49 = vld [vmem:[#allocation13 + $0x370] sm:$0xff] }
 0x554   : > { %v6737_v33 = vpop.f32.mrf.mxu1  ;;  %6993 = vmatprep.subr.bf16.mxu0 %v8515_v18  ;;  %7030 = vmatprep.subr.bf16.mxu1 %v8659_v55  ;;  %v2628_v34 = vld [vmem:[#allocation13 + $0x7d0] sm:$0xff]  ;;  %v8602_v55 = vcombine.low %v2492_v0, %v2496_v30  ;;  %v8595_v59 = vcombine.high %v2484_v36, %v2488_v49 }
 0x555   : > { %v2632_v18 = vld [vmem:[#allocation13 + $0x7f0] sm:$0xff]  ;;  %v8594_v33 = vcombine.low %v2484_v36, %v2488_v49 }
 0x556   : > { %v8739_v21 = vcombine.high %v2628_v34, %v2632_v18  ;;  %v2480_v9 = vld [vmem:[#allocation13 + $0x330] sm:$0xff] }
 0x557   : > { %6994 = vmatpush1.bf16.msra.mxu0 %v8514_v26  ;;  %7031 = vmatpush1.bf16.msra.mxu1 %v8658_v22  ;;  %v2620_v26 = vld [vmem:[#allocation13 + $0x790] sm:$0xff] }
 0x558   : > { %6995 = vmatprep.subr.bf16.mxu0 %v8507_v40  ;;  %7032 = vmatprep.subr.bf16.mxu1 %v8651_v44  ;;  %v2624_v22 = vld [vmem:[#allocation13 + $0x7b0] sm:$0xff]  ;;  %v8738_v40 = vcombine.low %v2628_v34, %v2632_v18  ;;  %v8587_v44 = vcombine.high %v2476_v37, %v2480_v9 }
 0x559   : > { %v8731_v14 = vcombine.high %v2620_v26, %v2624_v22  ;;  %v2472_v13 = vld [vmem:[#allocation13 + $0x2f0] sm:$0xff] }
 0x55a   : > { %v2612_v17 = vld [vmem:[#allocation13 + $0x750] sm:$0xff] }
 0x55b   : > { %6996 = vmatpush1.bf16.msra.mxu0 %v8506_v54  ;;  %7033 = vmatpush1.bf16.msra.mxu1 %v8650_v19  ;;  %v2616_v54 = vld [vmem:[#allocation13 + $0x770] sm:$0xff]  ;;  %v8586_v19 = vcombine.low %v2476_v37, %v2480_v9 }
 0x55c   : > { %6997 = vmatprep.subr.bf16.mxu0 %v8499_v62  ;;  %7034 = vmatprep.subr.bf16.mxu1 %v8643_v31  ;;  %v8730_v62 = vcombine.low %v2620_v26, %v2624_v22  ;;  %v8579_v31 = vcombine.high %v2468_v60, %v2472_v13  ;;  %v8723_v53 = vcombine.high %v2612_v17, %v2616_v54  ;;  %v2460_v32 = vld [vmem:[#allocation13 + $0x290] sm:$0xff] }
 0x55d   : > { %v2464_v15 = vld [vmem:[#allocation13 + $0x2b0] sm:$0xff] }
 0x55e   : > { %v2604_v45 = vld [vmem:[#allocation13 + $0x710] sm:$0xff] }
 0x55f   : > { %6998 = vmatpush1.bf16.msra.mxu0 %v8498_v50  ;;  %7035 = vmatpush1.bf16.msra.mxu1 %v8642_v43  ;;  %v2608_v50 = vld [vmem:[#allocation13 + $0x730] sm:$0xff]  ;;  %v8578_v43 = vcombine.low %v2468_v60, %v2472_v13 }
 0x560   : > { %6999 = vmatprep.subr.bf16.mxu0 %v8491_v27  ;;  %7036 = vmatprep.subr.bf16.mxu1 %v8635_v41  ;;  %v8722_v27 = vcombine.low %v2612_v17, %v2616_v54  ;;  %v8571_v41 = vcombine.high %v2460_v32, %v2464_v15  ;;  %v8715_v35 = vcombine.high %v2604_v45, %v2608_v50  ;;  %v2452_v46 = vld [vmem:[#allocation13 + $0x250] sm:$0xff] }
 0x561   : > { %v2456_v56 = vld [vmem:[#allocation13 + $0x270] sm:$0xff]  ;;  %v8714_v0 = vcombine.low %v2604_v45, %v2608_v50 }
 0x562   : > { %v2596_v61 = vld [vmem:[#allocation13 + $0x6d0] sm:$0xff]  ;;  %v8563_v63 = vcombine.high %v2452_v46, %v2456_v56  ;;  %v8562_v18 = vcombine.low %v2452_v46, %v2456_v56 }
 0x563   : > { %7000 = vmatpush1.bf16.msra.mxu0 %v8490_v52  ;;  %7037 = vmatpush1.bf16.msra.mxu1 %v8634_v7  ;;  %v2600_v52 = vld [vmem:[#allocation13 + $0x6f0] sm:$0xff] }
 0x564   : > { %7001 = vmatprep.subr.bf16.mxu0 %v8611_v8  ;;  %7038 = vmatprep.subr.bf16.mxu1 %v8627_v5  ;;  %v8570_v5 = vcombine.low %v2460_v32, %v2464_v15  ;;  %v8707_v3 = vcombine.high %v2596_v61, %v2600_v52  ;;  %v2588_v36 = vld [vmem:[#allocation13 + $0x690] sm:$0xff] }
 0x565   : > { %v2592_v49 = vld [vmem:[#allocation13 + $0x6b0] sm:$0xff] }
 0x566   : > { %v2584_v37 = vld [vmem:[#allocation13 + $0x670] sm:$0xff]  ;;  %v8698_v22 = vcombine.low %v2588_v36, %v2592_v49 }
 0x567   : > { %7002 = vmatpush2.bf16.msra.mxu0 %v8610_v1  ;;  %7039 = vmatpush1.bf16.msra.mxu1 %v8626_v57  ;;  %v2444_v1 = vld [vmem:[#allocation13 + $0x210] sm:$0xff] }
 0x568   : > { %7003 = vmatprep.subr.bf16.mxu0 %v8603_v58  ;;  %7040 = vmatprep.subr.bf16.mxu1 %v8619_v48  ;;  %v2448_v48 = vld [vmem:[#allocation13 + $0x230] sm:$0xff] }
 0x569   : > { %v2692_v9 = vld [vmem:[#allocation13 + $0x9d0] sm:$0xff]  ;;  %v8554_v26 = vcombine.low %v2444_v1, %v2448_v48 }
 0x56a   : > { %v2688_v60 = vld [vmem:[#allocation13 + $0x9b0] sm:$0xff] }
 0x56b   : > { %7004 = vmatpush2.bf16.msra.mxu0 %v8602_v55  ;;  %7041 = vmatpush1.bf16.msra.mxu1 %v8618_v10  ;;  %v8706_v55 = vcombine.low %v2596_v61, %v2600_v52  ;;  %v2824_v32 = vld [vmem:[#allocation13 + $0xdf0] sm:$0xff] }
 0x56c   : > { %7005 = vmatprep.subr.bf16.mxu0 %v8595_v59  ;;  %7042 = vmatprep.subr.bf16.mxu1 %v8739_v21  ;;  %v8555_v59 = vcombine.high %v2444_v1, %v2448_v48  ;;  %v8699_v21 = vcombine.high %v2588_v36, %v2592_v49  ;;  %v2816_v46 = vld [vmem:[#allocation13 + $0xdb0] sm:$0xff] }
 0x56d   : > { %v2652_v49 = vld [vmem:[#allocation13 + $0x890] sm:$0xff] }
 0x56f   : > { %7006 = vmatpush2.bf16.msra.mxu0 %v8594_v33  ;;  %7043 = vmatpush2.bf16.msra.mxu1 %v8738_v40  ;;  %v2572_v40 = vld [vmem:[#allocation13 + $0x610] sm:$0xff] }
 0x570   : > { %7007 = vmatprep.subr.bf16.mxu0 %v8587_v44  ;;  %7044 = vmatprep.subr.bf16.mxu1 %v8731_v14  ;;  %v2576_v44 = vld [vmem:[#allocation13 + $0x630] sm:$0xff] }
 0x571   : > { %v2684_v14 = vld [vmem:[#allocation13 + $0x990] sm:$0xff]  ;;  %v8683_v54 = vcombine.high %v2572_v40, %v2576_v44  ;;  %v8682_v15 = vcombine.low %v2572_v40, %v2576_v44 }
 0x572   : > { %v8794_v45 = vcombine.low %v2684_v14, %v2688_v60 }
 0x573   : > { %7008 = vmatpush2.bf16.msra.mxu0 %v8586_v19  ;;  %7045 = vmatpush2.bf16.msra.mxu1 %v8730_v62  ;;  %v2676_v19 = vld [vmem:[#allocation13 + $0x950] sm:$0xff]  ;;  %v8795_v62 = vcombine.high %v2684_v14, %v2688_v60 }
 0x574   : > { %7009 = vmatprep.subr.bf16.mxu0 %v8579_v31  ;;  %7046 = vmatprep.subr.bf16.mxu1 %v8723_v53  ;;  %v2680_v31 = vld [vmem:[#allocation13 + $0x970] sm:$0xff] }
 0x575   : > { %v2820_v53 = vld [vmem:[#allocation13 + $0xdd0] sm:$0xff]  ;;  %v8787_v50 = vcombine.high %v2676_v19, %v2680_v31  ;;  %v8786_v56 = vcombine.low %v2676_v19, %v2680_v31 }
 0x576   : > { %v6691_v7 = vpop.f32.mrf.mxu0  ;;  %v8930_v61 = vcombine.low %v2820_v53, %v2824_v32  ;;  %v2636_v60 = vld [vmem:[#allocation13 + $0x810] sm:$0xff] }
 0x577   : > { %v6692_v8 = vadd.f32 %v6691_v7, %v11251_v4  ;;  %7010 = vmatpush2.bf16.msra.mxu0 %v8578_v43  ;;  %7047 = vmatpush2.bf16.msra.mxu1 %v8722_v27  ;;  %v8931_v43 = vcombine.high %v2820_v53, %v2824_v32  ;;  %v2668_v27 = vld [vmem:[#allocation13 + $0x910] sm:$0xff] }
 0x578   : > { %v6693_v30 = vpop.f32.mrf.mxu0  ;;  %7011 = vmatprep.subr.bf16.mxu0 %v8571_v41  ;;  %7048 = vmatprep.subr.bf16.mxu1 %v8715_v35  ;;  %v2672_v41 = vld [vmem:[#allocation13 + $0x930] sm:$0xff] }
 0x579   : > { %v11268_v57 = vadd.f32 %v11260_v42, %v6692_v8  ;;  %v6694_v58 = vadd.f32 %v6693_v30, %v11253_v38  ;;  %v2580_v42 = vld [vmem:[#allocation13 + $0x650] sm:$0xff]  ;;  %v8779_v52 = vcombine.high %v2668_v27, %v2672_v41 }
 0x57a   : > { %v6695_v34 = vpop.f32.mrf.mxu0  ;;  %v2696_v38 = vld [vmem:[#allocation13 + $0x9f0] sm:$0xff]  ;;  %v8690_v13 = vcombine.low %v2580_v42, %v2584_v37 }
 0x57b   : > { %v11272_v4 = vadd.f32 %v11264_v47, %v6694_v58  ;;  %7012 = vmatpush2.bf16.msra.mxu0 %v8570_v5  ;;  %7049 = vmatpush2.bf16.msra.mxu1 %v8714_v0  ;;  %v8691_v47 = vcombine.high %v2580_v42, %v2584_v37  ;;  %v8803_v33 = vcombine.high %v2692_v9, %v2696_v38  ;;  %v2812_v35 = vld [vmem:[#allocation13 + $0xd90] sm:$0xff] }
 0x57c   : > { %v6696_v10 = vpop.f32.mrf.mxu0  ;;  %7013 = vmatprep.subr.bf16.mxu0 %v8563_v63  ;;  %7050 = vmatprep.subr.bf16.mxu1 %v8707_v3  ;;  %v8802_v17 = vcombine.low %v2692_v9, %v2696_v38  ;;  %v2660_v7 = vld [vmem:[#allocation13 + $0x8d0] sm:$0xff]  ;;  %v8923_v8 = vcombine.high %v2812_v35, %v2816_v46  ;;  %v8778_v3 = vcombine.low %v2668_v27, %v2672_v41 }
 0x57d   : > { %v2664_v5 = vld [vmem:[#allocation13 + $0x8f0] sm:$0xff]  ;;  %v8922_v1 = vcombine.low %v2812_v35, %v2816_v46 }
 0x57e   : > { %v2804_v0 = vld [vmem:[#allocation13 + $0xd50] sm:$0xff]  ;;  %v8771_v48 = vcombine.high %v2660_v7, %v2664_v5 }
 0x57f   : > { %7014 = vmatpush2.bf16.msra.mxu0 %v8562_v18  ;;  %7051 = vmatpush2.bf16.msra.mxu1 %v8706_v55  ;;  %v2808_v30 = vld [vmem:[#allocation13 + $0xd70] sm:$0xff] }
 0x580   : > { %7015 = vmatprep.subr.bf16.mxu0 %v8555_v59  ;;  %7052 = vmatprep.subr.bf16.mxu1 %v8699_v21  ;;  %v8915_v36 = vcombine.high %v2804_v0, %v2808_v30  ;;  %v2656_v34 = vld [vmem:[#allocation13 + $0x8b0] sm:$0xff]  ;;  %v8770_v59 = vcombine.low %v2660_v7, %v2664_v5  ;;  %v8914_v21 = vcombine.low %v2804_v0, %v2808_v30 }
 0x581   : > { %v2796_v18 = vld [vmem:[#allocation13 + $0xd10] sm:$0xff]  ;;  %v8763_v37 = vcombine.high %v2652_v49, %v2656_v34 }
 0x582   : > { %v2800_v55 = vld [vmem:[#allocation13 + $0xd30] sm:$0xff] }
 0x583   : > { %7016 = vmatpush2.bf16.msra.mxu0 %v8554_v26  ;;  %7053 = vmatpush2.bf16.msra.mxu1 %v8698_v22  ;;  %v8907_v9 = vcombine.high %v2796_v18, %v2800_v55  ;;  %v2644_v38 = vld [vmem:[#allocation13 + $0x850] sm:$0xff]  ;;  %v8906_v40 = vcombine.low %v2796_v18, %v2800_v55 }
 0x584   : > { %7054 = vmatprep.subr.bf16.mxu1 %v8691_v47  ;;  %7067 = vmatprep.subr.bf16.mxu0 %v8803_v33  ;;  %v2648_v26 = vld [vmem:[#allocation13 + $0x870] sm:$0xff]  ;;  %v8762_v33 = vcombine.low %v2652_v49, %v2656_v34 }
 0x585   : > { %v2788_v22 = vld [vmem:[#allocation13 + $0xcd0] sm:$0xff]  ;;  %v8755_v44 = vcombine.high %v2644_v38, %v2648_v26  ;;  %v8754_v19 = vcombine.low %v2644_v38, %v2648_v26 }
 0x586   : > { %7018 = vmatmul.mubr.bf16.vlgmr.msra.gmra.mxu0 %v11169_v23  ;;  %v2792_v47 = vld [vmem:[#allocation13 + $0xcf0] sm:$0xff] }
 0x587   : > { %7055 = vmatpush2.bf16.msra.mxu1 %v8690_v13  ;;  %7068 = vmatpush1.bf16.msra.mxu0 %v8802_v17  ;;  %v8899_v14 = vcombine.high %v2788_v22, %v2792_v47  ;;  %v2640_v13 = vld [vmem:[#allocation13 + $0x830] sm:$0xff] }
 0x588   : > { %7099 = vmatprep.mubr.bf16.mxu0 %v11204_v2  ;;  %7056 = vmatprep.subr.bf16.mxu1 %v8683_v54  ;;  %v2780_v17 = vld [vmem:[#allocation13 + $0xc90] sm:$0xff]  ;;  %v8747_v31 = vcombine.high %v2636_v60, %v2640_v13 }
 0x589   : > { %7069 = vmatprep.subr.bf16.mxu0 %v8795_v62  ;;  %v2784_v54 = vld [vmem:[#allocation13 + $0xcb0] sm:$0xff]  ;;  %v8898_v62 = vcombine.low %v2788_v22, %v2792_v47  ;;  %v3062_v22 = vsub.s32 2, %v11235_v25 }
 0x58a   : > { %v8891_v53 = vcombine.high %v2780_v17, %v2784_v54  ;;  %v2756_v32 = vld [vmem:[#allocation13 + $0xbd0] sm:$0xff]  ;;  %v8890_v27 = vcombine.low %v2780_v17, %v2784_v54 }
 0x58b   : > { %7057 = vmatpush2.bf16.msra.mxu1 %v8682_v15  ;;  %7070 = vmatpush1.bf16.msra.mxu0 %v8794_v45  ;;  %v2760_v15 = vld [vmem:[#allocation13 + $0xbf0] sm:$0xff] }
 0x58c   : > { %7071 = vmatprep.subr.bf16.mxu0 %v8787_v50  ;;  %7108 = vmatprep.subr.bf16.mxu1 %v8931_v43  ;;  %v2772_v45 = vld [vmem:[#allocation13 + $0xc50] sm:$0xff]  ;;  %v8746_v43 = vcombine.low %v2636_v60, %v2640_v13  ;;  %v8867_v41 = vcombine.high %v2756_v32, %v2760_v15  ;;  %v8866_v7 = vcombine.low %v2756_v32, %v2760_v15 }
 0x58d   : > { %v2776_v50 = vld [vmem:[#allocation13 + $0xc70] sm:$0xff] }
 0x58e   : > { %v11276_v63 = vpop.f32.mrf.mxu1  ;;  %7059 = vmatmul.mubr.bf16.vlgmr.msra.gmra.mxu1 %v11178_v24  ;;  %v8883_v35 = vcombine.high %v2772_v45, %v2776_v50  ;;  %v2748_v46 = vld [vmem:[#allocation13 + $0xb90] sm:$0xff] }
 0x58f   : > { %7072 = vmatpush1.bf16.msra.mxu0 %v8786_v56  ;;  %7109 = vmatpush1.bf16.msra.mxu1 %v8930_v61  ;;  %v2752_v56 = vld [vmem:[#allocation13 + $0xbb0] sm:$0xff] }
 0x590   : > { %7140 = vmatprep.mubr.bf16.mxu1 %v11196_v11  ;;  %v11280_v58 = vpop.f32.mrf.mxu1  ;;  %7073 = vmatprep.subr.bf16.mxu0 %v8779_v52  ;;  %v2764_v61 = vld [vmem:[#allocation13 + $0xc10] sm:$0xff]  ;;  %v8859_v5 = vcombine.high %v2748_v46, %v2752_v56 }
 0x591   : > { %7110 = vmatprep.subr.bf16.mxu1 %v8923_v8  ;;  %v2768_v52 = vld [vmem:[#allocation13 + $0xc30] sm:$0xff]  ;;  %v8882_v8 = vcombine.low %v2772_v45, %v2776_v50 }
 0x592   : > { %v6777_v10 = vpop.f32.mrf.mxu1  ;;  %v8875_v0 = vcombine.high %v2764_v61, %v2768_v52  ;;  %v2740_v30 = vld [vmem:[#allocation13 + $0xb50] sm:$0xff]  ;;  %v8874_v49 = vcombine.low %v2764_v61, %v2768_v52 }
 0x593   : > { %7074 = vmatpush1.bf16.msra.mxu0 %v8778_v3  ;;  %7111 = vmatpush1.bf16.msra.mxu1 %v8922_v1  ;;  %v2744_v3 = vld [vmem:[#allocation13 + $0xb70] sm:$0xff] }
 0x594   : > { %v6778_v42 = vpop.f32.mrf.mxu1  ;;  %7075 = vmatprep.subr.bf16.mxu0 %v8771_v48  ;;  %7112 = vmatprep.subr.bf16.mxu1 %v8915_v36  ;;  %v2884_v1 = vld [vmem:[#allocation13 + $0xfd0] sm:$0xff]  ;;  %v8858_v36 = vcombine.low %v2748_v46, %v2752_v56  ;;  %v8851_v34 = vcombine.high %v2740_v30, %v2744_v3 }
 0x595   : > { %v2888_v48 = vld [vmem:[#allocation13 + $0xff0] sm:$0xff]  ;;  %v8850_v42 = vcombine.low %v2740_v30, %v2744_v3 }
 0x596   : > { %v8995_v18 = vcombine.high %v2884_v1, %v2888_v48  ;;  %v2732_v55 = vld [vmem:[#allocation13 + $0xb10] sm:$0xff] }
 0x597   : > { %7076 = vmatpush1.bf16.msra.mxu0 %v8770_v59  ;;  %7113 = vmatpush1.bf16.msra.mxu1 %v8914_v21  ;;  %v2736_v10 = vld [vmem:[#allocation13 + $0xb30] sm:$0xff] }
 0x598   : > { %7077 = vmatprep.subr.bf16.mxu0 %v8763_v37  ;;  %7114 = vmatprep.subr.bf16.mxu1 %v8907_v9  ;;  %v2876_v59 = vld [vmem:[#allocation13 + $0xf90] sm:$0xff]  ;;  %v8994_v37 = vcombine.low %v2884_v1, %v2888_v48  ;;  %v8843_v9 = vcombine.high %v2732_v55, %v2736_v10 }
 0x599   : > { %v2880_v21 = vld [vmem:[#allocation13 + $0xfb0] sm:$0xff] }
 0x59a   : > { %v8987_v38 = vcombine.high %v2876_v59, %v2880_v21  ;;  %v2724_v26 = vld [vmem:[#allocation13 + $0xad0] sm:$0xff]  ;;  %v8986_v60 = vcombine.low %v2876_v59, %v2880_v21 }
 0x59b   : > { %7078 = vmatpush1.bf16.msra.mxu0 %v8762_v33  ;;  %7115 = vmatpush1.bf16.msra.mxu1 %v8906_v40  ;;  %v2728_v47 = vld [vmem:[#allocation13 + $0xaf0] sm:$0xff] }
 0x59c   : > { %7079 = vmatprep.subr.bf16.mxu0 %v8755_v44  ;;  %7116 = vmatprep.subr.bf16.mxu1 %v8899_v14  ;;  %v2868_v33 = vld [vmem:[#allocation13 + $0xf50] sm:$0xff]  ;;  %v3066_v44 = vsub.s32 3, %v11235_v25  ;;  %v8842_v14 = vcombine.low %v2732_v55, %v2736_v10  ;;  %v8835_v13 = vcombine.high %v2724_v26, %v2728_v47  ;;  %v8834_v45 = vcombine.low %v2724_v26, %v2728_v47 }
 0x59d   : > { %v2872_v40 = vld [vmem:[#allocation13 + $0xf70] sm:$0xff] }
 0x59e   : > { %v8979_v17 = vcombine.high %v2868_v33, %v2872_v40  ;;  %v2716_v54 = vld [vmem:[#allocation13 + $0xa90] sm:$0xff]  ;;  %v8978_v50 = vcombine.low %v2868_v33, %v2872_v40 }
 0x59f   : > { %7080 = vmatpush1.bf16.msra.mxu0 %v8754_v19  ;;  %7117 = vmatpush1.bf16.msra.mxu1 %v8898_v62  ;;  %v11284_v19 = vld [vmem:[#allocation14] sm:$0xff]  ;;  %v2864_v32 = vld [vmem:[#allocation13 + $0xf30] sm:$0xff] }
 0x5a0   : > { %7081 = vmatprep.subr.bf16.mxu0 %v8747_v31  ;;  %7118 = vmatprep.subr.bf16.mxu1 %v8891_v53  ;;  %v3063_v62 = vrot.slane %v11284_v19, %v3062_v22  ;;  %v2720_v31 = vld [vmem:[#allocation13 + $0xab0] sm:$0xff]  ;;  %v3067_v15 = vrot.slane %v11284_v19, %v3066_v44 }
 0x5a1   : > { %v2860_v53 = vld [vmem:[#allocation13 + $0xf10] sm:$0xff] }
 0x5a2   : > { %v2712_v46 = vld [vmem:[#allocation13 + $0xa70] sm:$0xff] }
 0x5a3   : > { %7082 = vmatpush1.bf16.msra.mxu0 %v8746_v43  ;;  %7119 = vmatpush1.bf16.msra.mxu1 %v8890_v27  ;;  %v8827_v43 = vcombine.high %v2716_v54, %v2720_v31  ;;  %v8971_v27 = vcombine.high %v2860_v53, %v2864_v32  ;;  %v2852_v56 = vld [vmem:[#allocation13 + $0xed0] sm:$0xff] }
 0x5a4   : > { %7083 = vmatprep.subr.bf16.mxu0 %v8867_v41  ;;  %7120 = vmatprep.subr.bf16.mxu1 %v8883_v35  ;;  %v2708_v41 = vld [vmem:[#allocation13 + $0xa50] sm:$0xff]  ;;  %v6774_v35 = vadd.f32 %v11276_v63, %v3063_v62 }
 0x5a5   : > { %v2856_v61 = vld [vmem:[#allocation13 + $0xef0] sm:$0xff]  ;;  %v8819_v3 = vcombine.high %v2708_v41, %v2712_v46 }
 0x5a6   : > { %v8963_v1 = vcombine.high %v2852_v56, %v2856_v61  ;;  %v2700_v48 = vld [vmem:[#allocation13 + $0xa10] sm:$0xff]  ;;  %v8962_v55 = vcombine.low %v2852_v56, %v2856_v61 }
 0x5a7   : > { %7084 = vmatpush2.bf16.msra.mxu0 %v8866_v7  ;;  %7121 = vmatpush1.bf16.msra.mxu1 %v8882_v8  ;;  %v8826_v7 = vcombine.low %v2716_v54, %v2720_v31  ;;  %v6776_v8 = vadd.f32 %v11280_v58, %v3067_v15  ;;  %v2704_v63 = vld [vmem:[#allocation13 + $0xa30] sm:$0xff]  ;;  %v8818_v58 = vcombine.low %v2708_v41, %v2712_v46 }
 0x5a8   : > { %7085 = vmatprep.subr.bf16.mxu0 %v8859_v5  ;;  %7122 = vmatprep.subr.bf16.mxu1 %v8875_v0  ;;  %v8970_v0 = vcombine.low %v2860_v53, %v2864_v32  ;;  %v8811_v59 = vcombine.high %v2700_v48, %v2704_v63  ;;  %v8810_v26 = vcombine.low %v2700_v48, %v2704_v63  ;;  %v2828_v40 = vld [vmem:[#allocation13 + $0xe10] sm:$0xff] }
 0x5a9   : > { %v2832_v44 = vld [vmem:[#allocation13 + $0xe30] sm:$0xff] }
 0x5aa   : > { %v8939_v54 = vcombine.high %v2828_v40, %v2832_v44  ;;  %v2932_v62 = vld [vmem:[#allocation13 + $0x1150] sm:$0xff] }
 0x5ab   : > { %7086 = vmatpush2.bf16.msra.mxu0 %v8858_v36  ;;  %7123 = vmatpush1.bf16.msra.mxu1 %v8874_v49  ;;  %v2844_v49 = vld [vmem:[#allocation13 + $0xe90] sm:$0xff] }
 0x5ac   : > { %7087 = vmatprep.subr.bf16.mxu0 %v8851_v34  ;;  %7124 = vmatprep.subr.bf16.mxu1 %v8995_v18  ;;  %v2848_v34 = vld [vmem:[#allocation13 + $0xeb0] sm:$0xff] }
 0x5ad   : > { %v8955_v21 = vcombine.high %v2844_v49, %v2848_v34  ;;  %v8954_v22 = vcombine.low %v2844_v49, %v2848_v34  ;;  %v2936_v53 = vld [vmem:[#allocation13 + $0x1170] sm:$0xff] }
 0x5ae   : > { %v3044_v32 = vld [vmem:[#allocation13 + $0x14d0] sm:$0xff]  ;;  %v9042_v61 = vcombine.low %v2932_v62, %v2936_v53 }
 0x5af   : > { %7088 = vmatpush2.bf16.msra.mxu0 %v8850_v42  ;;  %7125 = vmatpush2.bf16.msra.mxu1 %v8994_v37  ;;  %v2836_v42 = vld [vmem:[#allocation13 + $0xe50] sm:$0xff] }
 0x5b0   : > { %7089 = vmatprep.subr.bf16.mxu0 %v8843_v9  ;;  %7126 = vmatprep.subr.bf16.mxu1 %v8987_v38  ;;  %v2840_v37 = vld [vmem:[#allocation13 + $0xe70] sm:$0xff] }
 0x5b1   : > { %v2948_v9 = vld [vmem:[#allocation13 + $0x11d0] sm:$0xff]  ;;  %v8947_v47 = vcombine.high %v2836_v42, %v2840_v37 }
 0x5b2   : > { %v2952_v38 = vld [vmem:[#allocation13 + $0x11f0] sm:$0xff] }
 0x5b3   : > { %7090 = vmatpush2.bf16.msra.mxu0 %v8842_v14  ;;  %7127 = vmatpush2.bf16.msra.mxu1 %v8986_v60  ;;  %v9059_v33 = vcombine.high %v2948_v9, %v2952_v38  ;;  %v2940_v14 = vld [vmem:[#allocation13 + $0x1190] sm:$0xff] }
 0x5b4   : > { %7091 = vmatprep.subr.bf16.mxu0 %v8835_v13  ;;  %7128 = vmatprep.subr.bf16.mxu1 %v8979_v17  ;;  %v2944_v60 = vld [vmem:[#allocation13 + $0x11b0] sm:$0xff]  ;;  %v8946_v13 = vcombine.low %v2836_v42, %v2840_v37  ;;  %v9058_v17 = vcombine.low %v2948_v9, %v2952_v38 }
 0x5b5   : > { %v9051_v31 = vcombine.high %v2940_v14, %v2944_v60  ;;  %v3048_v15 = vld [vmem:[#allocation13 + $0x14f0] sm:$0xff] }
 0x5b6   : > { %v6814_v52 = vpop.f32.mrf.mxu0  ;;  %v2924_v41 = vld [vmem:[#allocation13 + $0x1110] sm:$0xff] }
 0x5b7   : > { %v11290_v5 = vadd.f32 %v6814_v52, %v6774_v35  ;;  %7092 = vmatpush2.bf16.msra.mxu0 %v8834_v45  ;;  %7129 = vmatpush2.bf16.msra.mxu1 %v8978_v50  ;;  %v8938_v45 = vcombine.low %v2828_v40, %v2832_v44  ;;  %v9050_v50 = vcombine.low %v2940_v14, %v2944_v60  ;;  %v2928_v35 = vld [vmem:[#allocation13 + $0x1130] sm:$0xff]  ;;  %v2437_v44 = vld [vmem:[#allocation13 + $0x1d8] sm:$0xff] }
 0x5b8   : > { %v6816_v30 = vpop.f32.mrf.mxu0  ;;  %7093 = vmatprep.subr.bf16.mxu0 %v8827_v43  ;;  %7130 = vmatprep.subr.bf16.mxu1 %v8971_v27  ;;  %v9043_v43 = vcombine.high %v2932_v62, %v2936_v53  ;;  %v9155_v27 = vcombine.high %v3044_v32, %v3048_v15  ;;  %v3036_v46 = vld [vmem:[#allocation13 + $0x1490] sm:$0xff]  ;;  %v9154_v52 = vcombine.low %v3044_v32, %v3048_v15  ;;  %v2433_v53 = vld [vmem:[#allocation13 + $0x1b8] sm:$0xff] }
 0x5b9   : > { %v11292_v36 = vadd.f32 %v6816_v30, %v6776_v8  ;;  %v3040_v56 = vld [vmem:[#allocation13 + $0x14b0] sm:$0xff]  ;;  %v9034_v49 = vcombine.low %v2924_v41, %v2928_v35 }
 0x5ba   : > { %v6818_v18 = vpop.f32.mrf.mxu0  ;;  %v9147_v8 = vcombine.high %v3036_v46, %v3040_v56  ;;  %v2920_v30 = vld [vmem:[#allocation13 + $0x10f0] sm:$0xff]  ;;  %v9146_v34 = vcombine.low %v3036_v46, %v3040_v56 }
 0x5bb   : > { %7094 = vmatpush2.bf16.msra.mxu0 %v8826_v7  ;;  %7131 = vmatpush2.bf16.msra.mxu1 %v8970_v0  ;;  %v9035_v7 = vcombine.high %v2924_v41, %v2928_v35  ;;  %v2916_v0 = vld [vmem:[#allocation13 + $0x10d0] sm:$0xff]  ;;  %v2421_v41 = vld [vmem:[#allocation13 + $0x158] sm:$0xff] }
 0x5bc   : > { %v6819_v10 = vpop.f32.mrf.mxu0  ;;  %7095 = vmatprep.subr.bf16.mxu0 %v8819_v3  ;;  %7132 = vmatprep.subr.bf16.mxu1 %v8963_v1  ;;  %v3028_v3 = vld [vmem:[#allocation13 + $0x1450] sm:$0xff]  ;;  %v9026_v9 = vcombine.low %v2916_v0, %v2920_v30  ;;  %v2425_v35 = vld [vmem:[#allocation13 + $0x178] sm:$0xff] }
 0x5bd   : > { %v3032_v1 = vld [vmem:[#allocation13 + $0x1470] sm:$0xff] }
 0x5be   : > { %v2908_v10 = vld [vmem:[#allocation13 + $0x1090] sm:$0xff]  ;;  %v9138_v38 = vcombine.low %v3028_v3, %v3032_v1 }
 0x5bf   : > { %7096 = vmatpush2.bf16.msra.mxu0 %v8818_v58  ;;  %7133 = vmatpush2.bf16.msra.mxu1 %v8962_v55  ;;  %v9027_v58 = vcombine.high %v2916_v0, %v2920_v30  ;;  %v9139_v55 = vcombine.high %v3028_v3, %v3032_v1  ;;  %v3020_v42 = vld [vmem:[#allocation13 + $0x1410] sm:$0xff]  ;;  %v2413_v0 = vld [vmem:[#allocation13 + $0x118] sm:$0xff]  ;;  %v8532_v1 = vcombine.low %v2421_v41, %v2425_v35 }
 0x5c0   : > { %7097 = vmatprep.subr.bf16.mxu0 %v8811_v59  ;;  %7134 = vmatprep.subr.bf16.mxu1 %v8955_v21  ;;  %v2912_v21 = vld [vmem:[#allocation13 + $0x10b0] sm:$0xff]  ;;  %v2417_v30 = vld [vmem:[#allocation13 + $0x138] sm:$0xff] }
 0x5c1   : > { %v3024_v37 = vld [vmem:[#allocation13 + $0x1430] sm:$0xff]  ;;  %v9018_v14 = vcombine.low %v2908_v10, %v2912_v21 }
 0x5c2   : > { %v2904_v40 = vld [vmem:[#allocation13 + $0x1070] sm:$0xff]  ;;  %v9130_v60 = vcombine.low %v3020_v42, %v3024_v37 }
 0x5c3   : > { %7098 = vmatpush2.bf16.msra.mxu0 %v8810_v26  ;;  %7135 = vmatpush2.bf16.msra.mxu1 %v8954_v22  ;;  %v9019_v22 = vcombine.high %v2908_v10, %v2912_v21  ;;  %v2896_v62 = vld [vmem:[#allocation13 + $0x1030] sm:$0xff] }
 0x5c4   : > { %7136 = vmatprep.subr.bf16.mxu1 %v8947_v47  ;;  %7149 = vmatprep.subr.bf16.mxu0 %v9059_v33  ;;  %v9131_v47 = vcombine.high %v3020_v42, %v3024_v37  ;;  %v2900_v33 = vld [vmem:[#allocation13 + $0x1050] sm:$0xff] }
 0x5c5   : > { %v9010_v32 = vcombine.low %v2900_v33, %v2904_v40  ;;  %v2988_v42 = vld [vmem:[#allocation13 + $0x1310] sm:$0xff] }
 0x5c6   : > { %7100 = vmatmul.mubr.bf16.vlgmr.msra.gmra.mxu0 %v11211_v29  ;;  %v2992_v37 = vld [vmem:[#allocation13 + $0x1330] sm:$0xff] }
 0x5c7   : > { %7137 = vmatpush2.bf16.msra.mxu1 %v8946_v13  ;;  %7150 = vmatpush1.bf16.msra.mxu0 %v9058_v17  ;;  %v9011_v13 = vcombine.high %v2900_v33, %v2904_v40  ;;  %v2980_v33 = vld [vmem:[#allocation13 + $0x12d0] sm:$0xff] }
 0x5c8   : > { %7181 = vmatprep.mubr.bf16.mxu0 %v11216_v39  ;;  %7138 = vmatprep.subr.bf16.mxu1 %v8939_v54  ;;  %v2892_v54 = vld [vmem:[#allocation13 + $0x1010] sm:$0xff] }
 0x5c9   : > { %7151 = vmatprep.subr.bf16.mxu0 %v9051_v31  ;;  %v2429_v31 = vld [vmem:[#allocation13 + $0x198] sm:$0xff]  ;;  %v9002_v46 = vcombine.low %v2892_v54, %v2896_v62  ;;  %v2984_v40 = vld [vmem:[#allocation13 + $0x12f0] sm:$0xff] }
 0x5ca   : > { %v8540_v56 = vcombine.low %v2429_v31, %v2433_v53 }
 0x5cb   : > { %7139 = vmatpush2.bf16.msra.mxu1 %v8938_v45  ;;  %7152 = vmatpush1.bf16.msra.mxu0 %v9050_v50  ;;  %v9003_v45 = vcombine.high %v2892_v54, %v2896_v62  ;;  %v3012_v50 = vld [vmem:[#allocation13 + $0x13d0] sm:$0xff] }
 0x5cc   : > { %7153 = vmatprep.subr.bf16.mxu0 %v9043_v43  ;;  %7198 = vmatprep.subr.bf16.mxu1 %v9155_v27  ;;  %v8541_v43 = vcombine.high %v2429_v31, %v2433_v53  ;;  %v3016_v27 = vld [vmem:[#allocation13 + $0x13f0] sm:$0xff]  ;;  %v2381_v31 = vld [vmem:[#allocation13 + $0x18] sm:$0xff] }
 0x5cd   : > { %v9122_v3 = vcombine.low %v3012_v50, %v3016_v27  ;;  %v2972_v54 = vld [vmem:[#allocation13 + $0x1290] sm:$0xff]  ;;  %v2385_v53 = vld [vmem:[#allocation13 + $0x38] sm:$0xff] }
 0x5ce   : > { %v6855_v48 = vpop.f32.mrf.mxu1  ;;  %7141 = vmatmul.mubr.bf16.vlgmr.msra.gmra.mxu1 %v11221_v51  ;;  %v2976_v62 = vld [vmem:[#allocation13 + $0x12b0] sm:$0xff] }
 0x5cf   : > { %v11298_v63 = vadd.f32 %v6855_v48, %v11290_v5  ;;  %7154 = vmatpush1.bf16.msra.mxu0 %v9042_v61  ;;  %7199 = vmatpush1.bf16.msra.mxu1 %v9154_v52  ;;  %v9123_v61 = vcombine.high %v3012_v50, %v3016_v27  ;;  %v8533_v52 = vcombine.high %v2421_v41, %v2425_v35  ;;  %v2968_v27 = vld [vmem:[#allocation13 + $0x1270] sm:$0xff]  ;;  %v2501_v41 = vld [vmem:[#allocation13 + $0x3d8] sm:$0xff] }
 0x5d0   : > { %v6857_v18 = vpop.f32.mrf.mxu1  ;;  %7155 = vmatprep.subr.bf16.mxu0 %v9035_v7  ;;  %7200 = vmatprep.subr.bf16.mxu1 %v9147_v8  ;;  %v3004_v7 = vld [vmem:[#allocation13 + $0x1390] sm:$0xff]  ;;  %v8525_v48 = vcombine.high %v2413_v0, %v2417_v30  ;;  %v8493_v50 = vcombine.high %v2381_v31, %v2385_v53  ;;  %v2505_v35 = vld [vmem:[#allocation13 + $0x3f8] sm:$0xff] }
 0x5d1   : > { %v11301_v59 = vadd.f32 %v6857_v18, %v11292_v36  ;;  %7222 = vmatprep.mubr.bf16.mxu1 %v10265_v16  ;;  %v2441_v36 = vld [vmem:[#allocation13 + $0x1f8] sm:$0xff]  ;;  %v3008_v8 = vld [vmem:[#allocation13 + $0x13b0] sm:$0xff] }
 0x5d2   : > { %v6859_v5 = vpop.f32.mrf.mxu1  ;;  %v8549_v17 = vcombine.high %v2437_v44, %v2441_v36  ;;  %v8548_v15 = vcombine.low %v2437_v44, %v2441_v36  ;;  %v2405_v18 = vld [vmem:[#allocation13 + $0xd8] sm:$0xff] }
 0x5d3   : > { %7156 = vmatpush1.bf16.msra.mxu0 %v9034_v49  ;;  %7201 = vmatpush1.bf16.msra.mxu1 %v9146_v34  ;;  %v2996_v49 = vld [vmem:[#allocation13 + $0x1350] sm:$0xff]  ;;  %v2397_v5 = vld [vmem:[#allocation13 + $0x98] sm:$0xff] }
 0x5d4   : > { %v6860_v26 = vpop.f32.mrf.mxu1  ;;  %7157 = vmatprep.subr.bf16.mxu0 %v9027_v58  ;;  %7202 = vmatprep.subr.bf16.mxu1 %v9139_v55  ;;  %v3000_v34 = vld [vmem:[#allocation13 + $0x1370] sm:$0xff]  ;;  %v9114_v58 = vcombine.low %v3004_v7, %v3008_v8  ;;  %v8524_v55 = vcombine.low %v2413_v0, %v2417_v30  ;;  %v2389_v44 = vld [vmem:[#allocation13 + $0x58] sm:$0xff]  ;;  %v8613_v0 = vcombine.high %v2501_v41, %v2505_v35 }
 0x5d5   : > { %v9107_v10 = vcombine.high %v2996_v49, %v3000_v34  ;;  %v2393_v36 = vld [vmem:[#allocation13 + $0x78] sm:$0xff]  ;;  %v2956_v30 = vld [vmem:[#allocation13 + $0x1210] sm:$0xff] }
 0x5d7   : > { %7158 = vmatpush1.bf16.msra.mxu0 %v9026_v9  ;;  %7203 = vmatpush1.bf16.msra.mxu1 %v9138_v38  ;;  %v2401_v9 = vld [vmem:[#allocation13 + $0xb8] sm:$0xff]  ;;  %v9106_v38 = vcombine.low %v2996_v49, %v3000_v34  ;;  %v8612_v34 = vcombine.low %v2501_v41, %v2505_v35 }
 0x5d8   : > { %7159 = vmatprep.subr.bf16.mxu0 %v9019_v22  ;;  %7204 = vmatprep.subr.bf16.mxu1 %v9131_v47  ;;  %v9099_v22 = vcombine.high %v2988_v42, %v2992_v37  ;;  %v8509_v47 = vcombine.high %v2397_v5, %v2401_v9 }
 0x5db   : > { %7160 = vmatpush1.bf16.msra.mxu0 %v9018_v14  ;;  %7205 = vmatpush1.bf16.msra.mxu1 %v9130_v60  ;;  %v9098_v14 = vcombine.low %v2988_v42, %v2992_v37  ;;  %v8508_v60 = vcombine.low %v2397_v5, %v2401_v9  ;;  %v2569_v42 = vld [vmem:[#allocation13 + $0x5f8] sm:$0xff] }
 0x5dc   : > { %7161 = vmatprep.subr.bf16.mxu0 %v9011_v13  ;;  %7231 = vmatprep.subr.bf16.mxu1 %v8549_v17  ;;  %v9091_v13 = vcombine.high %v2980_v33, %v2984_v40  ;;  %v8501_v17 = vcombine.high %v2389_v44, %v2393_v36 }
 0x5de   : > { %9160 = vmatmul.mubr.msk.bf16.vlgmr.msra.gmra.mxu1 %vm1708_vm5, %v11255_v12  ;;  %v9115_v12 = vcombine.high %v3004_v7, %v3008_v8 }
 0x5df   : > { %7162 = vmatpush1.bf16.msra.mxu0 %v9010_v32  ;;  %7232 = vmatpush1.bf16.msra.mxu1 %v8548_v15  ;;  %v9090_v32 = vcombine.low %v2980_v33, %v2984_v40  ;;  %v8500_v15 = vcombine.low %v2389_v44, %v2393_v36  ;;  %v2469_v36 = vld [vmem:[#allocation13 + $0x2d8] sm:$0xff] }
 0x5e0   : > { %7263 = vmatprep.mubr.bf16.mxu1 %v11171_v6  ;;  %7163 = vmatprep.subr.bf16.mxu0 %v9003_v45  ;;  %v2409_v6 = vld [vmem:[#allocation13 + $0xf8] sm:$0xff]  ;;  %v9083_v45 = vcombine.high %v2972_v54, %v2976_v62 }
 0x5e1   : > { %7233 = vmatprep.subr.bf16.mxu1 %v8541_v43  ;;  %v8517_v21 = vcombine.high %v2405_v18, %v2409_v6  ;;  %v8516_v26 = vcombine.low %v2405_v18, %v2409_v6  ;;  %v2964_v43 = vld [vmem:[#allocation13 + $0x1250] sm:$0xff] }
 0x5e2   : > { %v9075_v8 = vcombine.high %v2964_v43, %v2968_v27 }
 0x5e3   : > { %7164 = vmatpush1.bf16.msra.mxu0 %v9002_v46  ;;  %7234 = vmatpush1.bf16.msra.mxu1 %v8540_v56 }
 0x5e4   : > { %7165 = vmatprep.subr.bf16.mxu0 %v9123_v61  ;;  %7235 = vmatprep.subr.bf16.mxu1 %v8533_v52  ;;  %v9082_v61 = vcombine.low %v2972_v54, %v2976_v62  ;;  %v8492_v52 = vcombine.low %v2381_v31, %v2385_v53 }
 0x5e7   : > { %7166 = vmatpush2.bf16.msra.mxu0 %v9122_v3  ;;  %7236 = vmatpush1.bf16.msra.mxu1 %v8532_v1  ;;  %v2960_v1 = vld [vmem:[#allocation13 + $0x1230] sm:$0xff] }
 0x5e8   : > { %7167 = vmatprep.subr.bf16.mxu0 %v9115_v12  ;;  %7237 = vmatprep.subr.bf16.mxu1 %v8525_v48  ;;  %v2493_v12 = vld [vmem:[#allocation13 + $0x398] sm:$0xff]  ;;  %v9067_v6 = vcombine.high %v2956_v30, %v2960_v1 }
 0x5e9   : > { %v2497_v48 = vld [vmem:[#allocation13 + $0x3b8] sm:$0xff] }
 0x5ea   : > { %v8604_v37 = vcombine.low %v2493_v12, %v2497_v48 }
 0x5eb   : > { %7168 = vmatpush2.bf16.msra.mxu0 %v9114_v58  ;;  %7238 = vmatpush1.bf16.msra.mxu1 %v8524_v55  ;;  %v8605_v58 = vcombine.high %v2493_v12, %v2497_v48  ;;  %v2485_v55 = vld [vmem:[#allocation13 + $0x358] sm:$0xff] }
 0x5ec   : > { %7169 = vmatprep.subr.bf16.mxu0 %v9107_v10  ;;  %7239 = vmatprep.subr.bf16.mxu1 %v8517_v21  ;;  %v2489_v10 = vld [vmem:[#allocation13 + $0x378] sm:$0xff] }
 0x5ed   : > { %v2565_v21 = vld [vmem:[#allocation13 + $0x5d8] sm:$0xff]  ;;  %v8597_v5 = vcombine.high %v2485_v55, %v2489_v10  ;;  %v8596_v33 = vcombine.low %v2485_v55, %v2489_v10 }
 0x5ee   : > { %v8677_v9 = vcombine.high %v2565_v21, %v2569_v42  ;;  %v8676_v40 = vcombine.low %v2565_v21, %v2569_v42  ;;  %v2449_v10 = vld [vmem:[#allocation13 + $0x238] sm:$0xff] }
 0x5ef   : > { %7170 = vmatpush2.bf16.msra.mxu0 %v9106_v38  ;;  %7240 = vmatpush1.bf16.msra.mxu1 %v8516_v26  ;;  %v2477_v38 = vld [vmem:[#allocation13 + $0x318] sm:$0xff] }
 0x5f0   : > { %7171 = vmatprep.subr.bf16.mxu0 %v9099_v22  ;;  %7241 = vmatprep.subr.bf16.mxu1 %v8509_v47  ;;  %v2481_v26 = vld [vmem:[#allocation13 + $0x338] sm:$0xff] }
 0x5f1   : > { %v2557_v22 = vld [vmem:[#allocation13 + $0x598] sm:$0xff]  ;;  %v8589_v44 = vcombine.high %v2477_v38, %v2481_v26  ;;  %v8588_v62 = vcombine.low %v2477_v38, %v2481_v26 }
 0x5f2   : > { %v2561_v47 = vld [vmem:[#allocation13 + $0x5b8] sm:$0xff] }
 0x5f3   : > { %7172 = vmatpush2.bf16.msra.mxu0 %v9098_v14  ;;  %7242 = vmatpush1.bf16.msra.mxu1 %v8508_v60  ;;  %v8669_v14 = vcombine.high %v2557_v22, %v2561_v47  ;;  %v2473_v60 = vld [vmem:[#allocation13 + $0x2f8] sm:$0xff]  ;;  %v8668_v31 = vcombine.low %v2557_v22, %v2561_v47 }
 0x5f4   : > { %7173 = vmatprep.subr.bf16.mxu0 %v9091_v13  ;;  %7243 = vmatprep.subr.bf16.mxu1 %v8501_v17  ;;  %v2549_v13 = vld [vmem:[#allocation13 + $0x558] sm:$0xff]  ;;  %v8580_v35 = vcombine.low %v2469_v36, %v2473_v60 }
 0x5f5   : > { %v2553_v17 = vld [vmem:[#allocation13 + $0x578] sm:$0xff] }
 0x5f6   : > { %v6896_v46 = vpop.f32.mrf.mxu0  ;;  %v2525_v21 = vld [vmem:[#allocation13 + $0x498] sm:$0xff] }
 0x5f7   : > { %v11308_v56 = vadd.f32 %v6896_v46, %v11298_v63  ;;  %7174 = vmatpush2.bf16.msra.mxu0 %v9090_v32  ;;  %7244 = vmatpush1.bf16.msra.mxu1 %v8500_v15  ;;  %v9074_v63 = vcombine.low %v2964_v43, %v2968_v27  ;;  %v8581_v32 = vcombine.high %v2469_v36, %v2473_v60  ;;  %v2541_v43 = vld [vmem:[#allocation13 + $0x518] sm:$0xff] }
 0x5f8   : > { %v6898_v7 = vpop.f32.mrf.mxu0  ;;  %7175 = vmatprep.subr.bf16.mxu0 %v9083_v45  ;;  %7245 = vmatprep.subr.bf16.mxu1 %v8493_v50  ;;  %v8661_v15 = vcombine.high %v2549_v13, %v2553_v17  ;;  %v2461_v45 = vld [vmem:[#allocation13 + $0x298] sm:$0xff]  ;;  %v8660_v46 = vcombine.low %v2549_v13, %v2553_v17 }
 0x5f9   : > { %v11311_v3 = vadd.f32 %v6898_v7, %v11301_v59  ;;  %v9066_v59 = vcombine.low %v2956_v30, %v2960_v1  ;;  %v2465_v50 = vld [vmem:[#allocation13 + $0x2b8] sm:$0xff] }
 0x5fa   : > { %v6900_v49 = vpop.f32.mrf.mxu0  ;;  %v2545_v27 = vld [vmem:[#allocation13 + $0x538] sm:$0xff]  ;;  %v8572_v48 = vcombine.low %v2461_v45, %v2465_v50 }
 0x5fb   : > { %7176 = vmatpush2.bf16.msra.mxu0 %v9082_v61  ;;  %7246 = vmatpush1.bf16.msra.mxu1 %v8492_v52  ;;  %v8573_v52 = vcombine.high %v2461_v45, %v2465_v50  ;;  %v8653_v7 = vcombine.high %v2541_v43, %v2545_v27  ;;  %v2537_v30 = vld [vmem:[#allocation13 + $0x4f8] sm:$0xff]  ;;  %v8652_v49 = vcombine.low %v2541_v43, %v2545_v27 }
 0x5fc   : > { %v6901_v18 = vpop.f32.mrf.mxu0  ;;  %7177 = vmatprep.subr.bf16.mxu0 %v9075_v8  ;;  %7247 = vmatprep.subr.bf16.mxu1 %v8613_v0  ;;  %v2457_v8 = vld [vmem:[#allocation13 + $0x278] sm:$0xff] }
 0x5fd   : > { %v2533_v0 = vld [vmem:[#allocation13 + $0x4d8] sm:$0xff] }
 0x5fe   : > { %v8645_v18 = vcombine.high %v2533_v0, %v2537_v30  ;;  %v2529_v42 = vld [vmem:[#allocation13 + $0x4b8] sm:$0xff] }
 0x5ff   : > { %7178 = vmatpush2.bf16.msra.mxu0 %v9074_v63  ;;  %7248 = vmatpush2.bf16.msra.mxu1 %v8612_v34  ;;  %v8637_v26 = vcombine.high %v2525_v21, %v2529_v42  ;;  %v2517_v22 = vld [vmem:[#allocation13 + $0x458] sm:$0xff] }
 0x600   : > { %7179 = vmatprep.subr.bf16.mxu0 %v9067_v6  ;;  %7249 = vmatprep.subr.bf16.mxu1 %v8605_v58  ;;  %v2445_v6 = vld [vmem:[#allocation13 + $0x218] sm:$0xff] }
 0x601   : > { %v8557_v38 = vcombine.high %v2445_v6, %v2449_v10  ;;  %v2521_v47 = vld [vmem:[#allocation13 + $0x478] sm:$0xff] }
 0x602   : > { %v8629_v36 = vcombine.high %v2517_v22, %v2521_v47  ;;  %v2509_v60 = vld [vmem:[#allocation13 + $0x418] sm:$0xff] }
 0x603   : > { %7180 = vmatpush2.bf16.msra.mxu0 %v9066_v59  ;;  %7250 = vmatpush2.bf16.msra.mxu1 %v8604_v37  ;;  %v2513_v13 = vld [vmem:[#allocation13 + $0x438] sm:$0xff] }
 0x604   : > { %7251 = vmatprep.subr.bf16.mxu1 %v8597_v5  ;;  %7272 = vmatprep.subr.bf16.mxu0 %v8677_v9  ;;  %v8644_v5 = vcombine.low %v2533_v0, %v2537_v30  ;;  %v2685_v17 = vld [vmem:[#allocation13 + $0x998] sm:$0xff]  ;;  %v8620_v27 = vcombine.low %v2509_v60, %v2513_v13 }
 0x605   : > { %v2633_v45 = vld [vmem:[#allocation13 + $0x7f8] sm:$0xff] }
 0x606   : > { %v6978_v54 = vpop.f32.mrf.mxu0  ;;  %7182 = vmatmul.mubr.bf16.vlgmr.msra.gmra.mxu0 %v11229_v28  ;;  %v2677_v50 = vld [vmem:[#allocation13 + $0x958] sm:$0xff] }
 0x607   : > { %7252 = vmatpush2.bf16.msra.mxu1 %v8596_v33  ;;  %7273 = vmatpush1.bf16.msra.mxu0 %v8676_v40  ;;  %v2693_v33 = vld [vmem:[#allocation13 + $0x9d8] sm:$0xff] }
 0x608   : > { %7304 = vmatprep.mubr.bf16.mxu0 %v11180_v20  ;;  %v6980_v53 = vpop.f32.mrf.mxu0  ;;  %7253 = vmatprep.subr.bf16.mxu1 %v8589_v44  ;;  %v2453_v20 = vld [vmem:[#allocation13 + $0x258] sm:$0xff]  ;;  %v8636_v44 = vcombine.low %v2525_v21, %v2529_v42 }
 0x609   : > { %7274 = vmatprep.subr.bf16.mxu0 %v8669_v14  ;;  %v8565_v34 = vcombine.high %v2453_v20, %v2457_v8  ;;  %v2697_v40 = vld [vmem:[#allocation13 + $0x9f8] sm:$0xff] }
 0x60a   : > { %v6982_v41 = vpop.f32.mrf.mxu0  ;;  %v8805_v14 = vcombine.high %v2693_v33, %v2697_v40  ;;  %v2681_v43 = vld [vmem:[#allocation13 + $0x978] sm:$0xff] }
 0x60b   : > { %7254 = vmatpush2.bf16.msra.mxu1 %v8588_v62  ;;  %7275 = vmatpush1.bf16.msra.mxu0 %v8668_v31  ;;  %v8628_v62 = vcombine.low %v2517_v22, %v2521_v47  ;;  %v8804_v31 = vcombine.low %v2693_v33, %v2697_v40  ;;  %v8788_v0 = vcombine.low %v2677_v50, %v2681_v43  ;;  %v2657_v21 = vld [vmem:[#allocation13 + $0x8b8] sm:$0xff] }
 0x60c   : > { %v6983_v61 = vpop.f32.mrf.mxu0  ;;  %7255 = vmatprep.subr.bf16.mxu1 %v8581_v32  ;;  %7276 = vmatprep.subr.bf16.mxu0 %v8661_v15  ;;  %v2629_v32 = vld [vmem:[#allocation13 + $0x7d8] sm:$0xff] }
 0x60d   : > { %v2621_v61 = vld [vmem:[#allocation13 + $0x798] sm:$0xff] }
 0x60e   : > { %v6937_v1 = vpop.f32.mrf.mxu1  ;;  %v2649_v22 = vld [vmem:[#allocation13 + $0x878] sm:$0xff] }
 0x60f   : > { %v6938_v12 = vadd.f32 %v6937_v1, %v11308_v56  ;;  %7256 = vmatpush2.bf16.msra.mxu1 %v8580_v35  ;;  %7277 = vmatpush1.bf16.msra.mxu0 %v8660_v46  ;;  %v8564_v56 = vcombine.low %v2453_v20, %v2457_v8  ;;  %v8741_v35 = vcombine.high %v2629_v32, %v2633_v45  ;;  %v2673_v20 = vld [vmem:[#allocation13 + $0x938] sm:$0xff] }
 0x610   : > { %v6939_v63 = vpop.f32.mrf.mxu1  ;;  %7257 = vmatprep.subr.bf16.mxu1 %v8573_v52  ;;  %7278 = vmatprep.subr.bf16.mxu0 %v8653_v7  ;;  %v8789_v46 = vcombine.high %v2677_v50, %v2681_v43  ;;  %v2625_v52 = vld [vmem:[#allocation13 + $0x7b8] sm:$0xff]  ;;  %v8740_v8 = vcombine.low %v2629_v32, %v2633_v45 }
 0x611   : > { %v11316_v58 = vadd.f32 %v6978_v54, %v6938_v12  ;;  %v6940_v55 = vadd.f32 %v6939_v63, %v11311_v3  ;;  %v8556_v3 = vcombine.low %v2445_v6, %v2449_v10  ;;  %v2689_v54 = vld [vmem:[#allocation13 + $0x9b8] sm:$0xff] }
 0x612   : > { %v6941_v59 = vpop.f32.mrf.mxu1  ;;  %v8797_v15 = vcombine.high %v2685_v17, %v2689_v54  ;;  %v8796_v41 = vcombine.low %v2685_v17, %v2689_v54  ;;  %v2669_v7 = vld [vmem:[#allocation13 + $0x918] sm:$0xff] }
 0x613   : > { %v11319_v37 = vadd.f32 %v6980_v53, %v6940_v55  ;;  %7258 = vmatpush2.bf16.msra.mxu1 %v8572_v48  ;;  %7279 = vmatpush1.bf16.msra.mxu0 %v8652_v49  ;;  %v8621_v53 = vcombine.high %v2509_v60, %v2513_v13  ;;  %v8781_v30 = vcombine.high %v2669_v7, %v2673_v20  ;;  %v2613_v1 = vld [vmem:[#allocation13 + $0x758] sm:$0xff] }
 0x614   : > { %v6942_v9 = vpop.f32.mrf.mxu1  ;;  %7259 = vmatprep.subr.bf16.mxu1 %v8565_v34  ;;  %7280 = vmatprep.subr.bf16.mxu0 %v8645_v18  ;;  %v2617_v12 = vld [vmem:[#allocation13 + $0x778] sm:$0xff]  ;;  %v8732_v49 = vcombine.low %v2621_v61, %v2625_v52  ;;  %v8780_v63 = vcombine.low %v2669_v7, %v2673_v20 }
 0x615   : > { %v2661_v48 = vld [vmem:[#allocation13 + $0x8d8] sm:$0xff]  ;;  %v8725_v34 = vcombine.high %v2613_v1, %v2617_v12  ;;  %v8724_v42 = vcombine.low %v2613_v1, %v2617_v12 }
 0x616   : > { %v2605_v6 = vld [vmem:[#allocation13 + $0x718] sm:$0xff] }
 0x617   : > { %7260 = vmatpush2.bf16.msra.mxu1 %v8564_v56  ;;  %7281 = vmatpush1.bf16.msra.mxu0 %v8644_v5  ;;  %v2609_v55 = vld [vmem:[#allocation13 + $0x738] sm:$0xff] }
 0x618   : > { %7261 = vmatprep.subr.bf16.mxu1 %v8557_v38  ;;  %7282 = vmatprep.subr.bf16.mxu0 %v8637_v26  ;;  %v2653_v10 = vld [vmem:[#allocation13 + $0x898] sm:$0xff]  ;;  %v8717_v56 = vcombine.high %v2605_v6, %v2609_v55  ;;  %v8716_v47 = vcombine.low %v2605_v6, %v2609_v55 }
 0x619   : > { %v8765_v5 = vcombine.high %v2653_v10, %v2657_v21  ;;  %v2597_v9 = vld [vmem:[#allocation13 + $0x6d8] sm:$0xff]  ;;  %v8764_v33 = vcombine.low %v2653_v10, %v2657_v21 }
 0x61a   : > { %v2601_v38 = vld [vmem:[#allocation13 + $0x6f8] sm:$0xff] }
 0x61b   : > { %7262 = vmatpush2.bf16.msra.mxu1 %v8556_v3  ;;  %7283 = vmatpush1.bf16.msra.mxu0 %v8636_v44  ;;  %v2645_v26 = vld [vmem:[#allocation13 + $0x858] sm:$0xff]  ;;  %v8709_v40 = vcombine.high %v2597_v9, %v2601_v38  ;;  %v8708_v13 = vcombine.low %v2597_v9, %v2601_v38 }
 0x61c   : > { %7284 = vmatprep.subr.bf16.mxu0 %v8629_v36  ;;  %7313 = vmatprep.subr.bf16.mxu1 %v8805_v14  ;;  %v8757_v3 = vcombine.high %v2645_v26, %v2649_v22  ;;  %v2589_v44 = vld [vmem:[#allocation13 + $0x698] sm:$0xff]  ;;  %v8756_v17 = vcombine.low %v2645_v26, %v2649_v22  ;;  %v3074_v22 = vsub.s32 5, %v11235_v25 }
 0x61d   : > { %v2593_v36 = vld [vmem:[#allocation13 + $0x6b8] sm:$0xff] }
 0x61e   : > { %7264 = vmatmul.mubr.bf16.vlgmr.msra.gmra.mxu1 %v11169_v23  ;;  %v8733_v23 = vcombine.high %v2621_v61, %v2625_v52  ;;  %v2637_v14 = vld [vmem:[#allocation13 + $0x818] sm:$0xff]  ;;  %v8701_v54 = vcombine.high %v2589_v44, %v2593_v36  ;;  %v8700_v45 = vcombine.low %v2589_v44, %v2593_v36 }
 0x61f   : > { %7285 = vmatpush1.bf16.msra.mxu0 %v8628_v62  ;;  %7314 = vmatpush1.bf16.msra.mxu1 %v8804_v31  ;;  %v2641_v60 = vld [vmem:[#allocation13 + $0x838] sm:$0xff] }
 0x620   : > { %7345 = vmatprep.mubr.bf16.mxu1 %v11204_v2  ;;  %7286 = vmatprep.subr.bf16.mxu0 %v8621_v53  ;;  %v2665_v2 = vld [vmem:[#allocation13 + $0x8f8] sm:$0xff]  ;;  %v8749_v62 = vcombine.high %v2637_v14, %v2641_v60  ;;  %v8748_v50 = vcombine.low %v2637_v14, %v2641_v60 }
 0x621   : > { %7315 = vmatprep.subr.bf16.mxu1 %v8797_v15  ;;  %v8773_v18 = vcombine.high %v2661_v48, %v2665_v2  ;;  %v8772_v59 = vcombine.low %v2661_v48, %v2665_v2  ;;  %v2581_v31 = vld [vmem:[#allocation13 + $0x658] sm:$0xff] }
 0x622   : > { %v2585_v53 = vld [vmem:[#allocation13 + $0x678] sm:$0xff] }
 0x623   : > { %7287 = vmatpush1.bf16.msra.mxu0 %v8620_v27  ;;  %7316 = vmatpush1.bf16.msra.mxu1 %v8796_v41  ;;  %v2757_v32 = vld [vmem:[#allocation13 + $0xbd8] sm:$0xff]  ;;  %v8693_v43 = vcombine.high %v2581_v31, %v2585_v53  ;;  %v8692_v52 = vcombine.low %v2581_v31, %v2585_v53 }
 0x624   : > { %7288 = vmatprep.subr.bf16.mxu0 %v8741_v35  ;;  %7317 = vmatprep.subr.bf16.mxu1 %v8789_v46  ;;  %v2761_v15 = vld [vmem:[#allocation13 + $0xbf8] sm:$0xff] }
 0x625   : > { %v8869_v27 = vcombine.high %v2757_v32, %v2761_v15  ;;  %v2573_v41 = vld [vmem:[#allocation13 + $0x618] sm:$0xff]  ;;  %v8868_v7 = vcombine.low %v2757_v32, %v2761_v15 }
 0x626   : > { %v2577_v35 = vld [vmem:[#allocation13 + $0x638] sm:$0xff] }
 0x627   : > { %7289 = vmatpush2.bf16.msra.mxu0 %v8740_v8  ;;  %7318 = vmatpush1.bf16.msra.mxu1 %v8788_v0  ;;  %v2749_v46 = vld [vmem:[#allocation13 + $0xb98] sm:$0xff]  ;;  %v8685_v20 = vcombine.high %v2573_v41, %v2577_v35  ;;  %v8684_v12 = vcombine.low %v2573_v41, %v2577_v35 }
 0x628   : > { %7290 = vmatprep.subr.bf16.mxu0 %v8733_v23  ;;  %7319 = vmatprep.subr.bf16.mxu1 %v8781_v30  ;;  %v2753_v61 = vld [vmem:[#allocation13 + $0xbb8] sm:$0xff] }
 0x629   : > { %v8861_v8 = vcombine.high %v2749_v46, %v2753_v61  ;;  %v2741_v0 = vld [vmem:[#allocation13 + $0xb58] sm:$0xff]  ;;  %v8860_v48 = vcombine.low %v2749_v46, %v2753_v61 }
 0x62a   : > { %v2745_v23 = vld [vmem:[#allocation13 + $0xb78] sm:$0xff] }
 0x62b   : > { %7291 = vmatpush2.bf16.msra.mxu0 %v8732_v49  ;;  %7320 = vmatpush1.bf16.msra.mxu1 %v8780_v63  ;;  %v2821_v30 = vld [vmem:[#allocation13 + $0xdd8] sm:$0xff]  ;;  %v8853_v2 = vcombine.high %v2741_v0, %v2745_v23  ;;  %v8852_v55 = vcombine.low %v2741_v0, %v2745_v23 }
 0x62c   : > { %7292 = vmatprep.subr.bf16.mxu0 %v8725_v34  ;;  %7321 = vmatprep.subr.bf16.mxu1 %v8773_v18  ;;  %v2825_v1 = vld [vmem:[#allocation13 + $0xdf8] sm:$0xff] }
 0x62d   : > { %v8933_v49 = vcombine.high %v2821_v30, %v2825_v1  ;;  %v2733_v63 = vld [vmem:[#allocation13 + $0xb18] sm:$0xff]  ;;  %v8932_v10 = vcombine.low %v2821_v30, %v2825_v1 }
 0x62e   : > { %v2737_v34 = vld [vmem:[#allocation13 + $0xb38] sm:$0xff] }
 0x62f   : > { %7293 = vmatpush2.bf16.msra.mxu0 %v8724_v42  ;;  %7322 = vmatpush1.bf16.msra.mxu1 %v8772_v59  ;;  %v2813_v18 = vld [vmem:[#allocation13 + $0xd98] sm:$0xff]  ;;  %v8845_v21 = vcombine.high %v2733_v63, %v2737_v34  ;;  %v3070_v59 = vsub.s32 4, %v11235_v25 }
 0x630   : > { %7294 = vmatprep.subr.bf16.mxu0 %v8717_v56  ;;  %7323 = vmatprep.subr.bf16.mxu1 %v8765_v5  ;;  %v2817_v6 = vld [vmem:[#allocation13 + $0xdb8] sm:$0xff] }
 0x631   : > { %v2725_v42 = vld [vmem:[#allocation13 + $0xad8] sm:$0xff]  ;;  %v8925_v56 = vcombine.high %v2813_v18, %v2817_v6  ;;  %v3071_v14 = vrot.slane %v11284_v19, %v3070_v59 }
 0x632   : > { %v2729_v5 = vld [vmem:[#allocation13 + $0xaf8] sm:$0xff] }
 0x633   : > { %7295 = vmatpush2.bf16.msra.mxu0 %v8716_v47  ;;  %7324 = vmatpush1.bf16.msra.mxu1 %v8764_v33  ;;  %v2805_v9 = vld [vmem:[#allocation13 + $0xd58] sm:$0xff]  ;;  %v8844_v47 = vcombine.low %v2733_v63, %v2737_v34  ;;  %v8924_v33 = vcombine.low %v2813_v18, %v2817_v6 }
 0x634   : > { %7296 = vmatprep.subr.bf16.mxu0 %v8709_v40  ;;  %7325 = vmatprep.subr.bf16.mxu1 %v8757_v3  ;;  %v2809_v38 = vld [vmem:[#allocation13 + $0xd78] sm:$0xff]  ;;  %v8837_v3 = vcombine.high %v2725_v42, %v2729_v5 }
 0x635   : > { %v8917_v44 = vcombine.high %v2805_v9, %v2809_v38  ;;  %v2717_v36 = vld [vmem:[#allocation13 + $0xa98] sm:$0xff]  ;;  %v8916_v31 = vcombine.low %v2805_v9, %v2809_v38 }
 0x636   : > { %v2721_v60 = vld [vmem:[#allocation13 + $0xab8] sm:$0xff] }
 0x637   : > { %7297 = vmatpush2.bf16.msra.mxu0 %v8708_v13  ;;  %7326 = vmatpush1.bf16.msra.mxu1 %v8756_v17  ;;  %v2797_v13 = vld [vmem:[#allocation13 + $0xd18] sm:$0xff]  ;;  %v8828_v35 = vcombine.low %v2717_v36, %v2721_v60 }
 0x638   : > { %7298 = vmatprep.subr.bf16.mxu0 %v8701_v54  ;;  %7327 = vmatprep.subr.bf16.mxu1 %v8749_v62  ;;  %v2801_v17 = vld [vmem:[#allocation13 + $0xd38] sm:$0xff]  ;;  %v3075_v54 = vrot.slane %v11284_v19, %v3074_v22  ;;  %v8836_v62 = vcombine.low %v2725_v42, %v2729_v5 }
 0x639   : > { %v8909_v32 = vcombine.high %v2797_v13, %v2801_v17  ;;  %v2709_v15 = vld [vmem:[#allocation13 + $0xa58] sm:$0xff]  ;;  %v8908_v19 = vcombine.low %v2797_v13, %v2801_v17 }
 0x63a   : > { %v2705_v23 = vld [vmem:[#allocation13 + $0xa38] sm:$0xff] }
 0x63b   : > { %7299 = vmatpush2.bf16.msra.mxu0 %v8700_v45  ;;  %7328 = vmatpush1.bf16.msra.mxu1 %v8748_v50  ;;  %v2713_v50 = vld [vmem:[#allocation13 + $0xa78] sm:$0xff] }
 0x63c   : > { %7300 = vmatprep.subr.bf16.mxu0 %v8693_v43  ;;  %7329 = vmatprep.subr.bf16.mxu1 %v8869_v27  ;;  %v2789_v43 = vld [vmem:[#allocation13 + $0xcd8] sm:$0xff] }
 0x63d   : > { %v2793_v27 = vld [vmem:[#allocation13 + $0xcf8] sm:$0xff] }
 0x63e   : > { %v2781_v30 = vld [vmem:[#allocation13 + $0xc98] sm:$0xff] }
 0x63f   : > { %7301 = vmatpush2.bf16.msra.mxu0 %v8692_v52  ;;  %7330 = vmatpush2.bf16.msra.mxu1 %v8868_v7  ;;  %v8821_v7 = vcombine.high %v2709_v15, %v2713_v50  ;;  %v2785_v1 = vld [vmem:[#allocation13 + $0xcb8] sm:$0xff] }
 0x640   : > { %7302 = vmatprep.subr.bf16.mxu0 %v8685_v20  ;;  %7331 = vmatprep.subr.bf16.mxu1 %v8861_v8  ;;  %v8901_v20 = vcombine.high %v2789_v43, %v2793_v27  ;;  %v2701_v8 = vld [vmem:[#allocation13 + $0xa18] sm:$0xff]  ;;  %v8893_v34 = vcombine.high %v2781_v30, %v2785_v1  ;;  %v8892_v42 = vcombine.low %v2781_v30, %v2785_v1 }
 0x641   : > { %v8813_v63 = vcombine.high %v2701_v8, %v2705_v23  ;;  %v2773_v18 = vld [vmem:[#allocation13 + $0xc58] sm:$0xff] }
 0x642   : > { %v2777_v6 = vld [vmem:[#allocation13 + $0xc78] sm:$0xff] }
 0x643   : > { %7303 = vmatpush2.bf16.msra.mxu0 %v8684_v12  ;;  %7332 = vmatpush2.bf16.msra.mxu1 %v8860_v48  ;;  %v8820_v48 = vcombine.low %v2709_v15, %v2713_v50  ;;  %v8885_v59 = vcombine.high %v2773_v18, %v2777_v6  ;;  %v2765_v5 = vld [vmem:[#allocation13 + $0xc18] sm:$0xff]  ;;  %v8884_v22 = vcombine.low %v2773_v18, %v2777_v6 }
 0x644   : > { %7333 = vmatprep.subr.bf16.mxu1 %v8853_v2  ;;  %7354 = vmatprep.subr.bf16.mxu0 %v8933_v49  ;;  %v8900_v2 = vcombine.low %v2789_v43, %v2793_v27  ;;  %v2769_v9 = vld [vmem:[#allocation13 + $0xc38] sm:$0xff] }
 0x645   : > { %v2941_v38 = vld [vmem:[#allocation13 + $0x1198] sm:$0xff] }
 0x646   : > { %v7019_v26 = vpop.f32.mrf.mxu0  ;;  %7305 = vmatmul.mubr.bf16.vlgmr.msra.gmra.mxu0 %v11178_v24  ;;  %v2873_v50 = vld [vmem:[#allocation13 + $0xf78] sm:$0xff] }
 0x647   : > { %7334 = vmatpush2.bf16.msra.mxu1 %v8852_v55  ;;  %7355 = vmatpush1.bf16.msra.mxu0 %v8932_v10  ;;  %v7020_v45 = vadd.f32 %v7019_v26, %v3071_v14  ;;  %v2949_v55 = vld [vmem:[#allocation13 + $0x11d8] sm:$0xff] }
 0x648   : > { %7386 = vmatprep.mubr.bf16.mxu0 %v11196_v11  ;;  %v7021_v40 = vpop.f32.mrf.mxu0  ;;  %7335 = vmatprep.subr.bf16.mxu1 %v8845_v21  ;;  %v8829_v11 = vcombine.high %v2717_v36, %v2721_v60  ;;  %v2953_v10 = vld [vmem:[#allocation13 + $0x11f8] sm:$0xff]  ;;  %v8812_v21 = vcombine.low %v2701_v8, %v2705_v23  ;;  %v8876_v60 = vcombine.low %v2765_v5, %v2769_v9 }
 0x649   : > { %7356 = vmatprep.subr.bf16.mxu0 %v8925_v56  ;;  %v7022_v46 = vadd.f32 %v7021_v40, %v3075_v54  ;;  %v9061_v56 = vcombine.high %v2949_v55, %v2953_v10  ;;  %v2945_v26 = vld [vmem:[#allocation13 + $0x11b8] sm:$0xff] }
 0x64a   : > { %v7023_v24 = vpop.f32.mrf.mxu0  ;;  %v2885_v40 = vld [vmem:[#allocation13 + $0xfd8] sm:$0xff]  ;;  %v9052_v13 = vcombine.low %v2941_v38, %v2945_v26 }
 0x64b   : > { %7336 = vmatpush2.bf16.msra.mxu1 %v8844_v47  ;;  %7357 = vmatpush1.bf16.msra.mxu0 %v8924_v33  ;;  %v9060_v47 = vcombine.low %v2949_v55, %v2953_v10  ;;  %v8877_v33 = vcombine.high %v2765_v5, %v2769_v9  ;;  %v2933_v36 = vld [vmem:[#allocation13 + $0x1158] sm:$0xff] }
 0x64c   : > { %v7024_v53 = vpop.f32.mrf.mxu0  ;;  %7337 = vmatprep.subr.bf16.mxu1 %v8837_v3  ;;  %7358 = vmatprep.subr.bf16.mxu0 %v8917_v44  ;;  %v9053_v3 = vcombine.high %v2941_v38, %v2945_v26  ;;  %v2889_v44 = vld [vmem:[#allocation13 + $0xff8] sm:$0xff] }
 0x64d   : > { %v2937_v14 = vld [vmem:[#allocation13 + $0x1178] sm:$0xff]  ;;  %v8997_v17 = vcombine.high %v2885_v40, %v2889_v44 }
 0x64e   : > { %v7060_v41 = vpop.f32.mrf.mxu1  ;;  %v9045_v24 = vcombine.high %v2933_v36, %v2937_v14  ;;  %v2877_v54 = vld [vmem:[#allocation13 + $0xf98] sm:$0xff] }
 0x64f   : > { %v11329_v61 = vadd.f32 %v7060_v41, %v7020_v45  ;;  %7338 = vmatpush2.bf16.msra.mxu1 %v8836_v62  ;;  %7359 = vmatpush1.bf16.msra.mxu0 %v8916_v31  ;;  %v2881_v62 = vld [vmem:[#allocation13 + $0xfb8] sm:$0xff] }
 0x650   : > { %v7062_v52 = vpop.f32.mrf.mxu1  ;;  %7339 = vmatprep.subr.bf16.mxu1 %v8829_v11  ;;  %7360 = vmatprep.subr.bf16.mxu0 %v8909_v32  ;;  %v2925_v31 = vld [vmem:[#allocation13 + $0x1118] sm:$0xff]  ;;  %v8996_v11 = vcombine.low %v2885_v40, %v2889_v44  ;;  %v9044_v32 = vcombine.low %v2933_v36, %v2937_v14  ;;  %v8988_v27 = vcombine.low %v2877_v54, %v2881_v62 }
 0x651   : > { %v11331_v0 = vadd.f32 %v7062_v52, %v7022_v46  ;;  %v2929_v53 = vld [vmem:[#allocation13 + $0x1138] sm:$0xff] }
 0x652   : > { %v7064_v12 = vpop.f32.mrf.mxu1  ;;  %v9037_v15 = vcombine.high %v2925_v31, %v2929_v53  ;;  %v2869_v45 = vld [vmem:[#allocation13 + $0xf58] sm:$0xff]  ;;  %v9036_v41 = vcombine.low %v2925_v31, %v2929_v53 }
 0x653   : > { %7340 = vmatpush2.bf16.msra.mxu1 %v8828_v35  ;;  %7361 = vmatpush1.bf16.msra.mxu0 %v8908_v19  ;;  %v2917_v43 = vld [vmem:[#allocation13 + $0x10d8] sm:$0xff]  ;;  %v8981_v35 = vcombine.high %v2869_v45, %v2873_v50  ;;  %v8980_v8 = vcombine.low %v2869_v45, %v2873_v50 }
 0x654   : > { %v7065_v49 = vpop.f32.mrf.mxu1  ;;  %7341 = vmatprep.subr.bf16.mxu1 %v8821_v7  ;;  %7362 = vmatprep.subr.bf16.mxu0 %v8901_v20  ;;  %v2861_v19 = vld [vmem:[#allocation13 + $0xf18] sm:$0xff] }
 0x655   : > { %v2865_v52 = vld [vmem:[#allocation13 + $0xf38] sm:$0xff] }
 0x656   : > { %v2909_v7 = vld [vmem:[#allocation13 + $0x1098] sm:$0xff]  ;;  %v8973_v30 = vcombine.high %v2861_v19, %v2865_v52 }
 0x657   : > { %7342 = vmatpush2.bf16.msra.mxu1 %v8820_v48  ;;  %7363 = vmatpush1.bf16.msra.mxu0 %v8900_v2  ;;  %v2913_v20 = vld [vmem:[#allocation13 + $0x10b8] sm:$0xff] }
 0x658   : > { %7343 = vmatprep.subr.bf16.mxu1 %v8813_v63  ;;  %7364 = vmatprep.subr.bf16.mxu0 %v8893_v34  ;;  %v9021_v1 = vcombine.high %v2909_v7, %v2913_v20  ;;  %v2853_v12 = vld [vmem:[#allocation13 + $0xed8] sm:$0xff]  ;;  %v8972_v63 = vcombine.low %v2861_v19, %v2865_v52  ;;  %v9020_v34 = vcombine.low %v2909_v7, %v2913_v20 }
 0x659   : > { %v2857_v48 = vld [vmem:[#allocation13 + $0xef8] sm:$0xff] }
 0x65a   : > { %v2901_v2 = vld [vmem:[#allocation13 + $0x1058] sm:$0xff]  ;;  %v8965_v18 = vcombine.high %v2853_v12, %v2857_v48 }
 0x65b   : > { %7344 = vmatpush2.bf16.msra.mxu1 %v8812_v21  ;;  %7365 = vmatpush1.bf16.msra.mxu0 %v8892_v42  ;;  %v2905_v49 = vld [vmem:[#allocation13 + $0x1078] sm:$0xff] }
 0x65c   : > { %7366 = vmatprep.subr.bf16.mxu0 %v8885_v59  ;;  %7395 = vmatprep.subr.bf16.mxu1 %v9061_v56  ;;  %v9013_v6 = vcombine.high %v2901_v2, %v2905_v49  ;;  %v2845_v55 = vld [vmem:[#allocation13 + $0xe98] sm:$0xff]  ;;  %v8964_v59 = vcombine.low %v2853_v12, %v2857_v48  ;;  %v9012_v56 = vcombine.low %v2901_v2, %v2905_v49 }
 0x65d   : > { %v2849_v10 = vld [vmem:[#allocation13 + $0xeb8] sm:$0xff] }
 0x65e   : > { %7346 = vmatmul.mubr.bf16.vlgmr.msra.gmra.mxu1 %v11211_v29  ;;  %v8989_v29 = vcombine.high %v2877_v54, %v2881_v62  ;;  %v2893_v21 = vld [vmem:[#allocation13 + $0x1018] sm:$0xff]  ;;  %v8957_v5 = vcombine.high %v2845_v55, %v2849_v10 }
 0x65f   : > { %7367 = vmatpush1.bf16.msra.mxu0 %v8884_v22  ;;  %7396 = vmatpush1.bf16.msra.mxu1 %v9060_v47  ;;  %v2897_v42 = vld [vmem:[#allocation13 + $0x1038] sm:$0xff] }
 0x660   : > { %7427 = vmatprep.mubr.bf16.mxu1 %v11216_v39  ;;  %7368 = vmatprep.subr.bf16.mxu0 %v8877_v33  ;;  %v2921_v39 = vld [vmem:[#allocation13 + $0x10f8] sm:$0xff]  ;;  %v9005_v9 = vcombine.high %v2893_v21, %v2897_v42  ;;  %v8956_v33 = vcombine.low %v2845_v55, %v2849_v10  ;;  %v9004_v40 = vcombine.low %v2893_v21, %v2897_v42 }
 0x661   : > { %7397 = vmatprep.subr.bf16.mxu1 %v9053_v3  ;;  %v9029_v46 = vcombine.high %v2917_v43, %v2921_v39  ;;  %v9028_v23 = vcombine.low %v2917_v43, %v2921_v39  ;;  %v2837_v38 = vld [vmem:[#allocation13 + $0xe58] sm:$0xff] }
 0x662   : > { %v2841_v26 = vld [vmem:[#allocation13 + $0xe78] sm:$0xff] }
 0x663   : > { %7369 = vmatpush1.bf16.msra.mxu0 %v8876_v60  ;;  %7398 = vmatpush1.bf16.msra.mxu1 %v9052_v13  ;;  %v3013_v22 = vld [vmem:[#allocation13 + $0x13d8] sm:$0xff]  ;;  %v8949_v3 = vcombine.high %v2837_v38, %v2841_v26 }
 0x664   : > { %7370 = vmatprep.subr.bf16.mxu0 %v8997_v17  ;;  %7399 = vmatprep.subr.bf16.mxu1 %v9045_v24  ;;  %v3017_v47 = vld [vmem:[#allocation13 + $0x13f8] sm:$0xff]  ;;  %v8948_v17 = vcombine.low %v2837_v38, %v2841_v26 }
 0x665   : > { %v9125_v44 = vcombine.high %v3013_v22, %v3017_v47  ;;  %v2829_v36 = vld [vmem:[#allocation13 + $0xe18] sm:$0xff]  ;;  %v9124_v24 = vcombine.low %v3013_v22, %v3017_v47  ;;  %v9887_v47 = vld [vmem:[#allocation16 + $0x78] sm:$0xff]  }
 0x666   : > { %v2833_v14 = vld [vmem:[#allocation13 + $0xe38] sm:$0xff] }
 0x667   : > { %7371 = vmatpush2.bf16.msra.mxu0 %v8996_v11  ;;  %7400 = vmatpush1.bf16.msra.mxu1 %v9044_v32  ;;  %v3005_v60 = vld [vmem:[#allocation13 + $0x1398] sm:$0xff]  ;;  %v8941_v54 = vcombine.high %v2829_v36, %v2833_v14 }
 0x668   : > { %7372 = vmatprep.subr.bf16.mxu0 %v8989_v29  ;;  %7401 = vmatprep.subr.bf16.mxu1 %v9037_v15  ;;  %v3009_v13 = vld [vmem:[#allocation13 + $0x13b8] sm:$0xff]  ;;  %v8940_v29 = vcombine.low %v2829_v36, %v2833_v14  ;;  %v9888_v14 = vld [vmem:[#allocation16 + $0x38] sm:$0xff]  }
 0x669   : > { %v9117_v62 = vcombine.high %v3005_v60, %v3009_v13  ;;  %v2997_v31 = vld [vmem:[#allocation13 + $0x1358] sm:$0xff]  ;;  %v9116_v15 = vcombine.low %v3005_v60, %v3009_v13 }
 0x66a   : > { %v3001_v53 = vld [vmem:[#allocation13 + $0x1378] sm:$0xff] }
 0x66b   : > { %7373 = vmatpush2.bf16.msra.mxu0 %v8988_v27  ;;  %7402 = vmatpush1.bf16.msra.mxu1 %v9036_v41  ;;  %v3045_v11 = vld [vmem:[#allocation13 + $0x14d8] sm:$0xff]  ;;  %v9109_v45 = vcombine.high %v2997_v31, %v3001_v53 }
 0x66c   : > { %7374 = vmatprep.subr.bf16.mxu0 %v8981_v35  ;;  %7403 = vmatprep.subr.bf16.mxu1 %v9029_v46  ;;  %v3049_v32 = vld [vmem:[#allocation13 + $0x14f8] sm:$0xff]  ;;  %v9108_v35 = vcombine.low %v2997_v31, %v3001_v53  ;;  %v9892_v53 = vld [vmem:[#allocation16 + $0xf8] sm:$0xff]  }
 0x66d   : > { %v9157_v50 = vcombine.high %v3045_v11, %v3049_v32  ;;  %v2989_v43 = vld [vmem:[#allocation13 + $0x1318] sm:$0xff]  ;;  %v9156_v46 = vcombine.low %v3045_v11, %v3049_v32  ;;  %v7480_v11 = vmax.f32 %v11319_v37, 0.0  ;;  %v9893_v32 = vld [vmem:[#allocation16 + $0x28] sm:$0xff]   ;;  %v9899_v37 = vld [vmem:[#allocation16 + $0x58] sm:$0xff]  }
 0x66e   : > { %v2993_v39 = vld [vmem:[#allocation13 + $0x1338] sm:$0xff] }
 0x66f   : > { %7375 = vmatpush2.bf16.msra.mxu0 %v8980_v8  ;;  %7404 = vmatpush1.bf16.msra.mxu1 %v9028_v23  ;;  %v3037_v27 = vld [vmem:[#allocation13 + $0x1498] sm:$0xff]  ;;  %v9101_v19 = vcombine.high %v2989_v43, %v2993_v39  ;;  %v9100_v12 = vcombine.low %v2989_v43, %v2993_v39  ;;  %v9897_v39 = vld [vmem:[#allocation16 + $0x20] sm:$0xff]  }
 0x670   : > { %7376 = vmatprep.subr.bf16.mxu0 %v8973_v30  ;;  %7405 = vmatprep.subr.bf16.mxu1 %v9021_v1  ;;  %v3041_v41 = vld [vmem:[#allocation13 + $0x14b8] sm:$0xff] }
 0x671   : > { %v9149_v52 = vcombine.high %v3037_v27, %v3041_v41  ;;  %v2981_v7 = vld [vmem:[#allocation13 + $0x12d8] sm:$0xff]  ;;  %v9148_v48 = vcombine.low %v3037_v27, %v3041_v41 }
 0x672   : > { %v2985_v20 = vld [vmem:[#allocation13 + $0x12f8] sm:$0xff] }
 0x673   : > { %7377 = vmatpush2.bf16.msra.mxu0 %v8972_v63  ;;  %7406 = vmatpush1.bf16.msra.mxu1 %v9020_v34  ;;  %v3029_v8 = vld [vmem:[#allocation13 + $0x1458] sm:$0xff]  ;;  %v9093_v49 = vcombine.high %v2981_v7, %v2985_v20 }
 0x674   : > { %7378 = vmatprep.subr.bf16.mxu0 %v8965_v18  ;;  %7407 = vmatprep.subr.bf16.mxu1 %v9013_v6  ;;  %v3033_v23 = vld [vmem:[#allocation13 + $0x1478] sm:$0xff] }
 0x675   : > { %v9141_v63 = vcombine.high %v3029_v8, %v3033_v23  ;;  %v2973_v34 = vld [vmem:[#allocation13 + $0x1298] sm:$0xff]  ;;  %v9140_v10 = vcombine.low %v3029_v8, %v3033_v23  ;;  %v9906_v23 = vld [vmem:[#allocation16 + $0xa0] sm:$0xff]  }
 0x676   : > { %v2977_v18 = vld [vmem:[#allocation13 + $0x12b8] sm:$0xff] }
 0x677   : > { %7379 = vmatpush2.bf16.msra.mxu0 %v8964_v59  ;;  %7408 = vmatpush1.bf16.msra.mxu1 %v9012_v56  ;;  %v3021_v6 = vld [vmem:[#allocation13 + $0x1418] sm:$0xff]  ;;  %v9085_v42 = vcombine.high %v2973_v34, %v2977_v18  ;;  %v9084_v38 = vcombine.low %v2973_v34, %v2977_v18  ;;  %v9913_v18 = vld [vmem:[#allocation16] sm:$0xff]  }
 0x678   : > { %7380 = vmatprep.subr.bf16.mxu0 %v8957_v5  ;;  %7409 = vmatprep.subr.bf16.mxu1 %v9005_v9  ;;  %v3025_v55 = vld [vmem:[#allocation13 + $0x1438] sm:$0xff] }
 0x679   : > { %v9133_v59 = vcombine.high %v3021_v6, %v3025_v55  ;;  %v2965_v56 = vld [vmem:[#allocation13 + $0x1258] sm:$0xff]  ;;  %v9132_v26 = vcombine.low %v3021_v6, %v3025_v55  ;;  %v7477_v55 = vmax.f32 %v11268_v57, 0.0  ;;  %v7479_v57 = vmax.f32 %v11316_v58, 0.0 }
 0x67a   : > { %v2969_v5 = vld [vmem:[#allocation13 + $0x1278] sm:$0xff] }
 0x67b   : > { %7381 = vmatpush2.bf16.msra.mxu0 %v8956_v33  ;;  %7410 = vmatpush1.bf16.msra.mxu1 %v9004_v40  ;;  %v2957_v33 = vld [vmem:[#allocation13 + $0x1218] sm:$0xff]  ;;  %v9076_v36 = vcombine.low %v2965_v56, %v2969_v5 }
 0x67c   : > { %7382 = vmatprep.subr.bf16.mxu0 %v8949_v3  ;;  %7411 = vmatprep.subr.bf16.mxu1 %v9125_v44  ;;  %v2961_v40 = vld [vmem:[#allocation13 + $0x1238] sm:$0xff]  ;;  %v7478_v3 = vmax.f32 %v11272_v4, 0.0  ;;  %v9891_v4 = vld [vmem:[#allocation16 + $0x68] sm:$0xff]  }
 0x67d   : > { %v9069_v13 = vcombine.high %v2957_v33, %v2961_v40  ;;  %v9890_v31 = vld [vmem:[#allocation16 + $0x30] sm:$0xff]  }
 0x67e   : > { %v9898_v27 = vld [vmem:[#allocation16 + $0xb0] sm:$0xff]  }
 0x67f   : > { %7383 = vmatpush2.bf16.msra.mxu0 %v8948_v17  ;;  %7412 = vmatpush2.bf16.msra.mxu1 %v9124_v24  ;;  %v9889_v17 = vld [vmem:[#allocation16 + $0x70] sm:$0xff]   ;;  %v7486_v24 = vpack.c.bf16 %v7478_v3, %v7478_v3  ;;  %v9927_v3 = vld [vmem:[#allocation16 + $0x158] sm:$0xff]  }
 0x680   : > { %7384 = vmatprep.subr.bf16.mxu0 %v8941_v54  ;;  %7413 = vmatprep.subr.bf16.mxu1 %v9117_v62  ;;  %v9953_v54 = vld [vmem:[#allocation2 + $0x28] ss:$0 sps:$4 sm:$0xff]   ;;  %v9068_v62 = vcombine.low %v2957_v33, %v2961_v40  ;;  %v9905_v8 = vld [vmem:[#allocation16 + $0x10] sm:$0xff]   ;;  %v9925_v33 = vld [vmem:[#allocation16 + $0x160] sm:$0xff]  }
 0x681   : > { %v9912_v34 = vld [vmem:[#allocation16 + $0xd0] sm:$0xff]   ;;  %v9926_v40 = vld [vmem:[#allocation16 + $0x120] sm:$0xff]  }
 0x682   : > { %v9914_v6 = vld [vmem:[#allocation16 + $0x90] sm:$0xff]  }
 0x683   : > { %7385 = vmatpush2.bf16.msra.mxu0 %v8940_v29  ;;  %7414 = vmatpush2.bf16.msra.mxu1 %v9116_v15  ;;  %v9894_v29 = vld [vmem:[#allocation16 + $0xb8] sm:$0xff]   ;;  %v9895_v15 = vld [vmem:[#allocation16 + $0x60] sm:$0xff]  }
 0x684   : > { %7415 = vmatprep.subr.bf16.mxu1 %v9109_v45  ;;  %7444 = vmatprep.subr.bf16.mxu0 %v9157_v50  ;;  %v9896_v45 = vld [vmem:[#allocation16 + $0xf0] sm:$0xff]   ;;  %v7488_v50 = vpack.c.bf16 %v7480_v11, %v7480_v11  ;;  %v9936_v11 = vld [vmem:[#allocation16 + $0x1b8] sm:$0xff]  }
 0x686   : > { %v7101_v30 = vpop.f32.mrf.mxu0  ;;  %7387 = vmatmul.mubr.bf16.vlgmr.msra.gmra.mxu0 %v11221_v51 }
 0x687   : > { %v11337_v1 = vadd.f32 %v7101_v30, %v11329_v61  ;;  %7416 = vmatpush2.bf16.msra.mxu1 %v9108_v35  ;;  %7445 = vmatpush1.bf16.msra.mxu0 %v9156_v46  ;;  %v9092_v61 = vcombine.low %v2981_v7, %v2985_v20  ;;  %v9900_v35 = vld [vmem:[#allocation16 + $0xe8] sm:$0xff]   ;;  %v9904_v20 = vld [vmem:[#allocation16 + $0xe0] sm:$0xff]  }
 0x688   : > { %v11339_v2 = vpop.f32.mrf.mxu0  ;;  %7417 = vmatprep.subr.bf16.mxu1 %v9101_v19  ;;  %7446 = vmatprep.subr.bf16.mxu0 %v9149_v52  ;;  %v9901_v19 = vld [vmem:[#allocation16 + $0x18] sm:$0xff]   ;;  %v9902_v52 = vld [vmem:[#allocation16 + $0xa8] sm:$0xff]  }
 0x689   : > { %7468 = vmatprep.mubr.bf16.mxu0 %v10265_v16  ;;  %v9077_v16 = vcombine.high %v2965_v56, %v2969_v5  ;;  %v9907_v30 = vld [vmem:[#allocation16 + $0x48] sm:$0xff]   ;;  %v9920_v56 = vld [vmem:[#allocation16 + $0x170] sm:$0xff]   ;;  %v9921_v5 = vld [vmem:[#allocation16 + $0x80] sm:$0xff]   ;;  %v7104_v58 = vadd.f32 %v11339_v2, %v11331_v0 }
 0x68a   : > { %v7105_v51 = vpop.f32.mrf.mxu0  ;;  %v9932_v0 = vld [vmem:[#allocation16 + $0x108] sm:$0xff]  }
 0x68b   : > { %7418 = vmatpush2.bf16.msra.mxu1 %v9100_v12  ;;  %7447 = vmatpush1.bf16.msra.mxu0 %v9148_v48  ;;  %v9908_v12 = vld [vmem:[#allocation16 + $0xd8] sm:$0xff]   ;;  %v9909_v48 = vld [vmem:[#allocation16 + $0x8] sm:$0xff]  }
 0x68c   : > { %v7106_v21 = vpop.f32.mrf.mxu0  ;;  %7419 = vmatprep.subr.bf16.mxu1 %v9093_v49  ;;  %7448 = vmatprep.subr.bf16.mxu0 %v9141_v63  ;;  %v9910_v49 = vld [vmem:[#allocation16 + $0x98] sm:$0xff]   ;;  %v9911_v63 = vld [vmem:[#allocation16 + $0x40] sm:$0xff]   ;;  %v9915_v51 = vld [vmem:[#allocation16 + $0xc8] sm:$0xff]  }
 0x68d   : > { %v9918_v21 = vld [vmem:[#allocation16 + $0x138] sm:$0xff]  }
 0x68e   : > { %v11342_v9 = vpop.f32.mrf.mxu1 }
 0x68f   : > { %7420 = vmatpush2.bf16.msra.mxu1 %v9092_v61  ;;  %7449 = vmatpush1.bf16.msra.mxu0 %v9140_v10  ;;  %v9916_v61 = vld [vmem:[#allocation16 + $0x178] sm:$0xff]   ;;  %v9917_v10 = vld [vmem:[#allocation16 + $0x88] sm:$0xff]  }
 0x690   : > { %v11344_v22 = vpop.f32.mrf.mxu1  ;;  %7421 = vmatprep.subr.bf16.mxu1 %v9085_v42  ;;  %7450 = vmatprep.subr.bf16.mxu0 %v9133_v59  ;;  %v7485_v42 = vpack.c.bf16 %v7477_v55, %v7477_v55  ;;  %v9919_v59 = vld [vmem:[#allocation16 + $0xc0] sm:$0xff]  }
 0x692   : > { %v7146_v44 = vpop.f32.mrf.mxu1 }
 0x693   : > { %7422 = vmatpush2.bf16.msra.mxu1 %v9084_v38  ;;  %7451 = vmatpush1.bf16.msra.mxu0 %v9132_v26  ;;  %v9922_v38 = vld [vmem:[#allocation16 + $0x130] sm:$0xff]   ;;  %v9923_v26 = vld [vmem:[#allocation16 + $0x168] sm:$0xff]   ;;  %v9928_v44 = vld [vmem:[#allocation16 + $0x118] sm:$0xff]  }
 0x694   : > { %v7147_v60 = vpop.f32.mrf.mxu1  ;;  %7423 = vmatprep.subr.bf16.mxu1 %v9077_v16  ;;  %9353 = vmatprep.subr.bf16.mxu0 %v9887_v47  ;;  %v9924_v16 = vld [vmem:[#allocation16 + $0x128] sm:$0xff]   ;;  %v7487_v47 = vpack.c.bf16 %v7479_v57, %v7479_v57 }
 0x696   : > { %9161 = vmatmul.mubr.msk.bf16.vlgmr.msra.gmra.mxu0 %vm1708_vm5, %v9953_v54 }
 0x697   : > { %7424 = vmatpush2.bf16.msra.mxu1 %v9076_v36  ;;  %9354 = vmatpush3.bf16.msra.mxu0 %v9888_v14  ;;  %v9929_v36 = vld [vmem:[#allocation16 + $0x150] sm:$0xff]   ;;  %v7143_v14 = vadd.f32 %v11342_v9, %v11337_v1  ;;  %v9933_v9 = vld [vmem:[#allocation16 + $0x140] sm:$0xff]  }
 0x698   : > { %8044 = vmatprep.mubr.bf16.mxu0 %v7486_v24  ;;  %7425 = vmatprep.subr.bf16.mxu1 %v9069_v13  ;;  %v7145_v13 = vadd.f32 %v11344_v22, %v7104_v58  ;;  %v9937_v22 = vld [vmem:[#allocation16 + $0x1f0] sm:$0xff]  }
 0x699   : > { %9355 = vmatprep.subr.bf16.mxu0 %v9889_v17  ;;  %v9930_v17 = vld [vmem:[#allocation16 + $0x110] sm:$0xff]  }
 0x69b   : > { %7426 = vmatpush2.bf16.msra.mxu1 %v9068_v62  ;;  %9356 = vmatpush3.bf16.msra.mxu0 %v9890_v31  ;;  %v9931_v62 = vld [vmem:[#allocation16 + $0x148] sm:$0xff]  }
 0x69c   : > { %9357 = vmatprep.subr.bf16.mxu0 %v9891_v4  ;;  %9375 = vmatprep.subr.bf16.mxu1 %v9892_v53  ;;  %v9935_v4 = vld [vmem:[#allocation16 + $0x1f8] sm:$0xff]  }
 0x69e   : > { %v11349_v43 = vpop.f32.mrf.mxu1  ;;  %7428 = vmatmul.mubr.bf16.vlgmr.msra.gmra.mxu1 %v11229_v28  ;;  %v9903_v28 = vld [vmem:[#allocation16 + $0x50] sm:$0xff]  }
 0x69f   : > { %9358 = vmatpush3.bf16.msra.mxu0 %v9893_v32  ;;  %9376 = vmatpush3.bf16.msra.mxu1 %v9894_v29  ;;  %v9938_v29 = vld [vmem:[#allocation16 + $0x1b0] sm:$0xff]  }
 0x6a0   : > { %8084 = vmatprep.mubr.bf16.mxu1 %v7488_v50  ;;  %v11352_v41 = vpop.f32.mrf.mxu1  ;;  %9359 = vmatprep.subr.bf16.mxu0 %v9895_v15 }
 0x6a1   : > { %9377 = vmatprep.subr.bf16.mxu1 %v9896_v45  ;;  %v9939_v45 = vld [vmem:[#allocation16 + $0x1e8] sm:$0xff]  }
 0x6a2   : > { %v7228_v46 = vpop.f32.mrf.mxu1 }
 0x6a3   : > { %9360 = vmatpush3.bf16.msra.mxu0 %v9897_v39  ;;  %9378 = vmatpush3.bf16.msra.mxu1 %v9898_v27  ;;  %v9934_v39 = vld [vmem:[#allocation16 + $0x100] sm:$0xff]   ;;  %v9943_v46 = vld [vmem:[#allocation16 + $0x1d8] sm:$0xff]  }
 0x6a4   : > { %v7229_v7 = vpop.f32.mrf.mxu1  ;;  %9361 = vmatprep.subr.bf16.mxu0 %v9899_v37  ;;  %9379 = vmatprep.subr.bf16.mxu1 %v9900_v35  ;;  %v9941_v37 = vld [vmem:[#allocation16 + $0x1e0] sm:$0xff]  }
 0x6a5   : > { %v9942_v35 = vld [vmem:[#allocation16 + $0x1a0] sm:$0xff]  }
 0x6a7   : > { %9362 = vmatpush3.bf16.msra.mxu0 %v9901_v19  ;;  %9380 = vmatpush3.bf16.msra.mxu1 %v9902_v52  ;;  %v9944_v19 = vld [vmem:[#allocation16 + $0x198] sm:$0xff]   ;;  %v9945_v52 = vld [vmem:[#allocation16 + $0x1d0] sm:$0xff]  }
 0x6a8   : > { %9363 = vmatprep.subr.bf16.mxu0 %v9903_v28  ;;  %9381 = vmatprep.subr.bf16.mxu1 %v9904_v20  ;;  %v9946_v28 = vld [vmem:[#allocation16 + $0x190] sm:$0xff]  }
 0x6ab   : > { %9364 = vmatpush3.bf16.msra.mxu0 %v9905_v8  ;;  %9382 = vmatpush3.bf16.msra.mxu1 %v9906_v23  ;;  %v9947_v8 = vld [vmem:[#allocation16 + $0x1c8] sm:$0xff]  }
 0x6ac   : > { %9365 = vmatprep.subr.bf16.mxu0 %v9907_v30  ;;  %9383 = vmatprep.subr.bf16.mxu1 %v9908_v12  ;;  %v9948_v30 = vld [vmem:[#allocation16 + $0x188] sm:$0xff]  }
 0x6af   : > { %9366 = vmatpush3.bf16.msra.mxu0 %v9909_v48  ;;  %9384 = vmatpush3.bf16.msra.mxu1 %v9910_v49  ;;  %v9949_v48 = vld [vmem:[#allocation16 + $0x1c0] sm:$0xff]  }
 0x6b0   : > { %9367 = vmatprep.subr.bf16.mxu0 %v9911_v63  ;;  %9385 = vmatprep.subr.bf16.mxu1 %v9912_v34  ;;  %v9950_v49 = vld [vmem:[#allocation16 + $0x180] sm:$0xff]   ;;  %v3078_v63 = vsub.s32 6, %v11235_v25  ;;  %v3082_v34 = vsub.s32 7, %v11235_v25 }
 0x6b3   : > { %9368 = vmatpush3.bf16.msra.mxu0 %v9913_v18  ;;  %9386 = vmatpush3.bf16.msra.mxu1 %v9914_v6  ;;  %v9954_v18 = vld [vmem:[#allocation14] sm:$0xff] }
 0x6b4   : > { %9387 = vmatprep.subr.bf16.mxu1 %v9915_v51  ;;  %9397 = vmatprep.subr.bf16.mxu0 %v9916_v61  ;;  %v3079_v6 = vrot.slane %v9954_v18, %v3078_v63  ;;  %v3083_v55 = vrot.slane %v9954_v18, %v3082_v34 }
 0x6b6   : > { %8045 = vmatmul.mubr.bf16.vlgmr.msra.gmra.mxu0 %v7485_v42 }
 0x6b7   : > { %9388 = vmatpush3.bf16.msra.mxu1 %v9917_v10  ;;  %9398 = vmatpush3.bf16.msra.mxu0 %v9918_v21 }
 0x6b8   : > { %9389 = vmatprep.subr.bf16.mxu1 %v9919_v59  ;;  %9399 = vmatprep.subr.bf16.mxu0 %v9920_v56 }
 0x6bb   : > { %9390 = vmatpush3.bf16.msra.mxu1 %v9921_v5  ;;  %9400 = vmatpush3.bf16.msra.mxu0 %v9922_v38 }
 0x6bc   : > { %9401 = vmatprep.subr.bf16.mxu0 %v9923_v26  ;;  %9419 = vmatprep.subr.bf16.mxu1 %v9935_v4 }
 0x6be   : > { %8085 = vmatmul.mubr.bf16.vlgmr.msra.gmra.mxu1 %v7487_v47 }
 0x6bf   : > { %9402 = vmatpush3.bf16.msra.mxu0 %v9924_v16  ;;  %9420 = vmatpush3.bf16.msra.mxu1 %v9936_v11 }
 0x6c0   : > { %9403 = vmatprep.subr.bf16.mxu0 %v9925_v33  ;;  %9421 = vmatprep.subr.bf16.mxu1 %v9937_v22 }
 0x6c3   : > { %9404 = vmatpush3.bf16.msra.mxu0 %v9926_v40  ;;  %9422 = vmatpush3.bf16.msra.mxu1 %v9938_v29 }
 0x6c4   : > { %9405 = vmatprep.subr.bf16.mxu0 %v9927_v3  ;;  %9423 = vmatprep.subr.bf16.mxu1 %v9939_v45 }
 0x6c6   : > { %v7183_v60 = vpop.f32.mrf.mxu0 }
 0x6c7   : > { %9406 = vmatpush3.bf16.msra.mxu0 %v9928_v44  ;;  %v7184_v24 = vadd.f32 %v7183_v60, %v7143_v14 }
 0x6c8   : > { %v7185_v54 = vpop.f32.mrf.mxu0  ;;  %9407 = vmatprep.subr.bf16.mxu0 %v9929_v36 }
 0x6c9   : > { %v7186_v31 = vadd.f32 %v7185_v54, %v7145_v13  ;;  %v7225_v1 = vadd.f32 %v11349_v43, %v7184_v24 }
 0x6ca   : > { %v7187_v53 = vpop.f32.mrf.mxu0 }
 0x6cb   : > { %v7227_v32 = vadd.f32 %v11352_v41, %v7186_v31  ;;  %9408 = vmatpush3.bf16.msra.mxu0 %v9930_v17  ;;  %v7481_v27 = vmax.f32 %v7225_v1, 0.0  ;;  %v9940_v41 = vld [vmem:[#allocation16 + $0x1a8] sm:$0xff]  }
 0x6cc   : > { %v7188_v2 = vpop.f32.mrf.mxu0  ;;  %9409 = vmatprep.subr.bf16.mxu0 %v9931_v62  ;;  %9424 = vmatpush3.bf16.msra.mxu1 %v9940_v41 }
 0x6cd   : > { %v7482_v15 = vmax.f32 %v7227_v32, 0.0  ;;  %v7489_v43 = vpack.c.bf16 %v7481_v27, %v7481_v27  ;;  %9425 = vmatprep.subr.bf16.mxu1 %v9941_v37 }
 0x6cf   : > { %v7490_v50 = vpack.c.bf16 %v7482_v15, %v7482_v15  ;;  %9410 = vmatpush3.bf16.msra.mxu0 %v9932_v0 }
 0x6d0   : > { %9411 = vmatprep.subr.bf16.mxu0 %v9933_v9  ;;  %9426 = vmatpush3.bf16.msra.mxu1 %v9942_v35 }
 0x6d1   : > { %8124 = vmatprep.mubr.bf16.mxu0 %v7490_v50  ;;  %9427 = vmatprep.subr.bf16.mxu1 %v9943_v46 }
 0x6d3   : > { %9412 = vmatpush3.bf16.msra.mxu0 %v9934_v39  ;;  %v9162_v39 = vld [vmem:[#allocation17] ss:$0 sm:$0xff] }
 0x6d4   : > { %9428 = vmatpush3.bf16.msra.mxu1 %v9944_v19 }
 0x6d5   : > { %9429 = vmatprep.subr.bf16.mxu1 %v9945_v52 }
 0x6d6   : > { %8125 = vmatmul.mubr.bf16.vlgmr.msra.gmra.mxu0 %v7489_v43 }
 0x6d8   : > { %9430 = vmatpush3.bf16.msra.mxu1 %v9946_v28 }
 0x6d9   : > { %9431 = vmatprep.subr.bf16.mxu1 %v9947_v8 }
 0x6dc   : > { %9432 = vmatpush3.bf16.msra.mxu1 %v9948_v30 }
 0x6dd   : > { %9433 = vmatprep.subr.bf16.mxu1 %v9949_v48 }
 0x6de   : > { %v7265_v7 = vpop.f32.mrf.mxu1 }
 0x6df   : > { %v7266_v51 = vadd.f32 %v7265_v7, %v3079_v6 }
 0x6e0   : > { %v7267_v20 = vpop.f32.mrf.mxu1  ;;  %9434 = vmatpush3.bf16.msra.mxu1 %v9950_v49 }
 0x6e1   : > { %v7268_v10 = vadd.f32 %v7267_v20, %v3083_v55 }
 0x6e2   : > { %v7269_v23 = vpop.f32.mrf.mxu1 }
 0x6e4   : > { %v7270_v12 = vpop.f32.mrf.mxu1 }
 0x706   : > { %v7306_v61 = vpop.f32.mrf.mxu0 }
 0x707   : > { %v7307_v21 = vadd.f32 %v7306_v61, %v7266_v51 }
 0x708   : > { %v7308_v42 = vpop.f32.mrf.mxu0 }
 0x709   : > { %v7309_v59 = vadd.f32 %v7308_v42, %v7268_v10 }
 0x70a   : > { %v7310_v56 = vpop.f32.mrf.mxu0 }
 0x70c   : > { %v7311_v5 = vpop.f32.mrf.mxu0 }
 0x71e   : > { %v7347_v38 = vpop.f32.mrf.mxu1 }
 0x71f   : > { %v7348_v58 = vadd.f32 %v7347_v38, %v7307_v21 }
 0x720   : > { %v7349_v57 = vpop.f32.mrf.mxu1 }
 0x721   : > { %v7350_v60 = vadd.f32 %v7349_v57, %v7309_v59 }
 0x722   : > { %v7351_v26 = vpop.f32.mrf.mxu1 }
 0x724   : > { %v7352_v16 = vpop.f32.mrf.mxu1 }
 0x746   : > { %v7388_v47 = vpop.f32.mrf.mxu0 }
 0x747   : > { %v7389_v13 = vadd.f32 %v7388_v47, %v7348_v58 }
 0x748   : > { %v7390_v33 = vpop.f32.mrf.mxu0 }
 0x749   : > { %v7391_v24 = vadd.f32 %v7390_v33, %v7350_v60 }
 0x74a   : > { %v7392_v40 = vpop.f32.mrf.mxu0 }
 0x74c   : > { %v7393_v3 = vpop.f32.mrf.mxu0 }
 0x756   : > { %v7470_v25 = vpop.f32.mrf.mxu0 }
 0x758   : > { %v7472_v44 = vpop.f32.mrf.mxu0 }
 0x75a   : > { %v7474_v36 = vpop.f32.mrf.mxu0 }
 0x75c   : > { %v7475_v14 = vpop.f32.mrf.mxu0 }
 0x75e   : > { %v7429_v17 = vpop.f32.mrf.mxu1 }
 0x75f   : > { %v7430_v54 = vadd.f32 %v7429_v17, %v7389_v13 }
 0x760   : > { %v7431_v62 = vpop.f32.mrf.mxu1 }
 0x761   : > { %v7471_v31 = vadd.f32 %v7470_v25, %v7430_v54  ;;  %v7432_v4 = vadd.f32 %v7431_v62, %v7391_v24 }
 0x762   : > { %v7433_v53 = vpop.f32.mrf.mxu1 }
 0x763   : > { %v7473_v11 = vadd.f32 %v7472_v44, %v7432_v4  ;;  %v7483_v32 = vmax.f32 %v7471_v31, 0.0 }
 0x764   : > { %v7434_v0 = vpop.f32.mrf.mxu1 }
 0x765   : > { %v7484_v1 = vmax.f32 %v7473_v11, 0.0  ;;  %v7491_v9 = vpack.c.bf16 %v7483_v32, %v7483_v32 }
 0x767   : > { %v7492_v2 = vpack.c.bf16 %v7484_v1, %v7484_v1 }
 0x769   : > { %8164 = vmatprep.mubr.bf16.mxu1 %v7492_v2 }
 0x76a   : > { %8165 = vmatmul.mubr.bf16.vlgmr.msra.gmra.mxu1 %v7491_v9 }
 0x776   : > { %v9369_v22 = vpop.f32.mrf.mxu0 }
 0x778   : > { %v9370_v29 = vpop.f32.mrf.mxu0 }
 0x779   : > { %v9371_v15 = vadd.f32 %v9370_v29, %v9369_v22 }
 0x77a   : > { %v9372_v45 = vpop.f32.mrf.mxu0 }
 0x77b   : > { %v8047_v43 = vadd.f32 %v9371_v15, %v9162_v39 }
 0x77c   : > { %v9373_v50 = vpop.f32.mrf.mxu0 }
 0x77e   : > { %v9391_v27 = vpop.f32.mrf.mxu1 }
 0x780   : > { %v9392_v41 = vpop.f32.mrf.mxu1 }
 0x781   : > { %v9393_v37 = vadd.f32 %v9392_v41, %v9391_v27 }
 0x782   : > { %v9394_v35 = vpop.f32.mrf.mxu1 }
 0x783   : > { %v8087_v46 = vadd.f32 %v9393_v37, %v8047_v43 }
 0x784   : > { %v9395_v19 = vpop.f32.mrf.mxu1 }
 0x796   : > { %v9413_v52 = vpop.f32.mrf.mxu0 }
 0x798   : > { %v9414_v7 = vpop.f32.mrf.mxu0 }
 0x799   : > { %v9415_v28 = vadd.f32 %v9414_v7, %v9413_v52 }
 0x79a   : > { %v9416_v20 = vpop.f32.mrf.mxu0 }
 0x79b   : > { %v8127_v8 = vadd.f32 %v9415_v28, %v8087_v46 }
 0x79c   : > { %v9417_v23 = vpop.f32.mrf.mxu0 }
 0x82a   : > { %v9435_v30 = vpop.f32.mrf.mxu1 }
 0x82c   : > { %v9436_v12 = vpop.f32.mrf.mxu1 }
 0x82d   : > { %v9437_v48 = vadd.f32 %v9436_v12, %v9435_v30 }
 0x82e   : > { %v9438_v49 = vpop.f32.mrf.mxu1 }
 0x82f   : > { %v8167_v63 = vadd.f32 %v9437_v48, %v8127_v8 }
 0x830   : > { %v9439_v34 = vpop.f32.mrf.mxu1 }
 0x831   : > { %8172 = vst [vmem:[%s522_s28] sm:$0xff] %v8167_v63 }
 0x832 PF: > { %s27_s17 = sadd.s32 1, %s10245_s17  }
 0x833   : > { %p24_p5 = scmp.ge.s32.totalorder %s27_s17, 4  }
 0x835   :  { %26 = sbr.rel (!%p24_p5) target bundleno = 6 (0x6), region = 141 }
 0x83a   :  { %8192 = vsyncpa [#allocation4], 1 }
 0x83b   :  { %8194 = vsyncpa [#allocation4 + $0x1], 1 }
 0x83c   :  { %8195 = vsyncpa [#allocation6], 1 }
 0x83d   :  { %8196 = vsyncpa [#allocation9], 1 }
 0x83e   :  { %8197 = vsyncpa [#allocation12], 1 }
 0x83f   :  { %8198 = vsyncpa [#allocation15], 1 }
 0x840   :  { %8199 = vsyncpa [#allocation18], 1 }

</bundles_post_ra>
